<compile_context>
chip_gen: v5e
topology: v5e:2x2
jax: 0.10.0
libtpu: 0.0.40
codegen_flags: <defaults>
</compile_context>

<pallas_src>
import functools

import jax
import jax.numpy as jnp
from jax.experimental import pallas as pl
from jax.experimental.pallas import tpu as pltpu


# --------------------------------------------------------------------------- #
# Kernels
# --------------------------------------------------------------------------- #
def _mlp_loss_resident_kernel(x_ref, w_ref, loss_ref, x_carry):
    """grid = (n_batch_tiles,). Whole weight stack is VMEM-resident.

    x_ref:    (TB, D)    bf16 input tile
    w_ref:    (L, D, D)  bf16 weights, pre-transposed to (in, out)
    loss_ref: (1, 1)     SMEM f32 partial loss for this batch tile
    x_carry:  (TB, D)    bf16 VMEM scratch (layer-to-layer activation)
    """
    nlayers = w_ref.shape[0]
    x_carry[...] = x_ref[...]

    def layer_step(l, token):
        y = jax.lax.dot_general(
            x_carry[...],
            w_ref[l],
            dimension_numbers=(((1,), (0,)), ((), ())),
            preferred_element_type=jnp.float32,
        )
        x_carry[...] = y.astype(x_carry.dtype)
        return token

    jax.lax.fori_loop(0, nlayers, layer_step, 0, unroll=True)
    loss_ref[0, 0] = jnp.sum(x_carry[...].astype(jnp.float32))


def _mlp_loss_streamed_kernel(x_ref, w_ref, loss_ref, x_carry):
    """grid = (n_batch_tiles, L). Weights streamed one layer per grid step."""
    layer = pl.program_id(1)

    @pl.when(layer == 0)
    def _init():
        x_carry[...] = x_ref[...]

    y = jax.lax.dot_general(
        x_carry[...],
        w_ref[...],
        dimension_numbers=(((1,), (0,)), ((), ())),
        preferred_element_type=jnp.float32,
    )
    x_carry[...] = y.astype(x_carry.dtype)

    @pl.when(layer == pl.num_programs(1) - 1)
    def _finalize():
        loss_ref[0, 0] = jnp.sum(x_carry[...].astype(jnp.float32))


# --------------------------------------------------------------------------- #
# Wrapper
# --------------------------------------------------------------------------- #
def _vmem_budget_bytes():
    """~88% of physical VMEM (64 MiB on v7x, 128 MiB on v5e/v6e): leaves
    headroom for compiler-internal scratch instead of clamping to 64 MiB."""
    try:
        cap = int(pltpu.get_tpu_info().vmem_capacity_bytes)
    except Exception:
        cap = 64 * 1024 * 1024  # conservative fallback (v7x size)
    return int(cap * 0.88)


def _pick_batch_tile(B, fits):
    """Largest MXU-aligned batch tile that divides B and fits the VMEM budget,
    capped at 1024 (past the weight-stream roofline crossover ~240/640/310
    flop/byte on v5e/v6e/v7x); split in two when alignment allows so both v7x
    TensorCores get a tile."""
    for align in (256, 128):  # 2x256x256 MXU on v6e/v7x, 4x128x128 on v5e
        tb = (min(B, 1024) // align) * align
        while tb >= align:
            if B % tb == 0 and fits(tb):
                if B // tb < 2 and tb % (2 * align) == 0:
                    tb //= 2  # give the second TensorCore (v7x) work
                return tb
            tb -= align
    # small / unaligned batches: whole batch if it fits, else keep halving
    tb = B
    while tb > 1 and (B % tb != 0 or not fits(tb)):
        tb = max(1, tb // 2)
    return tb


def base_mlp_loss(x, weights, *, compute_dtype=jnp.bfloat16, batch_tile=None,
                  force_streamed=False):
    """x: (B, D) f32, weights: (L, D, D) f32 (torch (out, in)) -> scalar f32 loss."""
    B, D = x.shape
    L = weights.shape[0]
    assert weights.shape == (L, D, D)

    itemsize = jnp.dtype(compute_dtype).itemsize
    vmem_budget = _vmem_budget_bytes()

    w_stack_bytes = L * D * D * itemsize
    # Keep all L weights VMEM-resident when (conservatively double-buffered) they
    # use at most half the budget; otherwise stream one layer per grid step.
    weights_resident = (not force_streamed) and (2 * w_stack_bytes <= vmem_budget // 2)

    def fits(tb):
        act = 2 * tb * D * itemsize            # double-buffered bf16 x tile
        carry = tb * D * itemsize              # bf16 activation carry scratch
        w = 2 * w_stack_bytes if weights_resident else 3 * D * D * itemsize
        return act + carry + w <= vmem_budget

    if batch_tile is None:
        batch_tile = _pick_batch_tile(B, fits)
    assert B % batch_tile == 0, (B, batch_tile)
    n_b = B // batch_tile

    # One wrapper-side cast + transpose: bf16 halves all HBM traffic; (in, out)
    # layout gives the canonical x @ w contraction inside the kernel.
    x_c = x.astype(compute_dtype)
    w_t = jnp.swapaxes(weights, 1, 2).astype(compute_dtype)

    vmem_limit = vmem_budget  # ~56 MiB on v7x, ~112 MiB on v5e/v6e

    if weights_resident:
        partials = pl.pallas_call(
            _mlp_loss_resident_kernel,
            out_shape=jax.ShapeDtypeStruct((n_b, 1), jnp.float32),
            grid_spec=pltpu.PrefetchScalarGridSpec(
                num_scalar_prefetch=0,
                grid=(n_b,),
                in_specs=[
                    pl.BlockSpec((batch_tile, D), lambda b: (b, 0)),
                    # Constant block index: the full weight stack is fetched from
                    # HBM once and stays resident across all batch tiles.
                    pl.BlockSpec((L, D, D), lambda b: (0, 0, 0)),
                ],
                out_specs=pl.BlockSpec((1, 1), lambda b: (b, 0),
                                       memory_space=pltpu.SMEM),
                scratch_shapes=[pltpu.VMEM((batch_tile, D), compute_dtype)],
            ),
            compiler_params=pltpu.CompilerParams(
                dimension_semantics=("parallel",),
                vmem_limit_bytes=vmem_limit,
            ),
        )(x_c, w_t)
    else:
        partials = pl.pallas_call(
            _mlp_loss_streamed_kernel,
            out_shape=jax.ShapeDtypeStruct((n_b, 1), jnp.float32),
            grid_spec=pltpu.PrefetchScalarGridSpec(
                num_scalar_prefetch=0,
                grid=(n_b, L),  # layer axis innermost: sequential carry
                in_specs=[
                    pl.BlockSpec((batch_tile, D), lambda b, l: (b, 0)),
                    pl.BlockSpec((None, D, D), lambda b, l: (l, 0, 0),
                                 pipeline_mode=pl.Buffered(3)),
                ],
                out_specs=pl.BlockSpec((1, 1), lambda b, l: (b, 0),
                                       memory_space=pltpu.SMEM),
                scratch_shapes=[pltpu.VMEM((batch_tile, D), compute_dtype)],
            ),
            compiler_params=pltpu.CompilerParams(
                dimension_semantics=("parallel", "arbitrary"),
                vmem_limit_bytes=vmem_limit,
            ),
        )(x_c, w_t)

    return jnp.sum(partials)


def base_mlp_loss_ref(x, weights, compute_dtype=jnp.float32):
    """Pure-JAX reference matching torch semantics; with compute_dtype=bf16 it
    mirrors the kernel numerics exactly (bf16 operands/carry, f32 accumulate)."""
    h = x.astype(compute_dtype)
    for layer in range(weights.shape[0]):
        w = weights[layer].astype(compute_dtype)
        h = jax.lax.dot_general(
            h, w,
            dimension_numbers=(((1,), (1,)), ((), ())),  # x @ W.T
            preferred_element_type=jnp.float32,
        ).astype(compute_dtype)
    return jnp.sum(h.astype(jnp.float32))


if __name__ == "__main__":
    # Module defaults: dim=512, nlayers=4. Small batch of 8 (one sublane tile).
    B, D, L = 8, 512, 4

    key = jax.random.PRNGKey(0)
    kx, kw = jax.random.split(key)
    x = jax.random.normal(kx, (B, D), dtype=jnp.float32)
    # torch Linear-like init: U(-1/sqrt(D), 1/sqrt(D)).
    bound = 1.0 / jnp.sqrt(jnp.float32(D))
    weights = jax.random.uniform(
        kw, (L, D, D), dtype=jnp.float32, minval=-bound, maxval=bound
    )

    # Weights-resident path (default: 4*512*512 bf16 = 2 MiB fits VMEM easily).
    loss_resident = jax.jit(base_mlp_loss)(x, weights)
    jax.block_until_ready(loss_resident)

    # Streamed path (exercised when the weight stack does not fit VMEM).
    loss_streamed = jax.jit(
        functools.partial(base_mlp_loss, force_streamed=True)
    )(x, weights)
    jax.block_until_ready(loss_streamed)

    ref_bf16 = base_mlp_loss_ref(x, weights, compute_dtype=jnp.bfloat16)
    ref_f32 = base_mlp_loss_ref(x, weights, compute_dtype=jnp.float32)

    for name, loss in (("resident", loss_resident), ("streamed", loss_streamed)):
        # Tight check against a reference with identical bf16-operand numerics.
        assert jnp.allclose(loss, ref_bf16, rtol=5e-3, atol=5e-2), (name, loss, ref_bf16)
        # Loose sanity check against exact f32 torch semantics.
        assert jnp.allclose(loss, ref_f32, rtol=1e-1, atol=1.0), (name, loss, ref_f32)

    print("KERNEL_OK")
</pallas_src>

<mosaic_0001>
module attributes {stable_mosaic.version = 11 : i64} {
  func.func @_mlp_loss_resident_kernel(%arg0: i32, %arg1: memref<8x512xbf16, #tpu.memory_space<vmem>>, %arg2: memref<4x512x512xbf16, #tpu.memory_space<vmem>>, %arg3: memref<1x1xf32, #tpu.memory_space<smem>>, %arg4: memref<8x512xbf16, #tpu.memory_space<vmem>>) attributes {dimension_semantics = [#tpu.dimension_semantics<parallel>], iteration_bounds = array<i64: 1>, scalar_prefetch = 0 : i64, scratch_operands = 1 : i64, tpu.core_type = #tpu.core_type<tc>, window_params = [{transform_indices = @transform_0, window_bounds = array<i64: 8, 512>}, {pipeline_mode = #tpu.pipeline_mode<synchronous>, transform_indices = @transform_1, window_bounds = array<i64: 4, 512, 512>}, {transform_indices = @transform_2, window_bounds = array<i64: 1, 1>}]} {
    %c0 = arith.constant 0 : index
    %c0_0 = arith.constant 0 : index
    %0 = vector.load %arg1[%c0, %c0_0] : memref<8x512xbf16, #tpu.memory_space<vmem>>, vector<8x512xbf16>
    %c0_1 = arith.constant 0 : index
    %c0_2 = arith.constant 0 : index
    %1 = vector.load %arg4[%c0_1, %c0_2] : memref<8x512xbf16, #tpu.memory_space<vmem>>, vector<8x512xbf16>
    tpu.vector_store %arg4[%c0_1, %c0_2], %0 {strides = array<i32>} : memref<8x512xbf16, #tpu.memory_space<vmem>>, vector<8x512xbf16>,
    %c0_i32 = arith.constant 0 : i32
    %c0_3 = arith.constant 0 : index
    %c0_4 = arith.constant 0 : index
    %2 = vector.load %arg4[%c0_3, %c0_4] : memref<8x512xbf16, #tpu.memory_space<vmem>>, vector<8x512xbf16>
    %3 = arith.index_cast %c0_i32 : i32 to index
    %c0_5 = arith.constant 0 : index
    %c0_6 = arith.constant 0 : index
    %4 = vector.load %arg2[%3, %c0_5, %c0_6] : memref<4x512x512xbf16, #tpu.memory_space<vmem>>, vector<1x512x512xbf16>
    %5 = vector.shape_cast %4 : vector<1x512x512xbf16> to vector<512x512xbf16>
    %cst = arith.constant dense<0.000000e+00> : vector<8x512xf32>
    %6 = tpu.matmul %2, %5, %cst {dimension_numbers = #tpu.dot_dimension_numbers<[1], [0], [0], [1], [0, 0, 1, 1], [], []>} : vector<8x512xbf16>, vector<512x512xbf16>, vector<8x512xf32> -> vector<8x512xf32>
    %7 = arith.truncf %6 : vector<8x512xf32> to vector<8x512xbf16>
    %c0_7 = arith.constant 0 : index
    %c0_8 = arith.constant 0 : index
    %8 = vector.load %arg4[%c0_7, %c0_8] : memref<8x512xbf16, #tpu.memory_space<vmem>>, vector<8x512xbf16>
    tpu.vector_store %arg4[%c0_7, %c0_8], %7 {strides = array<i32>} : memref<8x512xbf16, #tpu.memory_space<vmem>>, vector<8x512xbf16>,
    %c1_i32 = arith.constant 1 : i32
    %c0_9 = arith.constant 0 : index
    %c0_10 = arith.constant 0 : index
    %9 = vector.load %arg4[%c0_9, %c0_10] : memref<8x512xbf16, #tpu.memory_space<vmem>>, vector<8x512xbf16>
    %10 = arith.index_cast %c1_i32 : i32 to index
    %c0_11 = arith.constant 0 : index
    %c0_12 = arith.constant 0 : index
    %11 = vector.load %arg2[%10, %c0_11, %c0_12] : memref<4x512x512xbf16, #tpu.memory_space<vmem>>, vector<1x512x512xbf16>
    %12 = vector.shape_cast %11 : vector<1x512x512xbf16> to vector<512x512xbf16>
    %cst_13 = arith.constant dense<0.000000e+00> : vector<8x512xf32>
    %13 = tpu.matmul %9, %12, %cst_13 {dimension_numbers = #tpu.dot_dimension_numbers<[1], [0], [0], [1], [0, 0, 1, 1], [], []>} : vector<8x512xbf16>, vector<512x512xbf16>, vector<8x512xf32> -> vector<8x512xf32>
    %14 = arith.truncf %13 : vector<8x512xf32> to vector<8x512xbf16>
    %c0_14 = arith.constant 0 : index
    %c0_15 = arith.constant 0 : index
    %15 = vector.load %arg4[%c0_14, %c0_15] : memref<8x512xbf16, #tpu.memory_space<vmem>>, vector<8x512xbf16>
    tpu.vector_store %arg4[%c0_14, %c0_15], %14 {strides = array<i32>} : memref<8x512xbf16, #tpu.memory_space<vmem>>, vector<8x512xbf16>,
    %c2_i32 = arith.constant 2 : i32
    %c0_16 = arith.constant 0 : index
    %c0_17 = arith.constant 0 : index
    %16 = vector.load %arg4[%c0_16, %c0_17] : memref<8x512xbf16, #tpu.memory_space<vmem>>, vector<8x512xbf16>
    %17 = arith.index_cast %c2_i32 : i32 to index
    %c0_18 = arith.constant 0 : index
    %c0_19 = arith.constant 0 : index
    %18 = vector.load %arg2[%17, %c0_18, %c0_19] : memref<4x512x512xbf16, #tpu.memory_space<vmem>>, vector<1x512x512xbf16>
    %19 = vector.shape_cast %18 : vector<1x512x512xbf16> to vector<512x512xbf16>
    %cst_20 = arith.constant dense<0.000000e+00> : vector<8x512xf32>
    %20 = tpu.matmul %16, %19, %cst_20 {dimension_numbers = #tpu.dot_dimension_numbers<[1], [0], [0], [1], [0, 0, 1, 1], [], []>} : vector<8x512xbf16>, vector<512x512xbf16>, vector<8x512xf32> -> vector<8x512xf32>
    %21 = arith.truncf %20 : vector<8x512xf32> to vector<8x512xbf16>
    %c0_21 = arith.constant 0 : index
    %c0_22 = arith.constant 0 : index
    %22 = vector.load %arg4[%c0_21, %c0_22] : memref<8x512xbf16, #tpu.memory_space<vmem>>, vector<8x512xbf16>
    tpu.vector_store %arg4[%c0_21, %c0_22], %21 {strides = array<i32>} : memref<8x512xbf16, #tpu.memory_space<vmem>>, vector<8x512xbf16>,
    %c3_i32 = arith.constant 3 : i32
    %c0_23 = arith.constant 0 : index
    %c0_24 = arith.constant 0 : index
    %23 = vector.load %arg4[%c0_23, %c0_24] : memref<8x512xbf16, #tpu.memory_space<vmem>>, vector<8x512xbf16>
    %24 = arith.index_cast %c3_i32 : i32 to index
    %c0_25 = arith.constant 0 : index
    %c0_26 = arith.constant 0 : index
    %25 = vector.load %arg2[%24, %c0_25, %c0_26] : memref<4x512x512xbf16, #tpu.memory_space<vmem>>, vector<1x512x512xbf16>
    %26 = vector.shape_cast %25 : vector<1x512x512xbf16> to vector<512x512xbf16>
    %cst_27 = arith.constant dense<0.000000e+00> : vector<8x512xf32>
    %27 = tpu.matmul %23, %26, %cst_27 {dimension_numbers = #tpu.dot_dimension_numbers<[1], [0], [0], [1], [0, 0, 1, 1], [], []>} : vector<8x512xbf16>, vector<512x512xbf16>, vector<8x512xf32> -> vector<8x512xf32>
    %28 = arith.truncf %27 : vector<8x512xf32> to vector<8x512xbf16>
    %c0_28 = arith.constant 0 : index
    %c0_29 = arith.constant 0 : index
    %29 = vector.load %arg4[%c0_28, %c0_29] : memref<8x512xbf16, #tpu.memory_space<vmem>>, vector<8x512xbf16>
    tpu.vector_store %arg4[%c0_28, %c0_29], %28 {strides = array<i32>} : memref<8x512xbf16, #tpu.memory_space<vmem>>, vector<8x512xbf16>,
    %c4_i32 = arith.constant 4 : i32
    %c0_30 = arith.constant 0 : index
    %c0_31 = arith.constant 0 : index
    %30 = vector.load %arg4[%c0_30, %c0_31] : memref<8x512xbf16, #tpu.memory_space<vmem>>, vector<8x512xbf16>
    %31 = arith.extf %30 : vector<8x512xbf16> to vector<8x512xf32>
    %32 = vector.shape_cast %31 : vector<8x512xf32> to vector<1x8x512xf32>
    %cst_32 = arith.constant dense<0.000000e+00> : vector<1xf32>
    %33 = vector.multi_reduction <add>, %32, %cst_32 [1, 2] : vector<1x8x512xf32> to vector<1xf32>
    %34 = vector.shape_cast %33 : vector<1xf32> to vector<1x1x1xf32>
    %35 = vector.extract %34[0, 0, 0] : f32 from vector<1x1x1xf32>
    %c0_33 = arith.constant 0 : index
    %c0_34 = arith.constant 0 : index
    %36 = memref.load %arg3[%c0_33, %c0_34] : memref<1x1xf32, #tpu.memory_space<smem>>
    memref.store %35, %arg3[%c0_33, %c0_34] : memref<1x1xf32, #tpu.memory_space<smem>>
    return
  }
  func.func @transform_0(%arg0: i32) -> (i32, i32) {
    %c0_i32 = arith.constant 0 : i32
    %c0_i32_0 = arith.constant 0 : i32
    return %arg0, %c0_i32 : i32, i32
  }
  func.func @transform_1(%arg0: i32) -> (i32, i32, i32) {
    %c0_i32 = arith.constant 0 : i32
    %c0_i32_0 = arith.constant 0 : i32
    %c0_i32_1 = arith.constant 0 : i32
    %c0_i32_2 = arith.constant 0 : i32
    return %c0_i32, %c0_i32_0, %c0_i32_1 : i32, i32, i32
  }
  func.func @transform_2(%arg0: i32) -> (i32, i32) {
    %c0_i32 = arith.constant 0 : i32
    %c0_i32_0 = arith.constant 0 : i32
    return %arg0, %c0_i32 : i32, i32
  }
}

</mosaic_0001>

<bundles_post_ra>
// kernel: base_mlp_loss.1
= control target key start
LH: loop header
LB: loop body
LE: loop exit
PB: predicated region body
PF: predicated region fallthrough
CT: control target
= control target key end

     0   :  { %s10261_s0 = inlined_call_operand.vmem [shape: bf16[8,512], index: 0, kind: input, shape index: {}]   ;;  %s10262_s1 = inlined_call_operand.vmem [shape: bf16[4,512,512], index: 1, kind: input, shape index: {}]   ;;  %s10263_s2 = inlined_call_operand.hbm [shape: f32[1,1], index: 2, kind: output, shape index: {}]  }
   0x1   :  { %v4152_v0 = vld [vmem:[%s10262_s1 + $0xe0] sm:$0xf]  ;;  %v6500_v1 = vld [vmem:[%s10262_s1 + $0xec] sm:$0xf0] }
   0x2   :  { %v4280_v2 = vld [vmem:[%s10262_s1 + $0x1e0] sm:$0xf]  ;;  %v4153_v3 = vor.u32 %v6500_v1, %v4152_v0  ;;  %v6532_v4 = vld [vmem:[%s10262_s1 + $0x1ec] sm:$0xf0] }
   0x3   :  { %v4408_v5 = vld [vmem:[%s10262_s1 + $0x2e0] sm:$0xf]  ;;  %v6564_v6 = vld [vmem:[%s10262_s1 + $0x2ec] sm:$0xf0]  ;;  %v4281_v7 = vor.u32 %v6532_v4, %v4280_v2 }
   0x4   :  { %v4409_v8 = vor.u32 %v6564_v6, %v4408_v5  ;;  %v4536_v9 = vld [vmem:[%s10262_s1 + $0x3e0] sm:$0xf]  ;;  %v6596_v10 = vld [vmem:[%s10262_s1 + $0x3ec] sm:$0xf0]  ;;  %800 = vmatpush.bf16.msra.mxu0 %v4153_v3 }
   0x5   :  { %v4136_v11 = vld [vmem:[%s10262_s1 + $0xc0] sm:$0xf]  ;;  %v4537_v12 = vor.u32 %v6596_v10, %v4536_v9  ;;  %v6496_v13 = vld [vmem:[%s10262_s1 + $0xcc] sm:$0xf0]  ;;  %813 = vmatpush.bf16.msra.mxu1 %v4281_v7 }
   0x6   :  { %v4264_v14 = vld [vmem:[%s10262_s1 + $0x1c0] sm:$0xf]  ;;  %v6528_v15 = vld [vmem:[%s10262_s1 + $0x1cc] sm:$0xf0]  ;;  %826 = vmatpush.bf16.msra.mxu2 %v4409_v8  ;;  %v4137_v16 = vor.u32 %v6496_v13, %v4136_v11 }
   0x7   :  { %v4265_v17 = vor.u32 %v6528_v15, %v4264_v14  ;;  %v4392_v18 = vld [vmem:[%s10262_s1 + $0x2c0] sm:$0xf]  ;;  %v6560_v19 = vld [vmem:[%s10262_s1 + $0x2cc] sm:$0xf0]  ;;  %839 = vmatpush.bf16.msra.mxu3 %v4537_v12 }
   0x8   :  { %v4520_v20 = vld [vmem:[%s10262_s1 + $0x3c0] sm:$0xf]  ;;  %v4393_v21 = vor.u32 %v6560_v19, %v4392_v18  ;;  %v6592_v22 = vld [vmem:[%s10262_s1 + $0x3cc] sm:$0xf0]  ;;  %801 = vmatpush.bf16.msra.mxu0 %v4137_v16 }
   0x9   :  { %v4120_v23 = vld [vmem:[%s10262_s1 + $0xa0] sm:$0xf]  ;;  %v6492_v24 = vld [vmem:[%s10262_s1 + $0xac] sm:$0xf0]  ;;  %v4521_v25 = vor.u32 %v6592_v22, %v4520_v20  ;;  %814 = vmatpush.bf16.msra.mxu1 %v4265_v17 }
   0xa   :  { %v4248_v26 = vld [vmem:[%s10262_s1 + $0x1a0] sm:$0xf]  ;;  %v6524_v27 = vld [vmem:[%s10262_s1 + $0x1ac] sm:$0xf0]  ;;  %v4121_v29 = vor.u32 %v6492_v24, %v4120_v23  ;;  %827 = vmatpush.bf16.msra.mxu2 %v4393_v21 }
   0xb   :  { %v4376_v28 = vld [vmem:[%s10262_s1 + $0x2a0] sm:$0xf]  ;;  %v6556_v30 = vld [vmem:[%s10262_s1 + $0x2ac] sm:$0xf0]  ;;  %v4249_v33 = vor.u32 %v6524_v27, %v4248_v26  ;;  %840 = vmatpush.bf16.msra.mxu3 %v4521_v25 }
   0xc   :  { %v4504_v31 = vld [vmem:[%s10262_s1 + $0x3a0] sm:$0xf]  ;;  %v6588_v32 = vld [vmem:[%s10262_s1 + $0x3ac] sm:$0xf0]  ;;  %v4377_v34 = vor.u32 %v6556_v30, %v4376_v28  ;;  %802 = vmatpush.bf16.msra.mxu0 %v4121_v29  ;;  %v6498_v28 = vld [vmem:[%s10262_s1 + $0xe4] sm:$0xf] }
   0xd   :  { %v4104_v35 = vld [vmem:[%s10262_s1 + $0x80] sm:$0xf]  ;;  %v6488_v36 = vld [vmem:[%s10262_s1 + $0x8c] sm:$0xf0]  ;;  %v4505_v38 = vor.u32 %v6588_v32, %v4504_v31  ;;  %815 = vmatpush.bf16.msra.mxu1 %v4249_v33  ;;  %v4154_v29 = vld [vmem:[%s10262_s1 + $0xf0] sm:$0xf0] }
   0xe   :  { %v4232_v37 = vld [vmem:[%s10262_s1 + $0x180] sm:$0xf]  ;;  %v6520_v39 = vld [vmem:[%s10262_s1 + $0x18c] sm:$0xf0]  ;;  %v4105_v44 = vor.u32 %v6488_v36, %v4104_v35  ;;  %828 = vmatpush.bf16.msra.mxu2 %v4377_v34  ;;  %v6530_v30 = vld [vmem:[%s10262_s1 + $0x1e4] sm:$0xf] }
   0xf   :  { %v4360_v40 = vld [vmem:[%s10262_s1 + $0x280] sm:$0xf]  ;;  %v6552_v41 = vld [vmem:[%s10262_s1 + $0x28c] sm:$0xf0]  ;;  %v4233_v45 = vor.u32 %v6520_v39, %v4232_v37  ;;  %841 = vmatpush.bf16.msra.mxu3 %v4505_v38  ;;  %v4282_v32 = vld [vmem:[%s10262_s1 + $0x1f0] sm:$0xf0] }
  0x10   :  { %v4488_v42 = vld [vmem:[%s10262_s1 + $0x380] sm:$0xf]  ;;  %v6584_v43 = vld [vmem:[%s10262_s1 + $0x38c] sm:$0xf0]  ;;  %v4361_v46 = vor.u32 %v6552_v41, %v4360_v40  ;;  %803 = vmatpush.bf16.msra.mxu0 %v4105_v44  ;;  %v6562_v33 = vld [vmem:[%s10262_s1 + $0x2e4] sm:$0xf]  ;;  %v4157_v40 = vor.u32 %v6498_v28, %v4154_v29  ;;  %v4285_v41 = vor.u32 %v6530_v30, %v4282_v32 }
  0x11   :  { %v4088_v47 = vld [vmem:[%s10262_s1 + $0x60] sm:$0xf]  ;;  %v6484_v48 = vld [vmem:[%s10262_s1 + $0x6c] sm:$0xf0]  ;;  %v4489_v50 = vor.u32 %v6584_v43, %v4488_v42  ;;  %816 = vmatpush.bf16.msra.mxu1 %v4233_v45  ;;  %v4410_v34 = vld [vmem:[%s10262_s1 + $0x2f0] sm:$0xf0] }
  0x12   :  { %v4216_v49 = vld [vmem:[%s10262_s1 + $0x160] sm:$0xf]  ;;  %v6516_v51 = vld [vmem:[%s10262_s1 + $0x16c] sm:$0xf0]  ;;  %v4089_v56 = vor.u32 %v6484_v48, %v4088_v47  ;;  %829 = vmatpush.bf16.msra.mxu2 %v4361_v46  ;;  %v6594_v37 = vld [vmem:[%s10262_s1 + $0x3e4] sm:$0xf]  ;;  %v4413_v42 = vor.u32 %v6562_v33, %v4410_v34 }
  0x13   :  { %v4344_v52 = vld [vmem:[%s10262_s1 + $0x260] sm:$0xf]  ;;  %v6548_v53 = vld [vmem:[%s10262_s1 + $0x26c] sm:$0xf0]  ;;  %v4217_v57 = vor.u32 %v6516_v51, %v4216_v49  ;;  %842 = vmatpush.bf16.msra.mxu3 %v4489_v50  ;;  %v4538_v38 = vld [vmem:[%s10262_s1 + $0x3f0] sm:$0xf0] }
  0x14   :  { %v4472_v54 = vld [vmem:[%s10262_s1 + $0x360] sm:$0xf]  ;;  %v6580_v55 = vld [vmem:[%s10262_s1 + $0x36c] sm:$0xf0]  ;;  %v4345_v58 = vor.u32 %v6548_v53, %v4344_v52  ;;  %804 = vmatpush.bf16.msra.mxu0 %v4089_v56  ;;  %v6494_v43 = vld [vmem:[%s10262_s1 + $0xc4] sm:$0xf]  ;;  %v4541_v46 = vor.u32 %v6594_v37, %v4538_v38 }
  0x15   :  { %v4072_v59 = vld [vmem:[%s10262_s1 + $0x40] sm:$0xf]  ;;  %v6480_v60 = vld [vmem:[%s10262_s1 + $0x4c] sm:$0xf0]  ;;  %v4473_v62 = vor.u32 %v6580_v55, %v4472_v54  ;;  %817 = vmatpush.bf16.msra.mxu1 %v4217_v57  ;;  %v4138_v44 = vld [vmem:[%s10262_s1 + $0xd0] sm:$0xf0] }
  0x16   :  { %v4200_v61 = vld [vmem:[%s10262_s1 + $0x140] sm:$0xf]  ;;  %v6512_v63 = vld [vmem:[%s10262_s1 + $0x14c] sm:$0xf0]  ;;  %v4073_v4 = vor.u32 %v6480_v60, %v4072_v59  ;;  %830 = vmatpush.bf16.msra.mxu2 %v4345_v58  ;;  %v6526_v45 = vld [vmem:[%s10262_s1 + $0x1c4] sm:$0xf]  ;;  %v4141_v53 = vor.u32 %v6494_v43, %v4138_v44 }
  0x17   :  { %v4328_v0 = vld [vmem:[%s10262_s1 + $0x240] sm:$0xf]  ;;  %v6544_v1 = vld [vmem:[%s10262_s1 + $0x24c] sm:$0xf0]  ;;  %v4201_v5 = vor.u32 %v6512_v63, %v4200_v61  ;;  %843 = vmatpush.bf16.msra.mxu3 %v4473_v62  ;;  %v4266_v47 = vld [vmem:[%s10262_s1 + $0x1d0] sm:$0xf0] }
  0x18   :  { %v4456_v2 = vld [vmem:[%s10262_s1 + $0x340] sm:$0xf]  ;;  %v6576_v3 = vld [vmem:[%s10262_s1 + $0x34c] sm:$0xf0]  ;;  %v4329_v6 = vor.u32 %v6544_v1, %v4328_v0  ;;  %805 = vmatpush.bf16.msra.mxu0 %v4073_v4  ;;  %v6558_v48 = vld [vmem:[%s10262_s1 + $0x2c4] sm:$0xf]  ;;  %v4269_v57 = vor.u32 %v6526_v45, %v4266_v47 }
  0x19   :  { %v4056_v7 = vld [vmem:[%s10262_s1 + $0x20] sm:$0xf]  ;;  %v6476_v8 = vld [vmem:[%s10262_s1 + $0x2c] sm:$0xf0]  ;;  %v4457_v10 = vor.u32 %v6576_v3, %v4456_v2  ;;  %818 = vmatpush.bf16.msra.mxu1 %v4201_v5  ;;  %v4394_v49 = vld [vmem:[%s10262_s1 + $0x2d0] sm:$0xf0] }
  0x1a   :  { %v4184_v9 = vld [vmem:[%s10262_s1 + $0x120] sm:$0xf]  ;;  %v6508_v11 = vld [vmem:[%s10262_s1 + $0x12c] sm:$0xf0]  ;;  %v4057_v16 = vor.u32 %v6476_v8, %v4056_v7  ;;  %831 = vmatpush.bf16.msra.mxu2 %v4329_v6  ;;  %v6590_v50 = vld [vmem:[%s10262_s1 + $0x3c4] sm:$0xf]  ;;  %v4397_v58 = vor.u32 %v6558_v48, %v4394_v49 }
  0x1b   :  { %v4312_v12 = vld [vmem:[%s10262_s1 + $0x220] sm:$0xf]  ;;  %v6540_v13 = vld [vmem:[%s10262_s1 + $0x22c] sm:$0xf0]  ;;  %v4185_v19 = vor.u32 %v6508_v11, %v4184_v9  ;;  %844 = vmatpush.bf16.msra.mxu3 %v4457_v10  ;;  %v4522_v51 = vld [vmem:[%s10262_s1 + $0x3d0] sm:$0xf0] }
  0x1c   :  { %v4440_v14 = vld [vmem:[%s10262_s1 + $0x320] sm:$0xf]  ;;  %v6572_v15 = vld [vmem:[%s10262_s1 + $0x32c] sm:$0xf0]  ;;  %v4313_v20 = vor.u32 %v6540_v13, %v4312_v12  ;;  %806 = vmatpush.bf16.msra.mxu0 %v4057_v16  ;;  %v13_v52 = vld [vmem:[%s10261_s0 + $0x8] sm:$0xff]  ;;  %v4525_v62 = vor.u32 %v6590_v50, %v4522_v51 }
  0x1d   :  { %v4040_v17 = vld [vmem:[%s10262_s1] sm:$0xf]  ;;  %v6472_v18 = vld [vmem:[%s10262_s1 + $0xc] sm:$0xf0]  ;;  %v4441_v24 = vor.u32 %v6572_v15, %v4440_v14  ;;  %819 = vmatpush.bf16.msra.mxu1 %v4185_v19  ;;  %v6490_v54 = vld [vmem:[%s10262_s1 + $0xa4] sm:$0xf]  ;;  %v150_v55 = vunpack.c.l.b16 %v13_v52  ;;  %v151_v56 = vunpack.c.h.b16 %v13_v52 }
  0x1e   :  { %v4168_v21 = vld [vmem:[%s10262_s1 + $0x100] sm:$0xf]  ;;  %v6504_v22 = vld [vmem:[%s10262_s1 + $0x10c] sm:$0xf0]  ;;  %v4041_v31 = vor.u32 %v6472_v18, %v4040_v17  ;;  %832 = vmatpush.bf16.msra.mxu2 %v4313_v20  ;;  %v4122_v59 = vld [vmem:[%s10262_s1 + $0xb0] sm:$0xf0] }
  0x1f   :  { %v4296_v23 = vld [vmem:[%s10262_s1 + $0x200] sm:$0xf]  ;;  %v6536_v25 = vld [vmem:[%s10262_s1 + $0x20c] sm:$0xf0]  ;;  %v4169_v35 = vor.u32 %v6504_v22, %v4168_v21  ;;  %845 = vmatpush.bf16.msra.mxu3 %v4441_v24  ;;  %v6522_v60 = vld [vmem:[%s10262_s1 + $0x1a4] sm:$0xf]  ;;  %v7276_v1 = vpack.c.b16 %v150_v55, %v150_v55  ;;  %v7287_v5 = vpack.c.b16 %v151_v56, %v151_v56  ;;  %v4125_v8 = vor.u32 %v6490_v54, %v4122_v59 }
  0x20   :  { %v4424_v26 = vld [vmem:[%s10262_s1 + $0x300] sm:$0xf]  ;;  %v6568_v27 = vld [vmem:[%s10262_s1 + $0x30c] sm:$0xf0]  ;;  %v4297_v36 = vor.u32 %v6536_v25, %v4296_v23  ;;  %807 = vmatpush.bf16.msra.mxu0 %v4041_v31  ;;  %v4250_v61 = vld [vmem:[%s10262_s1 + $0x1b0] sm:$0xf0] }
  0x21   :  { %v4425_v39 = vor.u32 %v6568_v27, %v4424_v26  ;;  %820 = vmatpush.bf16.msra.mxu1 %v4169_v35  ;;  %v6554_v63 = vld [vmem:[%s10262_s1 + $0x2a4] sm:$0xf]  ;;  %v4378_v0 = vld [vmem:[%s10262_s1 + $0x2b0] sm:$0xf0]  ;;  %v4253_v9 = vor.u32 %v6522_v60, %v4250_v61 }
  0x22   :  { %833 = vmatpush.bf16.msra.mxu2 %v4297_v36  ;;  %v12_v2 = vld [vmem:[%s10261_s0] sm:$0xff]  ;;  %v4506_v4 = vld [vmem:[%s10262_s1 + $0x3b0] sm:$0xf0]  ;;  %v4381_v10 = vor.u32 %v6554_v63, %v4378_v0 }
  0x23   :  { %846 = vmatpush.bf16.msra.mxu3 %v4425_v39  ;;  %v6586_v3 = vld [vmem:[%s10262_s1 + $0x3a4] sm:$0xf]  ;;  %v148_v6 = vunpack.c.l.b16 %v12_v2  ;;  %v149_v7 = vunpack.c.h.b16 %v12_v2  ;;  %v4106_v12 = vld [vmem:[%s10262_s1 + $0x90] sm:$0xf0] }
  0x24   :  { %852 = vmatpush.bf16.msrb.mxu0 %v4157_v40  ;;  %v6486_v11 = vld [vmem:[%s10262_s1 + $0x84] sm:$0xf]  ;;  %v4509_v16 = vor.u32 %v6586_v3, %v4506_v4  ;;  %v4234_v17 = vld [vmem:[%s10262_s1 + $0x190] sm:$0xf0] }
  0x25   :  { %865 = vmatpush.bf16.msrb.mxu1 %v4285_v41  ;;  %834 = vmatmul.bf16.vlgmr.msra.gmra.mxu2 %v7276_v1  ;;  %v6518_v13 = vld [vmem:[%s10262_s1 + $0x184] sm:$0xf]  ;;  %v7299_v14 = vpack.c.b16 %v148_v6, %v148_v6  ;;  %v7301_v15 = vpack.c.b16 %v149_v7, %v149_v7  ;;  %v4362_v19 = vld [vmem:[%s10262_s1 + $0x290] sm:$0xf0]  ;;  %v4109_v22 = vor.u32 %v6486_v11, %v4106_v12  ;;  %v6533_v12 = vld [vmem:[%s10262_s1 + $0x1f4] sm:$0xf0] }
  0x26   :  { %878 = vmatpush.bf16.msrb.mxu2 %v4413_v42  ;;  %v6550_v18 = vld [vmem:[%s10262_s1 + $0x284] sm:$0xf]  ;;  %v4490_v21 = vld [vmem:[%s10262_s1 + $0x390] sm:$0xf0]  ;;  %847 = vmatmul.bf16.vlgmr.msra.gmra.mxu3 %v7287_v5  ;;  %v4237_v23 = vor.u32 %v6518_v13, %v4234_v17  ;;  %v4416_v13 = vld [vmem:[%s10262_s1 + $0x2e8] sm:$0xf] }
  0x27   :  { %891 = vmatpush.bf16.msrb.mxu3 %v4541_v46  ;;  %v6582_v20 = vld [vmem:[%s10262_s1 + $0x384] sm:$0xf]  ;;  %808 = vmatmul.bf16.vlgmr.msra.gmra.mxu0 %v7299_v14  ;;  %v4365_v24 = vor.u32 %v6550_v18, %v4362_v19  ;;  %v4090_v26 = vld [vmem:[%s10262_s1 + $0x70] sm:$0xf0]  ;;  %v4544_v19 = vld [vmem:[%s10262_s1 + $0x3e8] sm:$0xf] }
  0x28   :  { %853 = vmatpush.bf16.msrb.mxu0 %v4141_v53  ;;  %821 = vmatmul.bf16.vlgmr.msra.gmra.mxu1 %v7301_v15  ;;  %v6482_v25 = vld [vmem:[%s10262_s1 + $0x64] sm:$0xf]  ;;  %v4493_v28 = vor.u32 %v6582_v20, %v4490_v21  ;;  %v4218_v29 = vld [vmem:[%s10262_s1 + $0x170] sm:$0xf0]  ;;  %v6597_v20 = vld [vmem:[%s10262_s1 + $0x3f4] sm:$0xf0] }
  0x29   :  { %866 = vmatpush.bf16.msrb.mxu1 %v4269_v57  ;;  %v6514_v27 = vld [vmem:[%s10262_s1 + $0x164] sm:$0xf]  ;;  %v4346_v31 = vld [vmem:[%s10262_s1 + $0x270] sm:$0xf0]  ;;  %v4093_v34 = vor.u32 %v6482_v25, %v4090_v26  ;;  %v4144_v25 = vld [vmem:[%s10262_s1 + $0xc8] sm:$0xf] }
  0x2a   :  { %879 = vmatpush.bf16.msrb.mxu2 %v4397_v58  ;;  %v6546_v30 = vld [vmem:[%s10262_s1 + $0x264] sm:$0xf]  ;;  %v4474_v33 = vld [vmem:[%s10262_s1 + $0x370] sm:$0xf0]  ;;  %v4221_v35 = vor.u32 %v6514_v27, %v4218_v29  ;;  %v6497_v26 = vld [vmem:[%s10262_s1 + $0xd4] sm:$0xf0] }
  0x2b   :  { %892 = vmatpush.bf16.msrb.mxu3 %v4525_v62  ;;  %v6578_v32 = vld [vmem:[%s10262_s1 + $0x364] sm:$0xf]  ;;  %v4349_v36 = vor.u32 %v6546_v30, %v4346_v31  ;;  %v4074_v38 = vld [vmem:[%s10262_s1 + $0x50] sm:$0xf0]  ;;  %v4272_v27 = vld [vmem:[%s10262_s1 + $0x1c8] sm:$0xf] }
  0x2c   :  { %854 = vmatpush.bf16.msrb.mxu0 %v4125_v8  ;;  %v6478_v37 = vld [vmem:[%s10262_s1 + $0x44] sm:$0xf]  ;;  %v4477_v40 = vor.u32 %v6578_v32, %v4474_v33  ;;  %v4202_v41 = vld [vmem:[%s10262_s1 + $0x150] sm:$0xf0]  ;;  %v4160_v8 = vld [vmem:[%s10262_s1 + $0xe8] sm:$0xf] }
  0x2d   :  { %867 = vmatpush.bf16.msrb.mxu1 %v4253_v9  ;;  %v6510_v39 = vld [vmem:[%s10262_s1 + $0x144] sm:$0xf]  ;;  %v4330_v43 = vld [vmem:[%s10262_s1 + $0x250] sm:$0xf0]  ;;  %v4077_v46 = vor.u32 %v6478_v37, %v4074_v38  ;;  %v6501_v9 = vld [vmem:[%s10262_s1 + $0xf4] sm:$0xf0] }
  0x2e   :  { %880 = vmatpush.bf16.msrb.mxu2 %v4381_v10  ;;  %v6542_v42 = vld [vmem:[%s10262_s1 + $0x244] sm:$0xf]  ;;  %v4458_v45 = vld [vmem:[%s10262_s1 + $0x350] sm:$0xf0]  ;;  %v4205_v47 = vor.u32 %v6510_v39, %v4202_v41  ;;  %v4288_v10 = vld [vmem:[%s10262_s1 + $0x1e8] sm:$0xf] }
  0x2f   :  { %893 = vmatpush.bf16.msrb.mxu3 %v4509_v16  ;;  %v6574_v44 = vld [vmem:[%s10262_s1 + $0x344] sm:$0xf]  ;;  %v4333_v48 = vor.u32 %v6542_v42, %v4330_v43  ;;  %v4058_v50 = vld [vmem:[%s10262_s1 + $0x30] sm:$0xf0]  ;;  %v6565_v16 = vld [vmem:[%s10262_s1 + $0x2f4] sm:$0xf0] }
  0x30   :  { %855 = vmatpush.bf16.msrb.mxu0 %v4109_v22  ;;  %v6474_v49 = vld [vmem:[%s10262_s1 + $0x24] sm:$0xf]  ;;  %v4461_v52 = vor.u32 %v6574_v44, %v4458_v45  ;;  %v4186_v53 = vld [vmem:[%s10262_s1 + $0x130] sm:$0xf0]  ;;  %v4161_v22 = vor.u32 %v6501_v9, %v4160_v8  ;;  %v6529_v29 = vld [vmem:[%s10262_s1 + $0x1d4] sm:$0xf0] }
  0x31   :  { %868 = vmatpush.bf16.msrb.mxu1 %v4237_v23  ;;  %v6506_v51 = vld [vmem:[%s10262_s1 + $0x124] sm:$0xf]  ;;  %v4314_v55 = vld [vmem:[%s10262_s1 + $0x230] sm:$0xf0]  ;;  %v4061_v58 = vor.u32 %v6474_v49, %v4058_v50  ;;  %v4289_v23 = vor.u32 %v6533_v12, %v4288_v10  ;;  %v4400_v30 = vld [vmem:[%s10262_s1 + $0x2c8] sm:$0xf] }
  0x32   :  { %881 = vmatpush.bf16.msrb.mxu2 %v4365_v24  ;;  %v6538_v54 = vld [vmem:[%s10262_s1 + $0x224] sm:$0xf]  ;;  %v4442_v57 = vld [vmem:[%s10262_s1 + $0x330] sm:$0xf0]  ;;  %v4189_v61 = vor.u32 %v6506_v51, %v4186_v53  ;;  %v4417_v24 = vor.u32 %v6565_v16, %v4416_v13  ;;  %v6561_v31 = vld [vmem:[%s10262_s1 + $0x2d4] sm:$0xf0] }
  0x33   :  { %894 = vmatpush.bf16.msrb.mxu3 %v4493_v28  ;;  %v6570_v56 = vld [vmem:[%s10262_s1 + $0x324] sm:$0xf]  ;;  %v4042_v60 = vld [vmem:[%s10262_s1 + $0x10] sm:$0xf0]  ;;  %v4317_v62 = vor.u32 %v6538_v54, %v4314_v55  ;;  %v4545_v28 = vor.u32 %v6597_v20, %v4544_v19  ;;  %v4528_v32 = vld [vmem:[%s10262_s1 + $0x3c8] sm:$0xf] }
  0x34   :  { %856 = vmatpush.bf16.msrb.mxu0 %v4093_v34  ;;  %v6470_v59 = vld [vmem:[%s10262_s1 + $0x4] sm:$0xf]  ;;  %v4170_v0 = vld [vmem:[%s10262_s1 + $0x110] sm:$0xf0]  ;;  %v4445_v3 = vor.u32 %v6570_v56, %v4442_v57  ;;  %v6593_v33 = vld [vmem:[%s10262_s1 + $0x3d4] sm:$0xf0]  ;;  %v4145_v34 = vor.u32 %v6497_v26, %v4144_v25 }
  0x35   :  { %869 = vmatpush.bf16.msrb.mxu1 %v4221_v35  ;;  %v6502_v63 = vld [vmem:[%s10262_s1 + $0x104] sm:$0xf]  ;;  %v4298_v4 = vld [vmem:[%s10262_s1 + $0x210] sm:$0xf0]  ;;  %v4045_v11 = vor.u32 %v6470_v59, %v4042_v60  ;;  %v4273_v35 = vor.u32 %v6529_v29, %v4272_v27  ;;  %v4128_v37 = vld [vmem:[%s10262_s1 + $0xa8] sm:$0xf] }
  0x36   :  { %882 = vmatpush.bf16.msrb.mxu2 %v4349_v36  ;;  %v6534_v2 = vld [vmem:[%s10262_s1 + $0x204] sm:$0xf]  ;;  %v4426_v7 = vld [vmem:[%s10262_s1 + $0x310] sm:$0xf0]  ;;  %v4173_v17 = vor.u32 %v6502_v63, %v4170_v0  ;;  %v4401_v36 = vor.u32 %v6561_v31, %v4400_v30  ;;  %v6493_v38 = vld [vmem:[%s10262_s1 + $0xb4] sm:$0xf0] }
  0x37   :  { %895 = vmatpush.bf16.msrb.mxu3 %v4477_v40  ;;  %v6566_v6 = vld [vmem:[%s10262_s1 + $0x304] sm:$0xf]  ;;  %v4301_v18 = vor.u32 %v6534_v2, %v4298_v4  ;;  %v4256_v39 = vld [vmem:[%s10262_s1 + $0x1a8] sm:$0xf]  ;;  %v4529_v40 = vor.u32 %v6593_v33, %v4528_v32  ;;  %v6525_v41 = vld [vmem:[%s10262_s1 + $0x1b4] sm:$0xf0] }
  0x38   :  { %857 = vmatpush.bf16.msrb.mxu0 %v4077_v46  ;;  %v4429_v21 = vor.u32 %v6566_v6, %v4426_v7  ;;  %v4384_v42 = vld [vmem:[%s10262_s1 + $0x2a8] sm:$0xf]  ;;  %v6557_v43 = vld [vmem:[%s10262_s1 + $0x2b4] sm:$0xf0]  ;;  %v4129_v46 = vor.u32 %v6493_v38, %v4128_v37 }
  0x39   :  { %870 = vmatpush.bf16.msrb.mxu1 %v4205_v47  ;;  %v4512_v44 = vld [vmem:[%s10262_s1 + $0x3a8] sm:$0xf]  ;;  %v6589_v45 = vld [vmem:[%s10262_s1 + $0x3b4] sm:$0xf0]  ;;  %v4257_v47 = vor.u32 %v6525_v41, %v4256_v39 }
  0x3a   :  { %883 = vmatpush.bf16.msrb.mxu2 %v4333_v48  ;;  %v4385_v48 = vor.u32 %v6557_v43, %v4384_v42  ;;  %v4112_v49 = vld [vmem:[%s10262_s1 + $0x88] sm:$0xf]  ;;  %v6489_v50 = vld [vmem:[%s10262_s1 + $0x94] sm:$0xf0] }
  0x3b   :  { %896 = vmatpush.bf16.msrb.mxu3 %v4461_v52  ;;  %v4240_v51 = vld [vmem:[%s10262_s1 + $0x188] sm:$0xf]  ;;  %v4513_v52 = vor.u32 %v6589_v45, %v4512_v44  ;;  %v6521_v53 = vld [vmem:[%s10262_s1 + $0x194] sm:$0xf0] }
  0x3c   :  { %858 = vmatpush.bf16.msrb.mxu0 %v4061_v58  ;;  %v4368_v54 = vld [vmem:[%s10262_s1 + $0x288] sm:$0xf]  ;;  %v6553_v55 = vld [vmem:[%s10262_s1 + $0x294] sm:$0xf0]  ;;  %v4113_v58 = vor.u32 %v6489_v50, %v4112_v49  ;;  %v4241_v59 = vor.u32 %v6521_v53, %v4240_v51 }
  0x3d   :  { %871 = vmatpush.bf16.msrb.mxu1 %v4189_v61  ;;  %v4496_v56 = vld [vmem:[%s10262_s1 + $0x388] sm:$0xf]  ;;  %v6585_v57 = vld [vmem:[%s10262_s1 + $0x394] sm:$0xf0]  ;;  %v4369_v60 = vor.u32 %v6553_v55, %v4368_v54 }
  0x3e   :  { %884 = vmatpush.bf16.msrb.mxu2 %v4317_v62  ;;  %v4096_v61 = vld [vmem:[%s10262_s1 + $0x68] sm:$0xf]  ;;  %v6485_v62 = vld [vmem:[%s10262_s1 + $0x74] sm:$0xf0]  ;;  %v4497_v0 = vor.u32 %v6585_v57, %v4496_v56 }
  0x3f   :  { %897 = vmatpush.bf16.msrb.mxu3 %v4445_v3  ;;  %v4224_v63 = vld [vmem:[%s10262_s1 + $0x168] sm:$0xf]  ;;  %v6517_v2 = vld [vmem:[%s10262_s1 + $0x174] sm:$0xf0]  ;;  %v4097_v8 = vor.u32 %v6485_v62, %v4096_v61 }
  0x40   :  { %859 = vmatpush.bf16.msrb.mxu0 %v4045_v11  ;;  %v4352_v3 = vld [vmem:[%s10262_s1 + $0x268] sm:$0xf]  ;;  %v6549_v4 = vld [vmem:[%s10262_s1 + $0x274] sm:$0xf0]  ;;  %v4225_v9 = vor.u32 %v6517_v2, %v4224_v63 }
  0x41   :  { %872 = vmatpush.bf16.msrb.mxu1 %v4173_v17  ;;  %v4480_v6 = vld [vmem:[%s10262_s1 + $0x368] sm:$0xf]  ;;  %v6581_v7 = vld [vmem:[%s10262_s1 + $0x374] sm:$0xf0]  ;;  %v4353_v10 = vor.u32 %v6549_v4, %v4352_v3 }
  0x42   :  { %885 = vmatpush.bf16.msrb.mxu2 %v4301_v18  ;;  %v4080_v11 = vld [vmem:[%s10262_s1 + $0x48] sm:$0xf]  ;;  %v6481_v12 = vld [vmem:[%s10262_s1 + $0x54] sm:$0xf0]  ;;  %v4481_v16 = vor.u32 %v6581_v7, %v4480_v6 }
  0x43   :  { %898 = vmatpush.bf16.msrb.mxu3 %v4429_v21  ;;  %860 = vmatmul.bf16.vlgmr.msrb.gmra.mxu0 %v7299_v14  ;;  %v4208_v13 = vld [vmem:[%s10262_s1 + $0x148] sm:$0xf]  ;;  %v6513_v17 = vld [vmem:[%s10262_s1 + $0x154] sm:$0xf0] }
  0x44   :  { %904 = vmatpush.bf16.msra.mxu0 %v4161_v22  ;;  %873 = vmatmul.bf16.vlgmr.msrb.gmra.mxu1 %v7301_v15  ;;  %v4336_v18 = vld [vmem:[%s10262_s1 + $0x248] sm:$0xf]  ;;  %v6545_v19 = vld [vmem:[%s10262_s1 + $0x254] sm:$0xf0] }
  0x45   :  { %917 = vmatpush.bf16.msra.mxu1 %v4289_v23  ;;  %886 = vmatmul.bf16.vlgmr.msrb.gmra.mxu2 %v7276_v1  ;;  %v4464_v20 = vld [vmem:[%s10262_s1 + $0x348] sm:$0xf]  ;;  %v6577_v21 = vld [vmem:[%s10262_s1 + $0x354] sm:$0xf0] }
  0x46   :  { %930 = vmatpush.bf16.msra.mxu2 %v4417_v24  ;;  %899 = vmatmul.bf16.vlgmr.msrb.gmra.mxu3 %v7287_v5 }
  0x47   :  { %943 = vmatpush.bf16.msra.mxu3 %v4545_v28 }
  0x48   :  { %905 = vmatpush.bf16.msra.mxu0 %v4145_v34 }
  0x49   :  { %918 = vmatpush.bf16.msra.mxu1 %v4273_v35 }
  0x4a   :  { %931 = vmatpush.bf16.msra.mxu2 %v4401_v36 }
  0x4b   :  { %944 = vmatpush.bf16.msra.mxu3 %v4529_v40 }
  0x4c   :  { %906 = vmatpush.bf16.msra.mxu0 %v4129_v46 }
  0x4d   :  { %919 = vmatpush.bf16.msra.mxu1 %v4257_v47 }
  0x4e   :  { %932 = vmatpush.bf16.msra.mxu2 %v4385_v48 }
  0x4f   :  { %945 = vmatpush.bf16.msra.mxu3 %v4513_v52 }
  0x50   :  { %907 = vmatpush.bf16.msra.mxu0 %v4113_v58 }
  0x51   :  { %920 = vmatpush.bf16.msra.mxu1 %v4241_v59 }
  0x52   :  { %933 = vmatpush.bf16.msra.mxu2 %v4369_v60 }
  0x53   :  { %946 = vmatpush.bf16.msra.mxu3 %v4497_v0 }
  0x54   :  { %7 = vsyncpa [#allocation4], 0  ;;  %908 = vmatpush.bf16.msra.mxu0 %v4097_v8  ;;  %v4081_v22 = vor.u32 %v6481_v12, %v4080_v11  ;;  %v4209_v23 = vor.u32 %v6513_v17, %v4208_v13  ;;  %v4337_v24 = vor.u32 %v6545_v19, %v4336_v18  ;;  %v4064_v25 = vld [vmem:[%s10262_s1 + $0x28] sm:$0xf]  ;;  %v6477_v26 = vld [vmem:[%s10262_s1 + $0x34] sm:$0xf0]  ;;  %v4465_v28 = vor.u32 %v6577_v21, %v4464_v20 }
  0x55   :  { %921 = vmatpush.bf16.msra.mxu1 %v4225_v9  ;;  %v4192_v27 = vld [vmem:[%s10262_s1 + $0x128] sm:$0xf]  ;;  %v6509_v29 = vld [vmem:[%s10262_s1 + $0x134] sm:$0xf0]  ;;  %v4065_v34 = vor.u32 %v6477_v26, %v4064_v25  ;;  %v6499_v46 = vld [vmem:[%s10262_s1 + $0xec] sm:$0xf] }
  0x56   :  { %934 = vmatpush.bf16.msra.mxu2 %v4353_v10  ;;  %v4320_v30 = vld [vmem:[%s10262_s1 + $0x228] sm:$0xf]  ;;  %v6541_v31 = vld [vmem:[%s10262_s1 + $0x234] sm:$0xf0]  ;;  %v4193_v37 = vor.u32 %v6509_v29, %v4192_v27  ;;  %v4162_v47 = vld [vmem:[%s10262_s1 + $0xf8] sm:$0xf0] }
  0x57   :  { %947 = vmatpush.bf16.msra.mxu3 %v4481_v16  ;;  %v4448_v32 = vld [vmem:[%s10262_s1 + $0x328] sm:$0xf]  ;;  %v6573_v33 = vld [vmem:[%s10262_s1 + $0x334] sm:$0xf0]  ;;  %v4321_v38 = vor.u32 %v6541_v31, %v4320_v30  ;;  %v6531_v48 = vld [vmem:[%s10262_s1 + $0x1ec] sm:$0xf]  ;;  %v4165_v58 = vor.u32 %v6499_v46, %v4162_v47 }
  0x58   :  { %909 = vmatpush.bf16.msra.mxu0 %v4081_v22  ;;  %v4048_v35 = vld [vmem:[%s10262_s1 + $0x8] sm:$0xf]  ;;  %v6473_v36 = vld [vmem:[%s10262_s1 + $0x14] sm:$0xf0]  ;;  %v4449_v42 = vor.u32 %v6573_v33, %v4448_v32  ;;  %v4290_v50 = vld [vmem:[%s10262_s1 + $0x1f8] sm:$0xf0] }
  0x59   :  { %922 = vmatpush.bf16.msra.mxu1 %v4209_v23  ;;  %v4176_v39 = vld [vmem:[%s10262_s1 + $0x108] sm:$0xf]  ;;  %v6505_v40 = vld [vmem:[%s10262_s1 + $0x114] sm:$0xf0]  ;;  %v4049_v49 = vor.u32 %v6473_v36, %v4048_v35  ;;  %v6563_v51 = vld [vmem:[%s10262_s1 + $0x2ec] sm:$0xf]  ;;  %v4293_v59 = vor.u32 %v6531_v48, %v4290_v50 }
  0x5a   :  { %935 = vmatpush.bf16.msra.mxu2 %v4337_v24  ;;  %v4304_v41 = vld [vmem:[%s10262_s1 + $0x208] sm:$0xf]  ;;  %v6537_v43 = vld [vmem:[%s10262_s1 + $0x214] sm:$0xf0]  ;;  %v4418_v52 = vld [vmem:[%s10262_s1 + $0x2f8] sm:$0xf0]  ;;  %v4177_v53 = vor.u32 %v6505_v40, %v4176_v39 }
  0x5b   :  { %948 = vmatpush.bf16.msra.mxu3 %v4465_v28  ;;  %v4432_v44 = vld [vmem:[%s10262_s1 + $0x308] sm:$0xf]  ;;  %v6569_v45 = vld [vmem:[%s10262_s1 + $0x314] sm:$0xf0]  ;;  %v4305_v54 = vor.u32 %v6537_v43, %v4304_v41  ;;  %v6595_v55 = vld [vmem:[%s10262_s1 + $0x3ec] sm:$0xf]  ;;  %v4421_v60 = vor.u32 %v6563_v51, %v4418_v52 }
  0x5c   :  { %910 = vmatpush.bf16.msra.mxu0 %v4065_v34  ;;  %v4546_v56 = vld [vmem:[%s10262_s1 + $0x3f8] sm:$0xf0]  ;;  %v4433_v57 = vor.u32 %v6569_v45, %v4432_v44  ;;  %v6495_v61 = vld [vmem:[%s10262_s1 + $0xcc] sm:$0xf]  ;;  %s4028_s9 = sshll.u32 %s10263_s2, 4  ;;  %s6999_s11 = smov [#allocation3]   ;;  %s4029_s9 = int_to_ptr.hbm [resolvable:$true] %s4028_s9 }
  0x5d   :  { %923 = vmatpush.bf16.msra.mxu1 %v4193_v37  ;;  %v4146_v62 = vld [vmem:[%s10262_s1 + $0xd8] sm:$0xf0]  ;;  %v6527_v63 = vld [vmem:[%s10262_s1 + $0x1cc] sm:$0xf]  ;;  %v4549_v0 = vor.u32 %v6595_v55, %v4546_v56 }
  0x5e   :  { %936 = vmatpush.bf16.msra.mxu2 %v4321_v38  ;;  %v4274_v2 = vld [vmem:[%s10262_s1 + $0x1d8] sm:$0xf0]  ;;  %v6559_v3 = vld [vmem:[%s10262_s1 + $0x2cc] sm:$0xf]  ;;  %v4149_v8 = vor.u32 %v6495_v61, %v4146_v62 }
  0x5f   :  { %949 = vmatpush.bf16.msra.mxu3 %v4449_v42  ;;  %v4402_v4 = vld [vmem:[%s10262_s1 + $0x2d8] sm:$0xf0]  ;;  %v6591_v6 = vld [vmem:[%s10262_s1 + $0x3cc] sm:$0xf]  ;;  %v4277_v9 = vor.u32 %v6527_v63, %v4274_v2 }
  0x60   :  { %911 = vmatpush.bf16.msra.mxu0 %v4049_v49  ;;  %v4530_v7 = vld [vmem:[%s10262_s1 + $0x3d8] sm:$0xf0]  ;;  %v4405_v10 = vor.u32 %v6559_v3, %v4402_v4  ;;  %v6491_v11 = vld [vmem:[%s10262_s1 + $0xac] sm:$0xf] }
  0x61   :  { %924 = vmatpush.bf16.msra.mxu1 %v4177_v53  ;;  %v4130_v12 = vld [vmem:[%s10262_s1 + $0xb8] sm:$0xf0]  ;;  %v6523_v13 = vld [vmem:[%s10262_s1 + $0x1ac] sm:$0xf]  ;;  %v4533_v16 = vor.u32 %v6591_v6, %v4530_v7 }
  0x62   :  { %937 = vmatpush.bf16.msra.mxu2 %v4305_v54  ;;  %v4258_v17 = vld [vmem:[%s10262_s1 + $0x1b8] sm:$0xf0]  ;;  %v6555_v18 = vld [vmem:[%s10262_s1 + $0x2ac] sm:$0xf]  ;;  %v4133_v22 = vor.u32 %v6491_v11, %v4130_v12 }
  0x63   :  { %950 = vmatpush.bf16.msra.mxu3 %v4433_v57  ;;  %v4386_v19 = vld [vmem:[%s10262_s1 + $0x2b8] sm:$0xf0]  ;;  %v6587_v20 = vld [vmem:[%s10262_s1 + $0x3ac] sm:$0xf]  ;;  %912 = vmatmul.bf16.vlgmr.msra.gmra.mxu0 %v7299_v14  ;;  %v4261_v23 = vor.u32 %v6523_v13, %v4258_v17 }
  0x64   :  { %956 = vmatpush.bf16.msrb.mxu0 %v4165_v58  ;;  %v4514_v21 = vld [vmem:[%s10262_s1 + $0x3b8] sm:$0xf0]  ;;  %925 = vmatmul.bf16.vlgmr.msra.gmra.mxu1 %v7301_v15  ;;  %v4389_v24 = vor.u32 %v6555_v18, %v4386_v19  ;;  %v6487_v25 = vld [vmem:[%s10262_s1 + $0x8c] sm:$0xf] }
  0x65   :  { %969 = vmatpush.bf16.msrb.mxu1 %v4293_v59  ;;  %938 = vmatmul.bf16.vlgmr.msra.gmra.mxu2 %v7276_v1  ;;  %v4114_v26 = vld [vmem:[%s10262_s1 + $0x98] sm:$0xf0]  ;;  %v6519_v27 = vld [vmem:[%s10262_s1 + $0x18c] sm:$0xf]  ;;  %v4517_v28 = vor.u32 %v6587_v20, %v4514_v21 }
  0x66   :  { %982 = vmatpush.bf16.msrb.mxu2 %v4421_v60  ;;  %951 = vmatmul.bf16.vlgmr.msra.gmra.mxu3 %v7287_v5  ;;  %v4242_v29 = vld [vmem:[%s10262_s1 + $0x198] sm:$0xf0]  ;;  %v6551_v30 = vld [vmem:[%s10262_s1 + $0x28c] sm:$0xf]  ;;  %v4117_v34 = vor.u32 %v6487_v25, %v4114_v26  ;;  %v4920_v25 = vld [vmem:[%s10262_s1 + $0x5e0] sm:$0xf] }
  0x67   :  { %995 = vmatpush.bf16.msrb.mxu3 %v4549_v0  ;;  %v4370_v31 = vld [vmem:[%s10262_s1 + $0x298] sm:$0xf0]  ;;  %v6583_v32 = vld [vmem:[%s10262_s1 + $0x38c] sm:$0xf]  ;;  %v4245_v35 = vor.u32 %v6519_v27, %v4242_v29  ;;  %v6660_v26 = vld [vmem:[%s10262_s1 + $0x5ec] sm:$0xf0] }
  0x68   :  { %957 = vmatpush.bf16.msrb.mxu0 %v4149_v8  ;;  %v4498_v33 = vld [vmem:[%s10262_s1 + $0x398] sm:$0xf0]  ;;  %v4373_v36 = vor.u32 %v6551_v30, %v4370_v31  ;;  %v6483_v37 = vld [vmem:[%s10262_s1 + $0x6c] sm:$0xf]  ;;  %v4921_v31 = vor.u32 %v6660_v26, %v4920_v25  ;;  %v4890_v25 = vld [vmem:[%s10262_s1 + $0x5b0] sm:$0xf0] }
  0x69   :  { %970 = vmatpush.bf16.msrb.mxu1 %v4277_v9  ;;  %v4098_v38 = vld [vmem:[%s10262_s1 + $0x78] sm:$0xf0]  ;;  %v6515_v39 = vld [vmem:[%s10262_s1 + $0x16c] sm:$0xf]  ;;  %v4501_v40 = vor.u32 %v6583_v32, %v4498_v33  ;;  %v4776_v32 = vld [vmem:[%s10262_s1 + $0x4c0] sm:$0xf] }
  0x6a   :  { %983 = vmatpush.bf16.msrb.mxu2 %v4405_v10  ;;  %v4226_v41 = vld [vmem:[%s10262_s1 + $0x178] sm:$0xf0]  ;;  %v6547_v42 = vld [vmem:[%s10262_s1 + $0x26c] sm:$0xf]  ;;  %v4101_v46 = vor.u32 %v6483_v37, %v4098_v38  ;;  %v6624_v33 = vld [vmem:[%s10262_s1 + $0x4cc] sm:$0xf0] }
  0x6b   :  { %996 = vmatpush.bf16.msrb.mxu3 %v4533_v16  ;;  %v4354_v43 = vld [vmem:[%s10262_s1 + $0x278] sm:$0xf0]  ;;  %v6579_v44 = vld [vmem:[%s10262_s1 + $0x36c] sm:$0xf]  ;;  %v4229_v47 = vor.u32 %v6515_v39, %v4226_v41  ;;  %v4760_v38 = vld [vmem:[%s10262_s1 + $0x4a0] sm:$0xf] }
  0x6c   :  { %958 = vmatpush.bf16.msrb.mxu0 %v4133_v22  ;;  %v4482_v45 = vld [vmem:[%s10262_s1 + $0x378] sm:$0xf0]  ;;  %v4357_v48 = vor.u32 %v6547_v42, %v4354_v43  ;;  %v6479_v49 = vld [vmem:[%s10262_s1 + $0x4c] sm:$0xf]  ;;  %v4792_v22 = vld [vmem:[%s10262_s1 + $0x4e0] sm:$0xf] }
  0x6d   :  { %971 = vmatpush.bf16.msrb.mxu1 %v4261_v23  ;;  %v4082_v50 = vld [vmem:[%s10262_s1 + $0x58] sm:$0xf0]  ;;  %v6511_v51 = vld [vmem:[%s10262_s1 + $0x14c] sm:$0xf]  ;;  %v4485_v52 = vor.u32 %v6579_v44, %v4482_v45  ;;  %v6628_v23 = vld [vmem:[%s10262_s1 + $0x4ec] sm:$0xf0] }
  0x6e   :  { %984 = vmatpush.bf16.msrb.mxu2 %v4389_v24  ;;  %v4210_v53 = vld [vmem:[%s10262_s1 + $0x158] sm:$0xf0]  ;;  %v6543_v54 = vld [vmem:[%s10262_s1 + $0x24c] sm:$0xf]  ;;  %v4085_v58 = vor.u32 %v6479_v49, %v4082_v50  ;;  %v4793_v30 = vor.u32 %v6628_v23, %v4792_v22  ;;  %v6620_v39 = vld [vmem:[%s10262_s1 + $0x4ac] sm:$0xf0] }
  0x6f   :  { %997 = vmatpush.bf16.msrb.mxu3 %v4517_v28  ;;  %v4338_v55 = vld [vmem:[%s10262_s1 + $0x258] sm:$0xf0]  ;;  %v6575_v56 = vld [vmem:[%s10262_s1 + $0x34c] sm:$0xf]  ;;  %v4213_v59 = vor.u32 %v6511_v51, %v4210_v53  ;;  %v4761_v41 = vor.u32 %v6620_v39, %v4760_v38  ;;  %v4872_v43 = vld [vmem:[%s10262_s1 + $0x580] sm:$0xf] }
  0x70   :  { %959 = vmatpush.bf16.msrb.mxu0 %v4117_v34  ;;  %v4466_v57 = vld [vmem:[%s10262_s1 + $0x358] sm:$0xf0]  ;;  %v4341_v60 = vor.u32 %v6543_v54, %v4338_v55  ;;  %v6475_v61 = vld [vmem:[%s10262_s1 + $0x2c] sm:$0xf]  ;;  %v4904_v34 = vld [vmem:[%s10262_s1 + $0x5c0] sm:$0xf] }
  0x71   :  { %972 = vmatpush.bf16.msrb.mxu1 %v4245_v35  ;;  %v4066_v62 = vld [vmem:[%s10262_s1 + $0x38] sm:$0xf0]  ;;  %v6507_v63 = vld [vmem:[%s10262_s1 + $0x12c] sm:$0xf]  ;;  %v4469_v0 = vor.u32 %v6575_v56, %v4466_v57  ;;  %v6656_v35 = vld [vmem:[%s10262_s1 + $0x5cc] sm:$0xf0] }
  0x72   :  { %985 = vmatpush.bf16.msrb.mxu2 %v4373_v36  ;;  %v4194_v2 = vld [vmem:[%s10262_s1 + $0x138] sm:$0xf0]  ;;  %v6539_v3 = vld [vmem:[%s10262_s1 + $0x22c] sm:$0xf]  ;;  %v4069_v8 = vor.u32 %v6475_v61, %v4066_v62  ;;  %v4777_v36 = vor.u32 %v6624_v33, %v4776_v32  ;;  %v4905_v37 = vor.u32 %v6656_v35, %v4904_v34  ;;  %v6644_v49 = vld [vmem:[%s10262_s1 + $0x56c] sm:$0xf0] }
  0x73   :  { %998 = vmatpush.bf16.msrb.mxu3 %v4501_v40  ;;  %v4322_v4 = vld [vmem:[%s10262_s1 + $0x238] sm:$0xf0]  ;;  %v6571_v6 = vld [vmem:[%s10262_s1 + $0x32c] sm:$0xf]  ;;  %v4197_v10 = vor.u32 %v6507_v63, %v4194_v2  ;;  %v4888_v40 = vld [vmem:[%s10262_s1 + $0x5a0] sm:$0xf] }
  0x74   :  { %960 = vmatpush.bf16.msrb.mxu0 %v4101_v46  ;;  %v4450_v7 = vld [vmem:[%s10262_s1 + $0x338] sm:$0xf0]  ;;  %v6471_v9 = vld [vmem:[%s10262_s1 + $0xc] sm:$0xf]  ;;  %v4325_v11 = vor.u32 %v6539_v3, %v4322_v4  ;;  %v4728_v46 = vld [vmem:[%s10262_s1 + $0x460] sm:$0xf] }
  0x75   :  { %973 = vmatpush.bf16.msrb.mxu1 %v4229_v47  ;;  %v4050_v12 = vld [vmem:[%s10262_s1 + $0x18] sm:$0xf0]  ;;  %v6503_v13 = vld [vmem:[%s10262_s1 + $0x10c] sm:$0xf]  ;;  %v4453_v17 = vor.u32 %v6571_v6, %v4450_v7  ;;  %v6612_v47 = vld [vmem:[%s10262_s1 + $0x46c] sm:$0xf0] }
  0x76   :  { %986 = vmatpush.bf16.msrb.mxu2 %v4357_v48  ;;  %v4178_v16 = vld [vmem:[%s10262_s1 + $0x118] sm:$0xf0]  ;;  %v6535_v18 = vld [vmem:[%s10262_s1 + $0x20c] sm:$0xf]  ;;  %v4053_v24 = vor.u32 %v6471_v9, %v4050_v12  ;;  %v4856_v48 = vld [vmem:[%s10262_s1 + $0x560] sm:$0xf]  ;;  %v4729_v50 = vor.u32 %v6612_v47, %v4728_v46 }
  0x77   :  { %999 = vmatpush.bf16.msrb.mxu3 %v4485_v52  ;;  %v4306_v19 = vld [vmem:[%s10262_s1 + $0x218] sm:$0xf0]  ;;  %v6567_v20 = vld [vmem:[%s10262_s1 + $0x30c] sm:$0xf]  ;;  %v4181_v27 = vor.u32 %v6503_v13, %v4178_v16  ;;  %v4857_v51 = vor.u32 %v6644_v49, %v4856_v48  ;;  %v4712_v52 = vld [vmem:[%s10262_s1 + $0x440] sm:$0xf] }
  0x78   :  { %961 = vmatpush.bf16.msrb.mxu0 %v4085_v58  ;;  %v4434_v21 = vld [vmem:[%s10262_s1 + $0x318] sm:$0xf0]  ;;  %v4309_v28 = vor.u32 %v6535_v18, %v4306_v19  ;;  %v6608_v53 = vld [vmem:[%s10262_s1 + $0x44c] sm:$0xf0]  ;;  %v4840_v54 = vld [vmem:[%s10262_s1 + $0x540] sm:$0xf] }
  0x79   :  { %974 = vmatpush.bf16.msrb.mxu1 %v4213_v59  ;;  %v4437_v29 = vor.u32 %v6567_v20, %v4434_v21  ;;  %v6640_v55 = vld [vmem:[%s10262_s1 + $0x54c] sm:$0xf0]  ;;  %v4713_v56 = vor.u32 %v6608_v53, %v4712_v52  ;;  %v4696_v58 = vld [vmem:[%s10262_s1 + $0x420] sm:$0xf]  ;;  %v6626_v6 = vld [vmem:[%s10262_s1 + $0x4e4] sm:$0xf] }
  0x7a   :  { %987 = vmatpush.bf16.msrb.mxu2 %v4341_v60  ;;  %v4841_v57 = vor.u32 %v6640_v55, %v4840_v54  ;;  %v6604_v59 = vld [vmem:[%s10262_s1 + $0x42c] sm:$0xf0]  ;;  %v4824_v60 = vld [vmem:[%s10262_s1 + $0x520] sm:$0xf]  ;;  %v4794_v7 = vld [vmem:[%s10262_s1 + $0x4f0] sm:$0xf0] }
  0x7b   :  { %1000 = vmatpush.bf16.msrb.mxu3 %v4469_v0  ;;  %v6636_v61 = vld [vmem:[%s10262_s1 + $0x52c] sm:$0xf0]  ;;  %v4697_v62 = vor.u32 %v6604_v59, %v4696_v58  ;;  %v4680_v0 = vld [vmem:[%s10262_s1 + $0x400] sm:$0xf]  ;;  %v4922_v9 = vld [vmem:[%s10262_s1 + $0x5f0] sm:$0xf0]  ;;  %v4797_v12 = vor.u32 %v6626_v6, %v4794_v7 }
  0x7c   :  { %962 = vmatpush.bf16.msrb.mxu0 %v4069_v8  ;;  %v4825_v63 = vor.u32 %v6636_v61, %v4824_v60  ;;  %v6600_v2 = vld [vmem:[%s10262_s1 + $0x40c] sm:$0xf0]  ;;  %v4808_v3 = vld [vmem:[%s10262_s1 + $0x500] sm:$0xf]  ;;  %v6658_v8 = vld [vmem:[%s10262_s1 + $0x5e4] sm:$0xf] }
  0x7d   :  { %975 = vmatpush.bf16.msrb.mxu1 %v4197_v10  ;;  %v6632_v4 = vld [vmem:[%s10262_s1 + $0x50c] sm:$0xf0]  ;;  %v4681_v10 = vor.u32 %v6600_v2, %v4680_v0  ;;  %v4925_v13 = vor.u32 %v6658_v8, %v4922_v9  ;;  %v6622_v16 = vld [vmem:[%s10262_s1 + $0x4c4] sm:$0xf]  ;;  %v4906_v19 = vld [vmem:[%s10262_s1 + $0x5d0] sm:$0xf0] }
  0x7e   :  { %988 = vmatpush.bf16.msrb.mxu2 %v4325_v11  ;;  %v4809_v11 = vor.u32 %v6632_v4, %v4808_v3  ;;  %v6654_v18 = vld [vmem:[%s10262_s1 + $0x5c4] sm:$0xf]  ;;  %v4762_v23 = vld [vmem:[%s10262_s1 + $0x4b0] sm:$0xf0]  ;;  %v5048_v58 = vld [vmem:[%s10262_s1 + $0x6e0] sm:$0xf] }
  0x7f   :  { %1001 = vmatpush.bf16.msrb.mxu3 %v4453_v17  ;;  %v4778_v17 = vld [vmem:[%s10262_s1 + $0x4d0] sm:$0xf0]  ;;  %v4909_v21 = vor.u32 %v6654_v18, %v4906_v19  ;;  %v6618_v22 = vld [vmem:[%s10262_s1 + $0x4a4] sm:$0xf]  ;;  %v6692_v59 = vld [vmem:[%s10262_s1 + $0x6ec] sm:$0xf0] }
  0x80   :  { %963 = vmatpush.bf16.msrb.mxu0 %v4053_v24  ;;  %v4781_v20 = vor.u32 %v6622_v16, %v4778_v17  ;;  %v6650_v24 = vld [vmem:[%s10262_s1 + $0x5a4] sm:$0xf]  ;;  %v4765_v26 = vor.u32 %v6618_v22, %v4762_v23  ;;  %v4730_v35 = vld [vmem:[%s10262_s1 + $0x470] sm:$0xf0]  ;;  %v5176_v60 = vld [vmem:[%s10262_s1 + $0x7e0] sm:$0xf] }
  0x81   :  { %976 = vmatpush.bf16.msrb.mxu1 %v4181_v27  ;;  %v4893_v27 = vor.u32 %v6650_v24, %v4890_v25  ;;  %v6610_v34 = vld [vmem:[%s10262_s1 + $0x464] sm:$0xf]  ;;  %v4698_v46 = vld [vmem:[%s10262_s1 + $0x430] sm:$0xf0]  ;;  %v6724_v0 = vld [vmem:[%s10262_s1 + $0x7ec] sm:$0xf0] }
  0x82   :  { %989 = vmatpush.bf16.msrb.mxu2 %v4309_v28  ;;  %v6614_v28 = vld [vmem:[%s10262_s1 + $0x484] sm:$0xf]  ;;  %v4733_v38 = vor.u32 %v6610_v34, %v4730_v35  ;;  %v4826_v49 = vld [vmem:[%s10262_s1 + $0x530] sm:$0xf0]  ;;  %v5177_v3 = vor.u32 %v6724_v0, %v5176_v60  ;;  %v5032_v4 = vld [vmem:[%s10262_s1 + $0x6c0] sm:$0xf] }
  0x83   :  { %1002 = vmatpush.bf16.msrb.mxu3 %v4437_v29  ;;  %964 = vmatmul.bf16.vlgmr.msrb.gmra.mxu0 %v7299_v14  ;;  %v6652_v14 = vld [vmem:[%s10262_s1 + $0x5ac] sm:$0xf0]  ;;  %v4746_v29 = vld [vmem:[%s10262_s1 + $0x490] sm:$0xf0]  ;;  %v6634_v47 = vld [vmem:[%s10262_s1 + $0x524] sm:$0xf] }
  0x84   :  { %1797 = vmatpush.bf16.msra.mxu0 %v4793_v30  ;;  %977 = vmatmul.bf16.vlgmr.msrb.gmra.mxu1 %v7301_v15  ;;  %v4889_v42 = vor.u32 %v6652_v14, %v4888_v40  ;;  %v4744_v15 = vld [vmem:[%s10262_s1 + $0x480] sm:$0xf]  ;;  %v6646_v30 = vld [vmem:[%s10262_s1 + $0x584] sm:$0xf]  ;;  %v4749_v32 = vor.u32 %v6614_v28, %v4746_v29  ;;  %v4829_v52 = vor.u32 %v6634_v47, %v4826_v49  ;;  %v4682_v54 = vld [vmem:[%s10262_s1 + $0x410] sm:$0xf0] }
  0x85   :  { %1810 = vmatpush.bf16.msra.mxu1 %v4921_v31  ;;  %990 = vmatmul.bf16.vlgmr.msrb.gmra.mxu2 %v7276_v1  ;;  %v6616_v1 = vld [vmem:[%s10262_s1 + $0x48c] sm:$0xf0]  ;;  %v4874_v31 = vld [vmem:[%s10262_s1 + $0x590] sm:$0xf0]  ;;  %v6598_v53 = vld [vmem:[%s10262_s1 + $0x404] sm:$0xf] }
  0x86   :  { %1003 = vmatmul.bf16.vlgmr.msrb.gmra.mxu3 %v7287_v5  ;;  %v6648_v5 = vld [vmem:[%s10262_s1 + $0x58c] sm:$0xf0]  ;;  %v4745_v44 = vor.u32 %v6616_v1, %v4744_v15  ;;  %v4877_v33 = vor.u32 %v6646_v30, %v4874_v31  ;;  %v6638_v15 = vld [vmem:[%s10262_s1 + $0x544] sm:$0xf]  ;;  %v4842_v1 = vld [vmem:[%s10262_s1 + $0x550] sm:$0xf0] }
  0x87   :  { %v4873_v45 = vor.u32 %v6648_v5, %v4872_v43  ;;  %v6688_v6 = vld [vmem:[%s10262_s1 + $0x6cc] sm:$0xf0]  ;;  %v5160_v7 = vld [vmem:[%s10262_s1 + $0x7c0] sm:$0xf]  ;;  %1836 = vmatpush.bf16.msra.mxu3 %v5177_v3  ;;  %v4784_v0 = vld [vmem:[%s10262_s1 + $0x4c8] sm:$0xf] }
  0x88   :  { %1798 = vmatpush.bf16.msra.mxu0 %v4777_v36  ;;  %v6642_v36 = vld [vmem:[%s10262_s1 + $0x564] sm:$0xf]  ;;  %v6720_v8 = vld [vmem:[%s10262_s1 + $0x7cc] sm:$0xf0]  ;;  %v5144_v16 = vld [vmem:[%s10262_s1 + $0x7a0] sm:$0xf] }
  0x89   :  { %1811 = vmatpush.bf16.msra.mxu1 %v4905_v37  ;;  %v4858_v37 = vld [vmem:[%s10262_s1 + $0x570] sm:$0xf0]  ;;  %v6716_v17 = vld [vmem:[%s10262_s1 + $0x7ac] sm:$0xf0]  ;;  %v5128_v22 = vld [vmem:[%s10262_s1 + $0x780] sm:$0xf] }
  0x8a   :  { %v4861_v40 = vor.u32 %v6642_v36, %v4858_v37  ;;  %v5145_v19 = vor.u32 %v6716_v17, %v5144_v16  ;;  %v6712_v23 = vld [vmem:[%s10262_s1 + $0x78c] sm:$0xf0]  ;;  %v5112_v28 = vld [vmem:[%s10262_s1 + $0x760] sm:$0xf] }
  0x8b   :  { %v5129_v25 = vor.u32 %v6712_v23, %v5128_v22  ;;  %v6708_v29 = vld [vmem:[%s10262_s1 + $0x76c] sm:$0xf0]  ;;  %v4968_v35 = vld [vmem:[%s10262_s1 + $0x640] sm:$0xf]  ;;  %v5034_v22 = vld [vmem:[%s10262_s1 + $0x6d0] sm:$0xf0] }
  0x8c   :  { %1799 = vmatpush.bf16.msra.mxu0 %v4761_v41  ;;  %v6606_v41 = vld [vmem:[%s10262_s1 + $0x444] sm:$0xf]  ;;  %v6672_v36 = vld [vmem:[%s10262_s1 + $0x64c] sm:$0xf0]  ;;  %v5064_v60 = vld [vmem:[%s10262_s1 + $0x700] sm:$0xf] }
  0x8d   :  { %1812 = vmatpush.bf16.msra.mxu1 %v4889_v42  ;;  %v4714_v42 = vld [vmem:[%s10262_s1 + $0x450] sm:$0xf0]  ;;  %v6718_v23 = vld [vmem:[%s10262_s1 + $0x7c4] sm:$0xf] }
  0x8e   :  { %v4717_v5 = vor.u32 %v6606_v41, %v4714_v42 }
  0x90   :  { %1800 = vmatpush.bf16.msra.mxu0 %v4745_v44  ;;  %v4845_v44 = vor.u32 %v6638_v15, %v4842_v1  ;;  %v4952_v15 = vld [vmem:[%s10262_s1 + $0x620] sm:$0xf]  ;;  %v6668_v1 = vld [vmem:[%s10262_s1 + $0x62c] sm:$0xf0] }
  0x91   :  { %1813 = vmatpush.bf16.msra.mxu1 %v4873_v45  ;;  %v6602_v45 = vld [vmem:[%s10262_s1 + $0x424] sm:$0xf] }
  0x94   :  { %1801 = vmatpush.bf16.msra.mxu0 %v4729_v50  ;;  %v4701_v50 = vor.u32 %v6602_v45, %v4698_v46  ;;  %v4953_v46 = vor.u32 %v6668_v1, %v4952_v15  ;;  %v4736_v1 = vld [vmem:[%s10262_s1 + $0x468] sm:$0xf] }
  0x95   :  { %1814 = vmatpush.bf16.msra.mxu1 %v4857_v51 }
  0x98   :  { %1802 = vmatpush.bf16.msra.mxu0 %v4713_v56  ;;  %v6630_v56 = vld [vmem:[%s10262_s1 + $0x504] sm:$0xf] }
  0x99   :  { %1815 = vmatpush.bf16.msra.mxu1 %v4841_v57  ;;  %v4810_v57 = vld [vmem:[%s10262_s1 + $0x510] sm:$0xf0] }
  0x9a   :  { %v4813_v2 = vor.u32 %v6630_v56, %v4810_v57  ;;  %v4928_v57 = vld [vmem:[%s10262_s1 + $0x5e8] sm:$0xf] }
  0x9c   :  { %1803 = vmatpush.bf16.msra.mxu0 %v4697_v62  ;;  %v4685_v62 = vor.u32 %v6598_v53, %v4682_v54  ;;  %v4936_v54 = vld [vmem:[%s10262_s1 + $0x600] sm:$0xf] }
  0x9d   :  { %1816 = vmatpush.bf16.msra.mxu1 %v4825_v63  ;;  %v5049_v63 = vor.u32 %v6692_v59, %v5048_v58  ;;  %v6661_v58 = vld [vmem:[%s10262_s1 + $0x5f4] sm:$0xf0] }
  0x9f   :  { %1823 = vmatpush.bf16.msra.mxu2 %v5049_v63 }
  0xa0   :  { %1804 = vmatpush.bf16.msra.mxu0 %v4681_v10  ;;  %v5033_v10 = vor.u32 %v6688_v6, %v5032_v4  ;;  %v4929_v4 = vor.u32 %v6661_v58, %v4928_v57  ;;  %v4720_v58 = vld [vmem:[%s10262_s1 + $0x448] sm:$0xf] }
  0xa1   :  { %1817 = vmatpush.bf16.msra.mxu1 %v4809_v11  ;;  %v5161_v11 = vor.u32 %v6720_v8, %v5160_v7  ;;  %v6690_v7 = vld [vmem:[%s10262_s1 + $0x6e4] sm:$0xf]  ;;  %v5050_v8 = vld [vmem:[%s10262_s1 + $0x6f0] sm:$0xf0] }
  0xa3   :  { %1824 = vmatpush.bf16.msra.mxu2 %v5033_v10  ;;  %1837 = vmatpush.bf16.msra.mxu3 %v5161_v11 }
  0xa4   :  { %1849 = vmatpush.bf16.msrb.mxu0 %v4797_v12  ;;  %v7969_v39 = vpop.f32.mrf.mxu0  ;;  %v5016_v12 = vld [vmem:[%s10262_s1 + $0x6a0] sm:$0xf] }
  0xa5   :  { %1862 = vmatpush.bf16.msrb.mxu1 %v4925_v13  ;;  %v7971_v14 = vpop.f32.mrf.mxu1  ;;  %v6684_v13 = vld [vmem:[%s10262_s1 + $0x6ac] sm:$0xf0] }
  0xa6   :  { %v5017_v18 = vor.u32 %v6684_v13, %v5016_v12  ;;  %v823_v31 = vadd.f32 %v7971_v14, %v7969_v39  ;;  %v6704_v39 = vld [vmem:[%s10262_s1 + $0x74c] sm:$0xf0]  ;;  %v4912_v12 = vld [vmem:[%s10262_s1 + $0x5c8] sm:$0xf]  ;;  %v6657_v13 = vld [vmem:[%s10262_s1 + $0x5d4] sm:$0xf0] }
  0xa7   :  { %1838 = vmatpush.bf16.msra.mxu3 %v5145_v19  ;;  %v5178_v19 = vld [vmem:[%s10262_s1 + $0x7f0] sm:$0xf0] }
  0xa8   :  { %1850 = vmatpush.bf16.msrb.mxu0 %v4781_v20  ;;  %v7985_v43 = vpop.f32.mrf.mxu2  ;;  %v5000_v20 = vld [vmem:[%s10262_s1 + $0x680] sm:$0xf]  ;;  %1825 = vmatpush.bf16.msra.mxu2 %v5017_v18  ;;  %v5053_v18 = vor.u32 %v6690_v7, %v5050_v8 }
  0xa9   :  { %1863 = vmatpush.bf16.msrb.mxu1 %v4909_v21  ;;  %v7996_v48 = vpop.f32.mrf.mxu3  ;;  %v6680_v21 = vld [vmem:[%s10262_s1 + $0x68c] sm:$0xf0]  ;;  %v836_v14 = vadd.f32 %v7985_v43, %v823_v31 }
  0xaa   :  { %v5001_v24 = vor.u32 %v6680_v21, %v5000_v20  ;;  %v6700_v43 = vld [vmem:[%s10262_s1 + $0x72c] sm:$0xf0]  ;;  %v6686_v21 = vld [vmem:[%s10262_s1 + $0x6c4] sm:$0xf] }
  0xab   :  { %1839 = vmatpush.bf16.msra.mxu3 %v5129_v25  ;;  %v849_v47 = vadd.f32 %v7996_v48, %v836_v14  ;;  %v6629_v48 = vld [vmem:[%s10262_s1 + $0x4f4] sm:$0xf0]  ;;  %v4913_v25 = vor.u32 %v6657_v13, %v4912_v12  ;;  %v5037_v31 = vor.u32 %v6686_v21, %v5034_v22  ;;  %v4880_v14 = vld [vmem:[%s10262_s1 + $0x588] sm:$0xf]  ;;  %v4970_v12 = vld [vmem:[%s10262_s1 + $0x650] sm:$0xf0] }
  0xac   :  { %1851 = vmatpush.bf16.msrb.mxu0 %v4765_v26  ;;  %v811_v51 = vpop.f32.mrf.mxu0  ;;  %v4984_v26 = vld [vmem:[%s10262_s1 + $0x660] sm:$0xf]  ;;  %1826 = vmatpush.bf16.msra.mxu2 %v5001_v24  ;;  %v6702_v13 = vld [vmem:[%s10262_s1 + $0x744] sm:$0xf] }
  0xad   :  { %1864 = vmatpush.bf16.msrb.mxu1 %v4893_v27  ;;  %v824_v55 = vpop.f32.mrf.mxu1  ;;  %v6676_v27 = vld [vmem:[%s10262_s1 + $0x66c] sm:$0xf0] }
  0xae   :  { %v4985_v30 = vor.u32 %v6676_v27, %v4984_v26  ;;  %v6664_v55 = vld [vmem:[%s10262_s1 + $0x60c] sm:$0xf0]  ;;  %v4768_v26 = vld [vmem:[%s10262_s1 + $0x4a8] sm:$0xf]  ;;  %v5162_v27 = vld [vmem:[%s10262_s1 + $0x7d0] sm:$0xf0] }
  0xaf   :  { %v4937_v59 = vor.u32 %v6664_v55, %v4936_v54  ;;  %v6674_v54 = vld [vmem:[%s10262_s1 + $0x664] sm:$0xf]  ;;  %v4986_v55 = vld [vmem:[%s10262_s1 + $0x670] sm:$0xf0] }
  0xb0   :  { %1852 = vmatpush.bf16.msrb.mxu0 %v4749_v32  ;;  %v837_v61 = vpop.f32.mrf.mxu2  ;;  %1827 = vmatpush.bf16.msra.mxu2 %v4985_v30  ;;  %v6653_v30 = vld [vmem:[%s10262_s1 + $0x5b4] sm:$0xf0] }
  0xb1   :  { %1865 = vmatpush.bf16.msrb.mxu1 %v4877_v33  ;;  %v850_v9 = vpop.f32.mrf.mxu3  ;;  %v5113_v33 = vor.u32 %v6708_v29, %v5112_v28  ;;  %v6696_v61 = vld [vmem:[%s10262_s1 + $0x70c] sm:$0xf0]  ;;  %v6621_v28 = vld [vmem:[%s10262_s1 + $0x4b4] sm:$0xf0]  ;;  %v4896_v29 = vld [vmem:[%s10262_s1 + $0x5a8] sm:$0xf] }
  0xb2   :  { %v6722_v9 = vld [vmem:[%s10262_s1 + $0x7e4] sm:$0xf]  ;;  %v5065_v17 = vor.u32 %v6696_v61, %v5064_v60  ;;  %v6609_v60 = vld [vmem:[%s10262_s1 + $0x454] sm:$0xf0]  ;;  %v4848_v61 = vld [vmem:[%s10262_s1 + $0x548] sm:$0xf] }
  0xb3   :  { %1840 = vmatpush.bf16.msra.mxu3 %v5113_v33  ;;  %v5181_v20 = vor.u32 %v6722_v9, %v5178_v19  ;;  %v6682_v33 = vld [vmem:[%s10262_s1 + $0x6a4] sm:$0xf]  ;;  %v4721_v7 = vor.u32 %v6609_v60, %v4720_v58  ;;  %v5098_v19 = vld [vmem:[%s10262_s1 + $0x750] sm:$0xf0]  ;;  %v4898_v58 = vld [vmem:[%s10262_s1 + $0x5b8] sm:$0xf0] }
  0xb4   :  { %1853 = vmatpush.bf16.msrb.mxu0 %v4733_v38  ;;  %v5096_v38 = vld [vmem:[%s10262_s1 + $0x740] sm:$0xf]  ;;  %v6670_v9 = vld [vmem:[%s10262_s1 + $0x644] sm:$0xf]  ;;  %v5101_v21 = vor.u32 %v6702_v13, %v5098_v19 }
  0xb5   :  { %1866 = vmatpush.bf16.msrb.mxu1 %v4861_v40  ;;  %v4969_v40 = vor.u32 %v6672_v36, %v4968_v35  ;;  %v5097_v41 = vor.u32 %v6704_v39, %v5096_v38  ;;  %v6714_v35 = vld [vmem:[%s10262_s1 + $0x7a4] sm:$0xf]  ;;  %v5146_v36 = vld [vmem:[%s10262_s1 + $0x7b0] sm:$0xf0]  ;;  %v4897_v38 = vor.u32 %v6653_v30, %v4896_v29  ;;  %v4752_v39 = vld [vmem:[%s10262_s1 + $0x488] sm:$0xf] }
  0xb6   :  { %v5149_v15 = vor.u32 %v6714_v35, %v5146_v36  ;;  %v4954_v29 = vld [vmem:[%s10262_s1 + $0x630] sm:$0xf0]  ;;  %v6698_v30 = vld [vmem:[%s10262_s1 + $0x724] sm:$0xf] }
  0xb7   :  { %1828 = vmatpush.bf16.msra.mxu2 %v4969_v40  ;;  %1841 = vmatpush.bf16.msra.mxu3 %v5097_v41  ;;  %v6617_v40 = vld [vmem:[%s10262_s1 + $0x494] sm:$0xf0]  ;;  %v5082_v35 = vld [vmem:[%s10262_s1 + $0x730] sm:$0xf0] }
  0xb8   :  { %1854 = vmatpush.bf16.msrb.mxu0 %v4717_v5  ;;  %v5080_v5 = vld [vmem:[%s10262_s1 + $0x720] sm:$0xf]  ;;  %v6649_v41 = vld [vmem:[%s10262_s1 + $0x594] sm:$0xf0] }
  0xb9   :  { %1867 = vmatpush.bf16.msrb.mxu1 %v4845_v44  ;;  %v5081_v51 = vor.u32 %v6700_v43, %v5080_v5  ;;  %v6613_v5 = vld [vmem:[%s10262_s1 + $0x474] sm:$0xf0]  ;;  %v6678_v43 = vld [vmem:[%s10262_s1 + $0x684] sm:$0xf] }
  0xbb   :  { %1829 = vmatpush.bf16.msra.mxu2 %v4953_v46  ;;  %1842 = vmatpush.bf16.msra.mxu3 %v5081_v51  ;;  %v5002_v46 = vld [vmem:[%s10262_s1 + $0x690] sm:$0xf0] }
  0xbc   :  { %1855 = vmatpush.bf16.msrb.mxu0 %v4701_v50  ;;  %v5005_v51 = vor.u32 %v6678_v43, %v5002_v46  ;;  %v5066_v43 = vld [vmem:[%s10262_s1 + $0x710] sm:$0xf0] }
  0xbd   :  { %1868 = vmatpush.bf16.msrb.mxu1 %v4829_v52  ;;  %v4800_v52 = vld [vmem:[%s10262_s1 + $0x4e8] sm:$0xf] }
  0xbe   :  { %v4801_v3 = vor.u32 %v6629_v48, %v4800_v52  ;;  %v5130_v52 = vld [vmem:[%s10262_s1 + $0x790] sm:$0xf0]  ;;  %v4737_v48 = vor.u32 %v6613_v5, %v4736_v1  ;;  %v6694_v1 = vld [vmem:[%s10262_s1 + $0x704] sm:$0xf] }
  0xbf   :  { %1830 = vmatpush.bf16.msra.mxu2 %v4937_v59  ;;  %1843 = vmatpush.bf16.msra.mxu3 %v5065_v17  ;;  %v5114_v59 = vld [vmem:[%s10262_s1 + $0x770] sm:$0xf0]  ;;  %v6637_v17 = vld [vmem:[%s10262_s1 + $0x534] sm:$0xf0] }
  0xc0   :  { %1856 = vmatpush.bf16.msrb.mxu0 %v4685_v62  ;;  %v861_v32 = vpop.f32.mrf.mxu0 }
  0xc1   :  { %1869 = vmatpush.bf16.msrb.mxu1 %v4813_v2  ;;  %v874_v34 = vpop.f32.mrf.mxu1  ;;  %v6625_v2 = vld [vmem:[%s10262_s1 + $0x4d4] sm:$0xf0] }
  0xc2   :  { %v875_v37 = vadd.f32 %v874_v34, %v861_v32  ;;  %v4785_v24 = vor.u32 %v6625_v2, %v4784_v0  ;;  %v5165_v32 = vor.u32 %v6718_v23, %v5162_v27  ;;  %v5018_v34 = vld [vmem:[%s10262_s1 + $0x6b0] sm:$0xf0]  ;;  %v4989_v0 = vor.u32 %v6674_v54, %v4986_v55  ;;  %v4688_v23 = vld [vmem:[%s10262_s1 + $0x408] sm:$0xf] }
  0xc3   :  { %1875 = vmatpush.bf16.msrb.mxu2 %v5053_v18  ;;  %1888 = vmatpush.bf16.msrb.mxu3 %v5181_v20  ;;  %v4973_v18 = vor.u32 %v6670_v9, %v4970_v12  ;;  %v6643_v9 = vld [vmem:[%s10262_s1 + $0x56c] sm:$0xf]  ;;  %v4866_v12 = vld [vmem:[%s10262_s1 + $0x578] sm:$0xf0] }
  0xc7   :  { %1876 = vmatpush.bf16.msrb.mxu2 %v5037_v31  ;;  %1889 = vmatpush.bf16.msrb.mxu3 %v5165_v32  ;;  %v6633_v31 = vld [vmem:[%s10262_s1 + $0x514] sm:$0xf0] }
  0xc8   :  { %v887_v42 = vpop.f32.mrf.mxu2  ;;  %v863_v50 = vpop.f32.mrf.mxu0 }
  0xc9   :  { %v888_v44 = vadd.f32 %v887_v42, %v875_v37  ;;  %v900_v45 = vpop.f32.mrf.mxu3  ;;  %v876_v53 = vpop.f32.mrf.mxu1  ;;  %v4769_v37 = vor.u32 %v6621_v28, %v4768_v26  ;;  %v5021_v42 = vor.u32 %v6682_v33, %v5018_v34  ;;  %v6645_v50 = vld [vmem:[%s10262_s1 + $0x574] sm:$0xf0]  ;;  %v6666_v28 = vld [vmem:[%s10262_s1 + $0x624] sm:$0xf]  ;;  %v6627_v33 = vld [vmem:[%s10262_s1 + $0x4ec] sm:$0xf] }
  0xca   :  { %v4957_v34 = vor.u32 %v6666_v28, %v4954_v29  ;;  %v6603_v29 = vld [vmem:[%s10262_s1 + $0x42c] sm:$0xf] }
  0xcb   :  { %v901_v49 = vadd.f32 %v900_v45, %v888_v44  ;;  %v4753_v44 = vor.u32 %v6617_v40, %v4752_v39  ;;  %v4881_v45 = vor.u32 %v6649_v41, %v4880_v14  ;;  %1877 = vmatpush.bf16.msrb.mxu2 %v5021_v42  ;;  %1890 = vmatpush.bf16.msrb.mxu3 %v5149_v15  ;;  %v4930_v39 = vld [vmem:[%s10262_s1 + $0x5f8] sm:$0xf0]  ;;  %v6662_v42 = vld [vmem:[%s10262_s1 + $0x604] sm:$0xf]  ;;  %v4938_v15 = vld [vmem:[%s10262_s1 + $0x610] sm:$0xf0] }
  0xcc   :  { %v5085_v40 = vor.u32 %v6698_v30, %v5082_v35  ;;  %v4706_v30 = vld [vmem:[%s10262_s1 + $0x438] sm:$0xf0] }
  0xcd   :  { %v1008_v56 = vpack.c.bf16 %v901_v49, %v849_v47  ;;  %v6710_v47 = vld [vmem:[%s10262_s1 + $0x784] sm:$0xf]  ;;  %v4864_v49 = vld [vmem:[%s10262_s1 + $0x568] sm:$0xf] }
  0xce   :  { %v5133_v53 = vor.u32 %v6710_v47, %v5130_v52  ;;  %v4865_v57 = vor.u32 %v6645_v50, %v4864_v49  ;;  %v4786_v47 = vld [vmem:[%s10262_s1 + $0x4d8] sm:$0xf0]  ;;  %v6655_v49 = vld [vmem:[%s10262_s1 + $0x5cc] sm:$0xf]  ;;  %v5069_v52 = vor.u32 %v6694_v1, %v5066_v43  ;;  %v5184_v43 = vld [vmem:[%s10262_s1 + $0x7e8] sm:$0xf] }
  0xcf   :  { %v1145_v62 = vunpack.c.l.b16 %v1008_v56  ;;  %v1146_v63 = vunpack.c.h.b16 %v1008_v56  ;;  %v6706_v56 = vld [vmem:[%s10262_s1 + $0x764] sm:$0xf]  ;;  %1878 = vmatpush.bf16.msrb.mxu2 %v5005_v51  ;;  %v4914_v50 = vld [vmem:[%s10262_s1 + $0x5d8] sm:$0xf0]  ;;  %v4941_v51 = vor.u32 %v6662_v42, %v4938_v15  ;;  %v5056_v15 = vld [vmem:[%s10262_s1 + $0x6e8] sm:$0xf] }
  0xd0   :  { %v889_v6 = vpop.f32.mrf.mxu2  ;;  %1891 = vmatpush.bf16.msrb.mxu3 %v5133_v53  ;;  %v4917_v55 = vor.u32 %v6655_v49, %v4914_v50 }
  0xd1   :  { %v8140_v10 = vpack.c.b16 %v1145_v62, %v1145_v62  ;;  %v8142_v11 = vpack.c.b16 %v1146_v63, %v1146_v63  ;;  %v902_v16 = vpop.f32.mrf.mxu3  ;;  %v6641_v62 = vld [vmem:[%s10262_s1 + $0x554] sm:$0xf0] }
  0xd2   :  { %v6605_v6 = vld [vmem:[%s10262_s1 + $0x434] sm:$0xf0]  ;;  %v4849_v8 = vor.u32 %v6641_v62, %v4848_v61  ;;  %v4832_v16 = vld [vmem:[%s10262_s1 + $0x528] sm:$0xf]  ;;  %v6615_v61 = vld [vmem:[%s10262_s1 + $0x48c] sm:$0xf] }
  0xd3   :  { %1805 = vmatmul.bf16.vlgmr.msra.gmra.mxu0 %v8140_v10  ;;  %1818 = vmatmul.bf16.vlgmr.msra.gmra.mxu1 %v8142_v11  ;;  %v4833_v27 = vor.u32 %v6637_v17, %v4832_v16  ;;  %v4754_v62 = vld [vmem:[%s10262_s1 + $0x498] sm:$0xf0]  ;;  %v4869_v17 = vor.u32 %v6643_v9, %v4866_v12  ;;  %v4992_v12 = vld [vmem:[%s10262_s1 + $0x668] sm:$0xf] }
  0xd4   :  { %1901 = vmatpush.bf16.msra.mxu0 %v4801_v3  ;;  %1914 = vmatpush.bf16.msra.mxu1 %v4929_v4  ;;  %v5117_v3 = vor.u32 %v6706_v56, %v5114_v59  ;;  %v4704_v4 = vld [vmem:[%s10262_s1 + $0x428] sm:$0xf]  ;;  %v6619_v56 = vld [vmem:[%s10262_s1 + $0x4ac] sm:$0xf] }
  0xd5   :  { %1879 = vmatpush.bf16.msrb.mxu2 %v4989_v0  ;;  %v4705_v26 = vor.u32 %v6605_v6, %v4704_v4  ;;  %v6647_v0 = vld [vmem:[%s10262_s1 + $0x58c] sm:$0xf]  ;;  %v4757_v4 = vor.u32 %v6615_v61, %v4754_v62  ;;  %v6685_v61 = vld [vmem:[%s10262_s1 + $0x6b4] sm:$0xf0]  ;;  %v5152_v62 = vld [vmem:[%s10262_s1 + $0x7a8] sm:$0xf] }
  0xd6   :  { %1892 = vmatpush.bf16.msrb.mxu3 %v5117_v3  ;;  %v4882_v3 = vld [vmem:[%s10262_s1 + $0x598] sm:$0xf0] }
  0xd7   :  { %v4885_v6 = vor.u32 %v6647_v0, %v4882_v3  ;;  %v6717_v0 = vld [vmem:[%s10262_s1 + $0x7b4] sm:$0xf0] }
  0xd8   :  { %1902 = vmatpush.bf16.msra.mxu0 %v4785_v24  ;;  %1915 = vmatpush.bf16.msra.mxu1 %v4913_v25  ;;  %v6601_v24 = vld [vmem:[%s10262_s1 + $0x414] sm:$0xf0]  ;;  %v4816_v25 = vld [vmem:[%s10262_s1 + $0x508] sm:$0xf] }
  0xd9   :  { %1880 = vmatpush.bf16.msrb.mxu2 %v4973_v18  ;;  %v4689_v14 = vor.u32 %v6601_v24, %v4688_v23  ;;  %v4817_v41 = vor.u32 %v6633_v31, %v4816_v25  ;;  %v6607_v18 = vld [vmem:[%s10262_s1 + $0x44c] sm:$0xf]  ;;  %v4850_v24 = vld [vmem:[%s10262_s1 + $0x558] sm:$0xf0] }
  0xda   :  { %1893 = vmatpush.bf16.msrb.mxu3 %v5101_v21  ;;  %v4722_v21 = vld [vmem:[%s10262_s1 + $0x458] sm:$0xf0]  ;;  %v6639_v23 = vld [vmem:[%s10262_s1 + $0x54c] sm:$0xf] }
  0xdb   :  { %v4853_v28 = vor.u32 %v6639_v23, %v4850_v24  ;;  %v6635_v31 = vld [vmem:[%s10262_s1 + $0x52c] sm:$0xf]  ;;  %v6673_v23 = vld [vmem:[%s10262_s1 + $0x654] sm:$0xf0]  ;;  %v5104_v24 = vld [vmem:[%s10262_s1 + $0x748] sm:$0xf] }
  0xdc   :  { %1903 = vmatpush.bf16.msra.mxu0 %v4769_v37  ;;  %1916 = vmatpush.bf16.msra.mxu1 %v4897_v38  ;;  %v4802_v37 = vld [vmem:[%s10262_s1 + $0x4f8] sm:$0xf0]  ;;  %v6659_v38 = vld [vmem:[%s10262_s1 + $0x5ec] sm:$0xf] }
  0xdd   :  { %v4805_v5 = vor.u32 %v6627_v33, %v4802_v37  ;;  %1881 = vmatpush.bf16.msrb.mxu2 %v4957_v34 }
  0xde   :  { %1894 = vmatpush.bf16.msrb.mxu3 %v5085_v40  ;;  %v4690_v40 = vld [vmem:[%s10262_s1 + $0x418] sm:$0xf0] }
  0xe0   :  { %1904 = vmatpush.bf16.msra.mxu0 %v4753_v44  ;;  %1917 = vmatpush.bf16.msra.mxu1 %v4881_v45  ;;  %v8251_v63 = vpop.f32.mrf.mxu0  ;;  %v4933_v44 = vor.u32 %v6659_v38, %v4930_v39  ;;  %v6623_v45 = vld [vmem:[%s10262_s1 + $0x4cc] sm:$0xf] }
  0xe1   :  { %v8253_v2 = vpop.f32.mrf.mxu1  ;;  %v4789_v54 = vor.u32 %v6623_v45, %v4786_v47  ;;  %1882 = vmatpush.bf16.msrb.mxu2 %v4941_v51  ;;  %v6599_v38 = vld [vmem:[%s10262_s1 + $0x40c] sm:$0xf]  ;;  %v6693_v45 = vld [vmem:[%s10262_s1 + $0x6f4] sm:$0xf0] }
  0xe2   :  { %1895 = vmatpush.bf16.msrb.mxu3 %v5069_v52  ;;  %v927_v25 = vadd.f32 %v8253_v2, %v8251_v63  ;;  %v4834_v63 = vld [vmem:[%s10262_s1 + $0x538] sm:$0xf0]  ;;  %v5057_v50 = vor.u32 %v6693_v45, %v5056_v15  ;;  %v5040_v52 = vld [vmem:[%s10262_s1 + $0x6c8] sm:$0xf] }
  0xe3   :  { %1857 = vmatmul.bf16.vlgmr.msrb.gmra.mxu0 %v8140_v10  ;;  %1870 = vmatmul.bf16.vlgmr.msrb.gmra.mxu1 %v8142_v11  ;;  %v4837_v37 = vor.u32 %v6635_v31, %v4834_v63  ;;  %v6701_v31 = vld [vmem:[%s10262_s1 + $0x734] sm:$0xf0]  ;;  %v5042_v15 = vld [vmem:[%s10262_s1 + $0x6d8] sm:$0xf0] }
  0xe4   :  { %1905 = vmatpush.bf16.msra.mxu0 %v4737_v48  ;;  %1918 = vmatpush.bf16.msra.mxu1 %v4865_v57  ;;  %v4770_v48 = vld [vmem:[%s10262_s1 + $0x4b8] sm:$0xf0]  ;;  %v6651_v57 = vld [vmem:[%s10262_s1 + $0x5ac] sm:$0xf] }
  0xe5   :  { %v4773_v59 = vor.u32 %v6619_v56, %v4770_v48  ;;  %v4901_v60 = vor.u32 %v6651_v57, %v4898_v58  ;;  %v6689_v56 = vld [vmem:[%s10262_s1 + $0x6d4] sm:$0xf0]  ;;  %v5168_v48 = vld [vmem:[%s10262_s1 + $0x7c8] sm:$0xf] }
  0xe6   :  { %v6721_v57 = vld [vmem:[%s10262_s1 + $0x7d4] sm:$0xf0]  ;;  %v5041_v58 = vor.u32 %v6689_v56, %v5040_v52  ;;  %v5010_v52 = vld [vmem:[%s10262_s1 + $0x698] sm:$0xf0] }
  0xe7   :  { %v5138_v56 = vld [vmem:[%s10262_s1 + $0x798] sm:$0xf0] }
  0xe8   :  { %v8281_v20 = vpop.f32.mrf.mxu2  ;;  %1906 = vmatpush.bf16.msra.mxu0 %v4721_v7  ;;  %1919 = vmatpush.bf16.msra.mxu1 %v4849_v8  ;;  %v915_v32 = vpop.f32.mrf.mxu0  ;;  %v6611_v7 = vld [vmem:[%s10262_s1 + $0x46c] sm:$0xf]  ;;  %v4738_v8 = vld [vmem:[%s10262_s1 + $0x478] sm:$0xf0] }
  0xe9   :  { %v8283_v22 = vpop.f32.mrf.mxu3  ;;  %v928_v36 = vpop.f32.mrf.mxu1  ;;  %v4741_v16 = vor.u32 %v6611_v7, %v4738_v8  ;;  %v940_v2 = vadd.f32 %v8281_v20, %v927_v25  ;;  %v6631_v20 = vld [vmem:[%s10262_s1 + $0x50c] sm:$0xf]  ;;  %v6713_v7 = vld [vmem:[%s10262_s1 + $0x794] sm:$0xf0] }
  0xea   :  { %v4709_v36 = vor.u32 %v6603_v29, %v4706_v30  ;;  %v6705_v25 = vld [vmem:[%s10262_s1 + $0x754] sm:$0xf0]  ;;  %v5088_v30 = vld [vmem:[%s10262_s1 + $0x728] sm:$0xf] }
  0xeb   :  { %v6669_v29 = vld [vmem:[%s10262_s1 + $0x634] sm:$0xf0] }
  0xec   :  { %1907 = vmatpush.bf16.msra.mxu0 %v4705_v26  ;;  %1920 = vmatpush.bf16.msra.mxu1 %v4833_v27  ;;  %v4725_v27 = vor.u32 %v6607_v18, %v4722_v21  ;;  %v4976_v21 = vld [vmem:[%s10262_s1 + $0x648] sm:$0xf] }
  0xf0   :  { %v941_v46 = vpop.f32.mrf.mxu2  ;;  %1908 = vmatpush.bf16.msra.mxu0 %v4689_v14  ;;  %1921 = vmatpush.bf16.msra.mxu1 %v4817_v41  ;;  %v4818_v14 = vld [vmem:[%s10262_s1 + $0x518] sm:$0xf0]  ;;  %v953_v41 = vadd.f32 %v8283_v22, %v940_v2  ;;  %v6725_v22 = vld [vmem:[%s10262_s1 + $0x7f4] sm:$0xf0]  ;;  %v5089_v2 = vor.u32 %v6701_v31, %v5088_v30  ;;  %v6756_v30 = vld [vmem:[%s10262_s1 + $0x8ec] sm:$0xf0] }
  0xf1   :  { %v954_v53 = vpop.f32.mrf.mxu3  ;;  %v5185_v51 = vor.u32 %v6725_v22, %v5184_v43  ;;  %v6683_v43 = vld [vmem:[%s10262_s1 + $0x6ac] sm:$0xf]  ;;  %v5026_v22 = vld [vmem:[%s10262_s1 + $0x6b8] sm:$0xf0]  ;;  %v5560_v31 = vld [vmem:[%s10262_s1 + $0x9e0] sm:$0xf] }
  0xf3   :  { %1909 = vmatmul.bf16.vlgmr.msra.gmra.mxu0 %v8140_v10  ;;  %1922 = vmatmul.bf16.vlgmr.msra.gmra.mxu1 %v8142_v11 }
  0xf4   :  { %1953 = vmatpush.bf16.msrb.mxu0 %v4805_v5  ;;  %1966 = vmatpush.bf16.msrb.mxu1 %v4933_v44  ;;  %v4693_v5 = vor.u32 %v6599_v38, %v4690_v40  ;;  %v4821_v44 = vor.u32 %v6631_v20, %v4818_v14  ;;  %v6723_v38 = vld [vmem:[%s10262_s1 + $0x7ec] sm:$0xf] }
  0xf8   :  { %1954 = vmatpush.bf16.msrb.mxu0 %v4789_v54  ;;  %1967 = vmatpush.bf16.msrb.mxu1 %v4917_v55 }
  0xfc   :  { %1955 = vmatpush.bf16.msrb.mxu0 %v4773_v59  ;;  %1968 = vmatpush.bf16.msrb.mxu1 %v4901_v60  ;;  %v5169_v59 = vor.u32 %v6721_v57, %v5168_v48  ;;  %v5024_v60 = vld [vmem:[%s10262_s1 + $0x6a8] sm:$0xf] }
  0xfd   :  { %v5025_v3 = vor.u32 %v6685_v61, %v5024_v60  ;;  %v6707_v60 = vld [vmem:[%s10262_s1 + $0x76c] sm:$0xf]  ;;  %v5122_v61 = vld [vmem:[%s10262_s1 + $0x778] sm:$0xf0] }
 0x100   :  { %v965_v13 = vpop.f32.mrf.mxu0  ;;  %1956 = vmatpush.bf16.msrb.mxu0 %v4757_v4  ;;  %1969 = vmatpush.bf16.msrb.mxu1 %v4885_v6  ;;  %v5153_v4 = vor.u32 %v6717_v0, %v5152_v62  ;;  %v5136_v6 = vld [vmem:[%s10262_s1 + $0x788] sm:$0xf]  ;;  %v5125_v0 = vor.u32 %v6707_v60, %v5122_v61 }
 0x101   :  { %v978_v19 = vpop.f32.mrf.mxu1  ;;  %v5137_v9 = vor.u32 %v6713_v7, %v5136_v6 }
 0x102   :  { %v979_v26 = vadd.f32 %v978_v19, %v965_v13  ;;  %v6677_v13 = vld [vmem:[%s10262_s1 + $0x674] sm:$0xf0] }
 0x103   :  { %v4993_v18 = vor.u32 %v6677_v13, %v4992_v12  ;;  %v6699_v12 = vld [vmem:[%s10262_s1 + $0x72c] sm:$0xf]  ;;  %v5090_v13 = vld [vmem:[%s10262_s1 + $0x738] sm:$0xf0] }
 0x104   :  { %1957 = vmatpush.bf16.msrb.mxu0 %v4741_v16  ;;  %1970 = vmatpush.bf16.msrb.mxu1 %v4869_v17  ;;  %v5120_v16 = vld [vmem:[%s10262_s1 + $0x768] sm:$0xf]  ;;  %v6709_v17 = vld [vmem:[%s10262_s1 + $0x774] sm:$0xf0] }
 0x105   :  { %v5121_v19 = vor.u32 %v6709_v17, %v5120_v16  ;;  %v5093_v17 = vor.u32 %v6699_v12, %v5090_v13  ;;  %v5448_v12 = vld [vmem:[%s10262_s1 + $0x900] sm:$0xf] }
 0x108   :  { %v991_v32 = vpop.f32.mrf.mxu2  ;;  %v967_v35 = vpop.f32.mrf.mxu0  ;;  %1958 = vmatpush.bf16.msrb.mxu0 %v4725_v27  ;;  %1971 = vmatpush.bf16.msrb.mxu1 %v4853_v28  ;;  %v5105_v27 = vor.u32 %v6705_v25, %v5104_v24  ;;  %v4960_v28 = vld [vmem:[%s10262_s1 + $0x628] sm:$0xf] }
 0x109   :  { %v992_v33 = vadd.f32 %v991_v32, %v979_v26  ;;  %v1004_v34 = vpop.f32.mrf.mxu3  ;;  %v980_v39 = vpop.f32.mrf.mxu1  ;;  %v4977_v26 = vor.u32 %v6673_v23, %v4976_v21  ;;  %v4961_v63 = vor.u32 %v6669_v29, %v4960_v28  ;;  %v4944_v32 = vld [vmem:[%s10262_s1 + $0x608] sm:$0xf]  ;;  %v6697_v35 = vld [vmem:[%s10262_s1 + $0x714] sm:$0xf0]  ;;  %v6695_v21 = vld [vmem:[%s10262_s1 + $0x70c] sm:$0xf] }
 0x10a   :  { %v5186_v39 = vld [vmem:[%s10262_s1 + $0x7f8] sm:$0xf0]  ;;  %v5432_v29 = vld [vmem:[%s10262_s1 + $0x8e0] sm:$0xf] }
 0x10b   :  { %v1005_v42 = vadd.f32 %v1004_v34, %v992_v33  ;;  %v6665_v33 = vld [vmem:[%s10262_s1 + $0x614] sm:$0xf0]  ;;  %v5072_v34 = vld [vmem:[%s10262_s1 + $0x708] sm:$0xf]  ;;  %v5074_v23 = vld [vmem:[%s10262_s1 + $0x718] sm:$0xf0] }
 0x10c   :  { %1959 = vmatpush.bf16.msrb.mxu0 %v4709_v36  ;;  %1972 = vmatpush.bf16.msrb.mxu1 %v4837_v37  ;;  %v6691_v36 = vld [vmem:[%s10262_s1 + $0x6ec] sm:$0xf]  ;;  %v5058_v37 = vld [vmem:[%s10262_s1 + $0x6f8] sm:$0xf0]  ;;  %v4945_v40 = vor.u32 %v6665_v33, %v4944_v32  ;;  %v5073_v20 = vor.u32 %v6697_v35, %v5072_v34  ;;  %v5077_v25 = vor.u32 %v6695_v21, %v5074_v23  ;;  %v5544_v33 = vld [vmem:[%s10262_s1 + $0x9c0] sm:$0xf] }
 0x10d   :  { %v1009_v1 = vpack.c.bf16 %v1005_v42, %v953_v41  ;;  %v5061_v14 = vor.u32 %v6691_v36, %v5058_v37  ;;  %v5189_v41 = vor.u32 %v6723_v38, %v5186_v39  ;;  %v6687_v42 = vld [vmem:[%s10262_s1 + $0x6cc] sm:$0xf]  ;;  %v6784_v34 = vld [vmem:[%s10262_s1 + $0x9cc] sm:$0xf0]  ;;  %v5400_v39 = vld [vmem:[%s10262_s1 + $0x8a0] sm:$0xf] }
 0x10e   :  { %v5545_v36 = vor.u32 %v6784_v34, %v5544_v33  ;;  %v6786_v23 = vld [vmem:[%s10262_s1 + $0x9e4] sm:$0xf]  ;;  %v5402_v33 = vld [vmem:[%s10262_s1 + $0x8b0] sm:$0xf0] }
 0x10f   :  { %v1147_v46 = vunpack.c.l.b16 %v1009_v1  ;;  %v1148_v47 = vunpack.c.h.b16 %v1009_v1  ;;  %v6719_v1 = vld [vmem:[%s10262_s1 + $0x7cc] sm:$0xf]  ;;  %v6778_v34 = vld [vmem:[%s10262_s1 + $0x9a4] sm:$0xf] }
 0x110   :  { %v993_v49 = vpop.f32.mrf.mxu2  ;;  %1960 = vmatpush.bf16.msrb.mxu0 %v4693_v5  ;;  %1973 = vmatpush.bf16.msrb.mxu1 %v4821_v44  ;;  %v5170_v5 = vld [vmem:[%s10262_s1 + $0x7d8] sm:$0xf0]  ;;  %v5045_v44 = vor.u32 %v6687_v42, %v5042_v15  ;;  %v5384_v42 = vld [vmem:[%s10262_s1 + $0x880] sm:$0xf]  ;;  %v6744_v15 = vld [vmem:[%s10262_s1 + $0x88c] sm:$0xf0] }
 0x111   :  { %v8438_v53 = vpack.c.b16 %v1147_v46, %v1147_v46  ;;  %v8440_v54 = vpack.c.b16 %v1148_v47, %v1148_v47  ;;  %v1006_v55 = vpop.f32.mrf.mxu3  ;;  %v5173_v45 = vor.u32 %v6719_v1, %v5170_v5  ;;  %v6715_v46 = vld [vmem:[%s10262_s1 + $0x7ac] sm:$0xf]  ;;  %v5154_v47 = vld [vmem:[%s10262_s1 + $0x7b8] sm:$0xf0]  ;;  %v5029_v49 = vor.u32 %v6683_v43, %v5026_v22  ;;  %v5512_v5 = vld [vmem:[%s10262_s1 + $0x980] sm:$0xf] }
 0x112   :  { %v6711_v55 = vld [vmem:[%s10262_s1 + $0x78c] sm:$0xf]  ;;  %v5368_v22 = vld [vmem:[%s10262_s1 + $0x860] sm:$0xf] }
 0x113   :  { %1831 = vmatmul.bf16.vlgmr.msra.gmra.mxu2 %v8438_v53  ;;  %1844 = vmatmul.bf16.vlgmr.msra.gmra.mxu3 %v8440_v54  ;;  %v5141_v57 = vor.u32 %v6711_v55, %v5138_v56 }
 0x114   :  { %1927 = vmatpush.bf16.msra.mxu2 %v5057_v50  ;;  %1940 = vmatpush.bf16.msra.mxu3 %v5185_v51  ;;  %v5157_v50 = vor.u32 %v6715_v46, %v5154_v47  ;;  %v6679_v51 = vld [vmem:[%s10262_s1 + $0x68c] sm:$0xf]  ;;  %v6740_v46 = vld [vmem:[%s10262_s1 + $0x86c] sm:$0xf0]  ;;  %v5496_v47 = vld [vmem:[%s10262_s1 + $0x960] sm:$0xf] }
 0x115   :  { %1961 = vmatmul.bf16.vlgmr.msrb.gmra.mxu0 %v8140_v10  ;;  %1974 = vmatmul.bf16.vlgmr.msrb.gmra.mxu1 %v8142_v11  ;;  %v5008_v10 = vld [vmem:[%s10262_s1 + $0x688] sm:$0xf]  ;;  %v6681_v11 = vld [vmem:[%s10262_s1 + $0x694] sm:$0xf0]  ;;  %v5013_v48 = vor.u32 %v6679_v51, %v5010_v52  ;;  %v5369_v52 = vor.u32 %v6740_v46, %v5368_v22  ;;  %v6738_v22 = vld [vmem:[%s10262_s1 + $0x864] sm:$0xf] }
 0x116   :  { %v5009_v8 = vor.u32 %v6681_v11, %v5008_v10  ;;  %v6703_v10 = vld [vmem:[%s10262_s1 + $0x74c] sm:$0xf]  ;;  %v5106_v11 = vld [vmem:[%s10262_s1 + $0x758] sm:$0xf0] }
 0x117   :  { %v5109_v7 = vor.u32 %v6703_v10, %v5106_v11 }
 0x118   :  { %1928 = vmatpush.bf16.msra.mxu2 %v5041_v58  ;;  %1941 = vmatpush.bf16.msra.mxu3 %v5169_v59  ;;  %v6675_v58 = vld [vmem:[%s10262_s1 + $0x66c] sm:$0xf]  ;;  %v4994_v59 = vld [vmem:[%s10262_s1 + $0x678] sm:$0xf0] }
 0x119   :  { %v4997_v62 = vor.u32 %v6675_v58, %v4994_v59  ;;  %v5480_v58 = vld [vmem:[%s10262_s1 + $0x940] sm:$0xf]  ;;  %v6768_v59 = vld [vmem:[%s10262_s1 + $0x94c] sm:$0xf0] }
 0x11a   :  { %v5481_v61 = vor.u32 %v6768_v59, %v5480_v58  ;;  %v6848_v59 = vld [vmem:[%s10262_s1 + $0xbcc] sm:$0xf0] }
 0x11c   :  { %1929 = vmatpush.bf16.msra.mxu2 %v5025_v3  ;;  %1942 = vmatpush.bf16.msra.mxu3 %v5153_v4  ;;  %v6671_v3 = vld [vmem:[%s10262_s1 + $0x64c] sm:$0xf]  ;;  %v4978_v4 = vld [vmem:[%s10262_s1 + $0x658] sm:$0xf0] }
 0x11d   :  { %v4981_v6 = vor.u32 %v6671_v3, %v4978_v4  ;;  %v5464_v3 = vld [vmem:[%s10262_s1 + $0x920] sm:$0xf]  ;;  %v6764_v4 = vld [vmem:[%s10262_s1 + $0x92c] sm:$0xf0] }
 0x120   :  { %1930 = vmatpush.bf16.msra.mxu2 %v5009_v8  ;;  %1943 = vmatpush.bf16.msra.mxu3 %v5137_v9  ;;  %v6667_v8 = vld [vmem:[%s10262_s1 + $0x62c] sm:$0xf]  ;;  %v4962_v9 = vld [vmem:[%s10262_s1 + $0x638] sm:$0xf0] }
 0x121   :  { %v4965_v16 = vor.u32 %v6667_v8, %v4962_v9  ;;  %v5320_v8 = vld [vmem:[%s10262_s1 + $0x800] sm:$0xf]  ;;  %v6728_v9 = vld [vmem:[%s10262_s1 + $0x80c] sm:$0xf0] }
 0x122   :  { %v5321_v13 = vor.u32 %v6728_v9, %v5320_v8  ;;  %v6844_v9 = vld [vmem:[%s10262_s1 + $0xbac] sm:$0xf0] }
 0x123   :  { %1883 = vmatmul.bf16.vlgmr.msrb.gmra.mxu2 %v8438_v53  ;;  %1896 = vmatmul.bf16.vlgmr.msrb.gmra.mxu3 %v8440_v54 }
 0x124   :  { %1931 = vmatpush.bf16.msra.mxu2 %v4993_v18  ;;  %1944 = vmatpush.bf16.msra.mxu3 %v5121_v19  ;;  %v6663_v18 = vld [vmem:[%s10262_s1 + $0x60c] sm:$0xf]  ;;  %v4946_v19 = vld [vmem:[%s10262_s1 + $0x618] sm:$0xf0] }
 0x125   :  { %v4949_v24 = vor.u32 %v6663_v18, %v4946_v19  ;;  %v5434_v18 = vld [vmem:[%s10262_s1 + $0x8f0] sm:$0xf0] }
 0x128   :  { %1932 = vmatpush.bf16.msra.mxu2 %v4977_v26  ;;  %1945 = vmatpush.bf16.msra.mxu3 %v5105_v27 }
 0x12c   :  { %1933 = vmatpush.bf16.msra.mxu2 %v4961_v63  ;;  %1946 = vmatpush.bf16.msra.mxu3 %v5089_v2  ;;  %v5433_v63 = vor.u32 %v6756_v30, %v5432_v29  ;;  %v6752_v2 = vld [vmem:[%s10262_s1 + $0x8cc] sm:$0xf0]  ;;  %v6750_v30 = vld [vmem:[%s10262_s1 + $0x8c4] sm:$0xf] }
 0x12e   :  { %2794 = vmatpush.bf16.msra.mxu0 %v5433_v63  ;;  %v6782_v63 = vld [vmem:[%s10262_s1 + $0x9c4] sm:$0xf] }
 0x130   :  { %1934 = vmatpush.bf16.msra.mxu2 %v4945_v40  ;;  %1947 = vmatpush.bf16.msra.mxu3 %v5073_v20  ;;  %v6748_v40 = vld [vmem:[%s10262_s1 + $0x8ac] sm:$0xf0]  ;;  %v5528_v20 = vld [vmem:[%s10262_s1 + $0x9a0] sm:$0xf] }
 0x133   :  { %1935 = vmatmul.bf16.vlgmr.msra.gmra.mxu2 %v8438_v53  ;;  %1948 = vmatmul.bf16.vlgmr.msra.gmra.mxu3 %v8440_v54 }
 0x134   :  { %1979 = vmatpush.bf16.msrb.mxu2 %v5061_v14  ;;  %1992 = vmatpush.bf16.msrb.mxu3 %v5189_v41  ;;  %v5401_v14 = vor.u32 %v6748_v40, %v5400_v39  ;;  %v6780_v41 = vld [vmem:[%s10262_s1 + $0x9ac] sm:$0xf0]  ;;  %v6742_v40 = vld [vmem:[%s10262_s1 + $0x884] sm:$0xf] }
 0x135   :  { %v5529_v1 = vor.u32 %v6780_v41, %v5528_v20  ;;  %v5386_v20 = vld [vmem:[%s10262_s1 + $0x890] sm:$0xf0] }
 0x136   :  { %v5389_v41 = vor.u32 %v6742_v40, %v5386_v20  ;;  %v5608_v20 = vld [vmem:[%s10262_s1 + $0xa40] sm:$0xf] }
 0x138   :  { %1980 = vmatpush.bf16.msrb.mxu2 %v5045_v44  ;;  %1993 = vmatpush.bf16.msrb.mxu3 %v5173_v45  ;;  %v6776_v44 = vld [vmem:[%s10262_s1 + $0x98c] sm:$0xf0]  ;;  %v5385_v45 = vor.u32 %v6744_v15, %v5384_v42  ;;  %v5514_v42 = vld [vmem:[%s10262_s1 + $0x990] sm:$0xf0]  ;;  %v5688_v15 = vld [vmem:[%s10262_s1 + $0xae0] sm:$0xf] }
 0x139   :  { %v5513_v43 = vor.u32 %v6776_v44, %v5512_v5 }
 0x13c   :  { %1981 = vmatpush.bf16.msrb.mxu2 %v5029_v49  ;;  %1994 = vmatpush.bf16.msrb.mxu3 %v5157_v50  ;;  %v6772_v49 = vld [vmem:[%s10262_s1 + $0x96c] sm:$0xf0] }
 0x13d   :  { %v5497_v56 = vor.u32 %v6772_v49, %v5496_v47  ;;  %v5370_v47 = vld [vmem:[%s10262_s1 + $0x870] sm:$0xf0]  ;;  %v6770_v49 = vld [vmem:[%s10262_s1 + $0x964] sm:$0xf] }
 0x140   :  { %1982 = vmatpush.bf16.msrb.mxu2 %v5013_v48  ;;  %1995 = vmatpush.bf16.msrb.mxu3 %v5141_v57  ;;  %v5352_v48 = vld [vmem:[%s10262_s1 + $0x840] sm:$0xf]  ;;  %v6736_v57 = vld [vmem:[%s10262_s1 + $0x84c] sm:$0xf0] }
 0x141   :  { %v5353_v60 = vor.u32 %v6736_v57, %v5352_v48  ;;  %v6816_v48 = vld [vmem:[%s10262_s1 + $0xacc] sm:$0xf0]  ;;  %v5800_v57 = vld [vmem:[%s10262_s1 + $0xbc0] sm:$0xf] }
 0x144   :  { %1983 = vmatpush.bf16.msrb.mxu2 %v4997_v62  ;;  %1996 = vmatpush.bf16.msrb.mxu3 %v5125_v0  ;;  %v5336_v62 = vld [vmem:[%s10262_s1 + $0x820] sm:$0xf]  ;;  %v6732_v0 = vld [vmem:[%s10262_s1 + $0x82c] sm:$0xf0] }
 0x148   :  { %1984 = vmatpush.bf16.msrb.mxu2 %v4981_v6  ;;  %1997 = vmatpush.bf16.msrb.mxu3 %v5109_v7  ;;  %v5337_v6 = vor.u32 %v6732_v0, %v5336_v62  ;;  %v5465_v7 = vor.u32 %v6764_v4, %v5464_v3  ;;  %v5801_v62 = vor.u32 %v6848_v59, %v5800_v57  ;;  %v6766_v3 = vld [vmem:[%s10262_s1 + $0x944] sm:$0xf]  ;;  %v5482_v4 = vld [vmem:[%s10262_s1 + $0x950] sm:$0xf0] }
 0x14c   :  { %1985 = vmatpush.bf16.msrb.mxu2 %v4965_v16  ;;  %1998 = vmatpush.bf16.msrb.mxu3 %v5093_v17  ;;  %v6760_v16 = vld [vmem:[%s10262_s1 + $0x90c] sm:$0xf0]  ;;  %v6754_v17 = vld [vmem:[%s10262_s1 + $0x8e4] sm:$0xf] }
 0x14d   :  { %v5449_v19 = vor.u32 %v6760_v16, %v5448_v12  ;;  %v5437_v21 = vor.u32 %v6754_v17, %v5434_v18  ;;  %v6730_v12 = vld [vmem:[%s10262_s1 + $0x824] sm:$0xf] }
 0x14e   :  { %v6762_v18 = vld [vmem:[%s10262_s1 + $0x924] sm:$0xf] }
 0x150   :  { %1986 = vmatpush.bf16.msrb.mxu2 %v4949_v24  ;;  %1999 = vmatpush.bf16.msrb.mxu3 %v5077_v25  ;;  %v1806_v26 = vpop.f32.mrf.mxu0  ;;  %v1819_v27 = vpop.f32.mrf.mxu1  ;;  %v5562_v24 = vld [vmem:[%s10262_s1 + $0x9f0] sm:$0xf0] }
 0x151   :  { %v8629_v28 = vadd.f32 %v1819_v27, %v1806_v26  ;;  %v5565_v27 = vor.u32 %v6786_v23, %v5562_v24  ;;  %v5640_v23 = vld [vmem:[%s10262_s1 + $0xa80] sm:$0xf]  ;;  %v6808_v24 = vld [vmem:[%s10262_s1 + $0xa8c] sm:$0xf0] }
 0x153   :  { %1987 = vmatmul.bf16.vlgmr.msrb.gmra.mxu2 %v8438_v53  ;;  %2000 = vmatmul.bf16.vlgmr.msrb.gmra.mxu3 %v8440_v54  ;;  %v6788_v53 = vld [vmem:[%s10262_s1 + $0x9ec] sm:$0xf0]  ;;  %v5416_v54 = vld [vmem:[%s10262_s1 + $0x8c0] sm:$0xf] }
 0x154   :  { %v5561_v32 = vor.u32 %v6788_v53, %v5560_v31  ;;  %v5417_v35 = vor.u32 %v6752_v2, %v5416_v54  ;;  %v5418_v31 = vld [vmem:[%s10262_s1 + $0x8d0] sm:$0xf0] }
 0x155   :  { %v5421_v53 = vor.u32 %v6750_v30, %v5418_v31  ;;  %v5546_v54 = vld [vmem:[%s10262_s1 + $0x9d0] sm:$0xf0]  ;;  %v6726_v30 = vld [vmem:[%s10262_s1 + $0x804] sm:$0xf] }
 0x156   :  { %2807 = vmatpush.bf16.msra.mxu1 %v5561_v32  ;;  %2795 = vmatpush.bf16.msra.mxu0 %v5417_v35  ;;  %v5549_v2 = vor.u32 %v6782_v63, %v5546_v54  ;;  %v6746_v32 = vld [vmem:[%s10262_s1 + $0x8a4] sm:$0xf]  ;;  %v5322_v31 = vld [vmem:[%s10262_s1 + $0x810] sm:$0xf0] }
 0x157   :  { %v5405_v35 = vor.u32 %v6746_v32, %v5402_v33  ;;  %v6758_v54 = vld [vmem:[%s10262_s1 + $0x904] sm:$0xf]  ;;  %v5624_v33 = vld [vmem:[%s10262_s1 + $0xa60] sm:$0xf] }
 0x158   :  { %v1808_v37 = vpop.f32.mrf.mxu0  ;;  %v1821_v38 = vpop.f32.mrf.mxu1 }
 0x15a   :  { %2808 = vmatpush.bf16.msra.mxu1 %v5545_v36  ;;  %2796 = vmatpush.bf16.msra.mxu0 %v5401_v14  ;;  %v5530_v36 = vld [vmem:[%s10262_s1 + $0x9b0] sm:$0xf0]  ;;  %v6774_v14 = vld [vmem:[%s10262_s1 + $0x984] sm:$0xf] }
 0x15b   :  { %v5533_v39 = vor.u32 %v6778_v34, %v5530_v36  ;;  %v5517_v5 = vor.u32 %v6774_v14, %v5514_v42  ;;  %v6804_v34 = vld [vmem:[%s10262_s1 + $0xa6c] sm:$0xf0] }
 0x15c   :  { %v6800_v14 = vld [vmem:[%s10262_s1 + $0xa4c] sm:$0xf0] }
 0x15e   :  { %2809 = vmatpush.bf16.msra.mxu1 %v5529_v1  ;;  %2797 = vmatpush.bf16.msra.mxu0 %v5385_v45  ;;  %v6820_v1 = vld [vmem:[%s10262_s1 + $0xaec] sm:$0xf0]  ;;  %v5816_v45 = vld [vmem:[%s10262_s1 + $0xbe0] sm:$0xf] }
 0x15f   :  { %v5689_v44 = vor.u32 %v6820_v1, %v5688_v15  ;;  %v5609_v1 = vor.u32 %v6800_v14, %v5608_v20  ;;  %v5424_v20 = vld [vmem:[%s10262_s1 + $0x8c8] sm:$0xf]  ;;  %v6753_v14 = vld [vmem:[%s10262_s1 + $0x8d4] sm:$0xf0] }
 0x160   :  { %v1858_v50 = vpop.f32.mrf.mxu0  ;;  %v1871_v51 = vpop.f32.mrf.mxu1 }
 0x161   :  { %v8691_v55 = vadd.f32 %v1871_v51, %v1858_v50  ;;  %v5498_v50 = vld [vmem:[%s10262_s1 + $0x970] sm:$0xf0]  ;;  %2820 = vmatpush.bf16.msra.mxu2 %v5689_v44  ;;  %v5373_v51 = vor.u32 %v6738_v22, %v5370_v47  ;;  %v5720_v22 = vld [vmem:[%s10262_s1 + $0xb20] sm:$0xf] }
 0x162   :  { %2810 = vmatpush.bf16.msra.mxu1 %v5513_v43  ;;  %2798 = vmatpush.bf16.msra.mxu0 %v5369_v52  ;;  %v6852_v43 = vld [vmem:[%s10262_s1 + $0xbec] sm:$0xf0]  ;;  %v5501_v52 = vor.u32 %v6770_v49, %v5498_v50 }
 0x163   :  { %v5817_v46 = vor.u32 %v6852_v43, %v5816_v45  ;;  %v5592_v45 = vld [vmem:[%s10262_s1 + $0xa20] sm:$0xf]  ;;  %v6796_v43 = vld [vmem:[%s10262_s1 + $0xa2c] sm:$0xf0] }
 0x164   :  { %v5593_v49 = vor.u32 %v6796_v43, %v5592_v45  ;;  %v6828_v50 = vld [vmem:[%s10262_s1 + $0xb2c] sm:$0xf0]  ;;  %v6834_v45 = vld [vmem:[%s10262_s1 + $0xb64] sm:$0xf] }
 0x165   :  { %2833 = vmatpush.bf16.msra.mxu3 %v5817_v46 }
 0x166   :  { %2811 = vmatpush.bf16.msra.mxu1 %v5497_v56  ;;  %2799 = vmatpush.bf16.msra.mxu0 %v5353_v60  ;;  %v5672_v56 = vld [vmem:[%s10262_s1 + $0xac0] sm:$0xf]  ;;  %v6734_v60 = vld [vmem:[%s10262_s1 + $0x844] sm:$0xf] }
 0x167   :  { %v5673_v58 = vor.u32 %v6816_v48, %v5672_v56  ;;  %v6792_v56 = vld [vmem:[%s10262_s1 + $0xa0c] sm:$0xf0]  ;;  %v5704_v48 = vld [vmem:[%s10262_s1 + $0xb00] sm:$0xf] }
 0x168   :  { %v1860_v10 = vpop.f32.mrf.mxu0  ;;  %v1873_v11 = vpop.f32.mrf.mxu1 }
 0x169   :  { %2821 = vmatpush.bf16.msra.mxu2 %v5673_v58  ;;  %v5485_v10 = vor.u32 %v6766_v3, %v5482_v4  ;;  %2834 = vmatpush.bf16.msra.mxu3 %v5801_v62  ;;  %v5656_v11 = vld [vmem:[%s10262_s1 + $0xaa0] sm:$0xf]  ;;  %v5690_v62 = vld [vmem:[%s10262_s1 + $0xaf0] sm:$0xf0]  ;;  %v6850_v4 = vld [vmem:[%s10262_s1 + $0xbe4] sm:$0xf] }
 0x16a   :  { %2812 = vmatpush.bf16.msra.mxu1 %v5481_v61  ;;  %2800 = vmatpush.bf16.msra.mxu0 %v5337_v6  ;;  %v5354_v61 = vld [vmem:[%s10262_s1 + $0x850] sm:$0xf0]  ;;  %v6812_v6 = vld [vmem:[%s10262_s1 + $0xaac] sm:$0xf0] }
 0x16b   :  { %v5357_v0 = vor.u32 %v6734_v60, %v5354_v61  ;;  %v5657_v8 = vor.u32 %v6812_v6, %v5656_v11  ;;  %v6824_v60 = vld [vmem:[%s10262_s1 + $0xb0c] sm:$0xf0]  ;;  %v6818_v61 = vld [vmem:[%s10262_s1 + $0xae4] sm:$0xf] }
 0x16c   :  { %v5693_v3 = vor.u32 %v6818_v61, %v5690_v62  ;;  %v6814_v6 = vld [vmem:[%s10262_s1 + $0xac4] sm:$0xf]  ;;  %v5536_v61 = vld [vmem:[%s10262_s1 + $0x9a8] sm:$0xf]  ;;  %v6781_v62 = vld [vmem:[%s10262_s1 + $0x9b4] sm:$0xf0] }
 0x16d   :  { %2822 = vmatpush.bf16.msra.mxu2 %v5657_v8  ;;  %v6846_v8 = vld [vmem:[%s10262_s1 + $0xbc4] sm:$0xf] }
 0x16e   :  { %2813 = vmatpush.bf16.msra.mxu1 %v5465_v7  ;;  %2801 = vmatpush.bf16.msra.mxu0 %v5321_v13  ;;  %v5784_v7 = vld [vmem:[%s10262_s1 + $0xba0] sm:$0xf]  ;;  %v5338_v13 = vld [vmem:[%s10262_s1 + $0x830] sm:$0xf0] }
 0x16f   :  { %v5785_v16 = vor.u32 %v6844_v9, %v5784_v7  ;;  %v5341_v17 = vor.u32 %v6730_v12, %v5338_v13  ;;  %v5674_v7 = vld [vmem:[%s10262_s1 + $0xad0] sm:$0xf0] }
 0x170   :  { %v1910_v25 = vpop.f32.mrf.mxu0  ;;  %v1923_v26 = vpop.f32.mrf.mxu1  ;;  %v5677_v9 = vor.u32 %v6814_v6, %v5674_v7  ;;  %v5802_v12 = vld [vmem:[%s10262_s1 + $0xbd0] sm:$0xf0] }
 0x171   :  { %v8741_v29 = vadd.f32 %v1923_v26, %v1910_v25  ;;  %2835 = vmatpush.bf16.msra.mxu3 %v5785_v16  ;;  %v5768_v25 = vld [vmem:[%s10262_s1 + $0xb80] sm:$0xf]  ;;  %v5641_v26 = vor.u32 %v6808_v24, %v5640_v23  ;;  %v5805_v13 = vor.u32 %v6846_v8, %v5802_v12  ;;  %v6842_v23 = vld [vmem:[%s10262_s1 + $0xba4] sm:$0xf] }
 0x172   :  { %2814 = vmatpush.bf16.msra.mxu1 %v5449_v19  ;;  %2846 = vmatpush.bf16.msrb.mxu0 %v5437_v21  ;;  %v5466_v19 = vld [vmem:[%s10262_s1 + $0x930] sm:$0xf0]  ;;  %v6794_v12 = vld [vmem:[%s10262_s1 + $0xa24] sm:$0xf] }
 0x173   :  { %v5469_v21 = vor.u32 %v6762_v18, %v5466_v19  ;;  %2823 = vmatpush.bf16.msra.mxu2 %v5641_v26  ;;  %v6810_v19 = vld [vmem:[%s10262_s1 + $0xaa4] sm:$0xf] }
 0x176   :  { %2859 = vmatpush.bf16.msrb.mxu1 %v5565_v27  ;;  %2847 = vmatpush.bf16.msrb.mxu0 %v5421_v53  ;;  %v6840_v27 = vld [vmem:[%s10262_s1 + $0xb8c] sm:$0xf0]  ;;  %v5325_v53 = vor.u32 %v6726_v30, %v5322_v31  ;;  %v5440_v31 = vld [vmem:[%s10262_s1 + $0x8e8] sm:$0xf] }
 0x177   :  { %v5769_v63 = vor.u32 %v6840_v27, %v5768_v25 }
 0x178   :  { %v1912_v37 = vpop.f32.mrf.mxu0  ;;  %v1925_v38 = vpop.f32.mrf.mxu1 }
 0x179   :  { %2836 = vmatpush.bf16.msra.mxu3 %v5769_v63  ;;  %v5625_v38 = vor.u32 %v6804_v34, %v5624_v33  ;;  %v6757_v63 = vld [vmem:[%s10262_s1 + $0x8f4] sm:$0xf0] }
 0x17a   :  { %2860 = vmatpush.bf16.msrb.mxu1 %v5549_v2  ;;  %2848 = vmatpush.bf16.msrb.mxu0 %v5405_v35  ;;  %v5450_v2 = vld [vmem:[%s10262_s1 + $0x910] sm:$0xf0]  ;;  %v5752_v35 = vld [vmem:[%s10262_s1 + $0xb60] sm:$0xf]  ;;  %v6789_v33 = vld [vmem:[%s10262_s1 + $0x9f4] sm:$0xf0] }
 0x17b   :  { %v5453_v32 = vor.u32 %v6758_v54, %v5450_v2  ;;  %2824 = vmatpush.bf16.msra.mxu2 %v5625_v38  ;;  %v6838_v54 = vld [vmem:[%s10262_s1 + $0xb84] sm:$0xf] }
 0x17e   :  { %2861 = vmatpush.bf16.msrb.mxu1 %v5533_v39  ;;  %2849 = vmatpush.bf16.msrb.mxu0 %v5389_v41  ;;  %v6836_v39 = vld [vmem:[%s10262_s1 + $0xb6c] sm:$0xf0]  ;;  %v5736_v41 = vld [vmem:[%s10262_s1 + $0xb40] sm:$0xf] }
 0x17f   :  { %v5753_v40 = vor.u32 %v6836_v39, %v5752_v35  ;;  %2825 = vmatpush.bf16.msra.mxu2 %v5609_v1  ;;  %v5770_v35 = vld [vmem:[%s10262_s1 + $0xb90] sm:$0xf0] }
 0x180   :  { %v5773_v38 = vor.u32 %v6838_v54, %v5770_v35  ;;  %v5706_v54 = vld [vmem:[%s10262_s1 + $0xb10] sm:$0xf0] }
 0x181   :  { %2837 = vmatpush.bf16.msra.mxu3 %v5753_v40 }
 0x182   :  { %2862 = vmatpush.bf16.msrb.mxu1 %v5517_v5  ;;  %2850 = vmatpush.bf16.msrb.mxu0 %v5373_v51  ;;  %v6832_v5 = vld [vmem:[%s10262_s1 + $0xb4c] sm:$0xf0]  ;;  %v5721_v51 = vor.u32 %v6828_v50, %v5720_v22  ;;  %v5754_v50 = vld [vmem:[%s10262_s1 + $0xb70] sm:$0xf0] }
 0x183   :  { %v5737_v44 = vor.u32 %v6832_v5, %v5736_v41  ;;  %2826 = vmatpush.bf16.msra.mxu2 %v5593_v49  ;;  %v6802_v5 = vld [vmem:[%s10262_s1 + $0xa64] sm:$0xf] }
 0x185   :  { %2838 = vmatpush.bf16.msra.mxu3 %v5737_v44  ;;  %v5626_v44 = vld [vmem:[%s10262_s1 + $0xa70] sm:$0xf0] }
 0x186   :  { %2863 = vmatpush.bf16.msrb.mxu1 %v5501_v52  ;;  %2851 = vmatpush.bf16.msrb.mxu0 %v5357_v0  ;;  %v5576_v52 = vld [vmem:[%s10262_s1 + $0xa00] sm:$0xf]  ;;  %v5705_v0 = vor.u32 %v6824_v60, %v5704_v48  ;;  %v5629_v49 = vor.u32 %v6802_v5, %v5626_v44  ;;  %v5425_v48 = vor.u32 %v6753_v14, %v5424_v20  ;;  %v6830_v60 = vld [vmem:[%s10262_s1 + $0xb44] sm:$0xf]  ;;  %v6769_v20 = vld [vmem:[%s10262_s1 + $0x954] sm:$0xf0] }
 0x187   :  { %v5577_v59 = vor.u32 %v6792_v56, %v5576_v52  ;;  %v5408_v52 = vld [vmem:[%s10262_s1 + $0x8a8] sm:$0xf]  ;;  %v6749_v56 = vld [vmem:[%s10262_s1 + $0x8b4] sm:$0xf0] }
 0x188   :  { %v5409_v8 = vor.u32 %v6749_v56, %v5408_v52  ;;  %v6765_v5 = vld [vmem:[%s10262_s1 + $0x934] sm:$0xf0]  ;;  %v5442_v52 = vld [vmem:[%s10262_s1 + $0x8f8] sm:$0xf0]  ;;  %v6787_v56 = vld [vmem:[%s10262_s1 + $0x9ec] sm:$0xf] }
 0x189   :  { %2839 = vmatpush.bf16.msra.mxu3 %v5721_v51  ;;  %2827 = vmatpush.bf16.msra.mxu2 %v5577_v59  ;;  %v5757_v51 = vor.u32 %v6834_v45, %v5754_v50  ;;  %v5610_v59 = vld [vmem:[%s10262_s1 + $0xa50] sm:$0xf0]  ;;  %v6761_v50 = vld [vmem:[%s10262_s1 + $0x914] sm:$0xf0] }
 0x18a   :  { %2864 = vmatpush.bf16.msrb.mxu1 %v5485_v10  ;;  %2852 = vmatpush.bf16.msrb.mxu0 %v5341_v17  ;;  %v5818_v10 = vld [vmem:[%s10262_s1 + $0xbf0] sm:$0xf0] }
 0x18b   :  { %v5821_v11 = vor.u32 %v6850_v4, %v5818_v10  ;;  %v5392_v10 = vld [vmem:[%s10262_s1 + $0x888] sm:$0xf] }
 0x18d   :  { %2840 = vmatpush.bf16.msra.mxu3 %v5705_v0  ;;  %2872 = vmatpush.bf16.msrb.mxu2 %v5693_v3  ;;  %v5738_v3 = vld [vmem:[%s10262_s1 + $0xb50] sm:$0xf0] }
 0x18e   :  { %2865 = vmatpush.bf16.msrb.mxu1 %v5469_v21  ;;  %2853 = vmatpush.bf16.msrb.mxu0 %v5325_v53  ;;  %v5658_v21 = vld [vmem:[%s10262_s1 + $0xab0] sm:$0xf0]  ;;  %v5741_v4 = vor.u32 %v6830_v60, %v5738_v3  ;;  %v5554_v3 = vld [vmem:[%s10262_s1 + $0x9d8] sm:$0xf0] }
 0x18f   :  { %v5661_v25 = vor.u32 %v6810_v19, %v5658_v21  ;;  %v5642_v53 = vld [vmem:[%s10262_s1 + $0xa90] sm:$0xf0] }
 0x190   :  { %v5722_v21 = vld [vmem:[%s10262_s1 + $0xb30] sm:$0xf0] }
 0x191   :  { %2885 = vmatpush.bf16.msrb.mxu3 %v5821_v11  ;;  %2873 = vmatpush.bf16.msrb.mxu2 %v5677_v9  ;;  %v6745_v11 = vld [vmem:[%s10262_s1 + $0x894] sm:$0xf0]  ;;  %v5537_v9 = vor.u32 %v6781_v62, %v5536_v61  ;;  %v6751_v61 = vld [vmem:[%s10262_s1 + $0x8cc] sm:$0xf]  ;;  %v5426_v62 = vld [vmem:[%s10262_s1 + $0x8d8] sm:$0xf0] }
 0x192   :  { %v8884_v36 = vpop.f32.mrf.mxu0  ;;  %v8886_v37 = vpop.f32.mrf.mxu1  ;;  %2866 = vmatpush.bf16.msrb.mxu1 %v5453_v32  ;;  %v5568_v32 = vld [vmem:[%s10262_s1 + $0x9e8] sm:$0xf] }
 0x193   :  { %v5569_v1 = vor.u32 %v6789_v33, %v5568_v32 }
 0x195   :  { %2886 = vmatpush.bf16.msrb.mxu3 %v5805_v13  ;;  %2874 = vmatpush.bf16.msrb.mxu2 %v5661_v25  ;;  %v5594_v13 = vld [vmem:[%s10262_s1 + $0xa30] sm:$0xf0]  ;;  %v6741_v25 = vld [vmem:[%s10262_s1 + $0x874] sm:$0xf0] }
 0x196   :  { %v1832_v42 = vpop.f32.mrf.mxu2  ;;  %v1845_v15 = vpop.f32.mrf.mxu3  ;;  %v5597_v19 = vor.u32 %v6794_v12, %v5594_v13  ;;  %v5538_v12 = vld [vmem:[%s10262_s1 + $0x9b8] sm:$0xf0]  ;;  %v1976_v13 = vadd.f32 %v8886_v37, %v8884_v36  ;;  %v6775_v36 = vld [vmem:[%s10262_s1 + $0x98c] sm:$0xf] }
 0x197   :  { %v1833_v16 = vadd.f32 %v1832_v42, %v8629_v28  ;;  %v5786_v28 = vld [vmem:[%s10262_s1 + $0xbb0] sm:$0xf0] }
 0x198   :  { %v5789_v26 = vor.u32 %v6842_v23, %v5786_v28  ;;  %v5393_v28 = vor.u32 %v6745_v11, %v5392_v10  ;;  %v6747_v11 = vld [vmem:[%s10262_s1 + $0x8ac] sm:$0xf] }
 0x199   :  { %v1846_v27 = vadd.f32 %v1845_v15, %v1833_v16  ;;  %v5441_v15 = vor.u32 %v6757_v63, %v5440_v31  ;;  %v6826_v16 = vld [vmem:[%s10262_s1 + $0xb24] sm:$0xf]  ;;  %v5504_v63 = vld [vmem:[%s10262_s1 + $0x968] sm:$0xf] }
 0x19a   :  { %v1964_v46 = vpop.f32.mrf.mxu0  ;;  %v1977_v47 = vpop.f32.mrf.mxu1  ;;  %2887 = vmatpush.bf16.msrb.mxu3 %v5789_v26  ;;  %v5725_v23 = vor.u32 %v6826_v16, %v5722_v21  ;;  %v6822_v31 = vld [vmem:[%s10262_s1 + $0xb04] sm:$0xf] }
 0x19b   :  { %v5552_v46 = vld [vmem:[%s10262_s1 + $0x9c8] sm:$0xf]  ;;  %v6785_v47 = vld [vmem:[%s10262_s1 + $0x9d4] sm:$0xf0] }
 0x19e   :  { %v1834_v57 = vpop.f32.mrf.mxu2  ;;  %v1847_v58 = vpop.f32.mrf.mxu3  ;;  %2888 = vmatpush.bf16.msrb.mxu3 %v5773_v38  ;;  %v5360_v38 = vld [vmem:[%s10262_s1 + $0x848] sm:$0xf] }
 0x19f   :  { %v5553_v57 = vor.u32 %v6785_v47, %v5552_v46  ;;  %v6798_v58 = vld [vmem:[%s10262_s1 + $0xa44] sm:$0xf]  ;;  %v5328_v46 = vld [vmem:[%s10262_s1 + $0x808] sm:$0xf]  ;;  %v6729_v47 = vld [vmem:[%s10262_s1 + $0x814] sm:$0xf0] }
 0x1a0   :  { %v5613_v0 = vor.u32 %v6798_v58, %v5610_v59 }
 0x1a2   :  { %2889 = vmatpush.bf16.msrb.mxu3 %v5757_v51  ;;  %v6755_v51 = vld [vmem:[%s10262_s1 + $0x8ec] sm:$0xf] }
 0x1a3   :  { %v5445_v59 = vor.u32 %v6755_v51, %v5442_v52  ;;  %v5664_v51 = vld [vmem:[%s10262_s1 + $0xaa8] sm:$0xf]  ;;  %v6813_v52 = vld [vmem:[%s10262_s1 + $0xab4] sm:$0xf0] }
 0x1a6   :  { %v1884_v17 = vpop.f32.mrf.mxu2  ;;  %v1897_v18 = vpop.f32.mrf.mxu3  ;;  %2890 = vmatpush.bf16.msrb.mxu3 %v5741_v4  ;;  %v5429_v4 = vor.u32 %v6751_v61, %v5426_v62  ;;  %v6763_v61 = vld [vmem:[%s10262_s1 + $0x92c] sm:$0xf]  ;;  %v5474_v62 = vld [vmem:[%s10262_s1 + $0x938] sm:$0xf0] }
 0x1a7   :  { %v1885_v24 = vadd.f32 %v1884_v17, %v8691_v55  ;;  %v6806_v55 = vld [vmem:[%s10262_s1 + $0xa84] sm:$0xf]  ;;  %v5520_v17 = vld [vmem:[%s10262_s1 + $0x988] sm:$0xf] }
 0x1a8   :  { %v5645_v34 = vor.u32 %v6806_v55, %v5642_v53  ;;  %v6773_v55 = vld [vmem:[%s10262_s1 + $0x974] sm:$0xf0] }
 0x1a9   :  { %v1898_v30 = vadd.f32 %v1897_v18, %v1885_v24  ;;  %v6777_v18 = vld [vmem:[%s10262_s1 + $0x994] sm:$0xf0]  ;;  %v5376_v24 = vld [vmem:[%s10262_s1 + $0x868] sm:$0xf]  ;;  %v5505_v35 = vor.u32 %v6773_v55, %v5504_v63  ;;  %v6739_v55 = vld [vmem:[%s10262_s1 + $0x86c] sm:$0xf] }
 0x1aa   :  { %2875 = vmatpush.bf16.msrb.mxu2 %v5645_v34  ;;  %v5521_v26 = vor.u32 %v6777_v18, %v5520_v17  ;;  %2891 = vmatpush.bf16.msrb.mxu3 %v5725_v23  ;;  %v5377_v34 = vor.u32 %v6741_v25, %v5376_v24  ;;  %v6743_v23 = vld [vmem:[%s10262_s1 + $0x88c] sm:$0xf]  ;;  %v5394_v25 = vld [vmem:[%s10262_s1 + $0x898] sm:$0xf0]  ;;  %v5824_v63 = vld [vmem:[%s10262_s1 + $0xbe8] sm:$0xf] }
 0x1ab   :  { %v2005_v2 = vpack.c.bf16 %v1898_v30, %v1846_v27  ;;  %v6790_v27 = vld [vmem:[%s10262_s1 + $0xa04] sm:$0xf]  ;;  %v5578_v30 = vld [vmem:[%s10262_s1 + $0xa10] sm:$0xf0] }
 0x1ac   :  { %v5581_v53 = vor.u32 %v6790_v27, %v5578_v30  ;;  %v5696_v27 = vld [vmem:[%s10262_s1 + $0xae8] sm:$0xf]  ;;  %v6821_v30 = vld [vmem:[%s10262_s1 + $0xaf4] sm:$0xf0] }
 0x1ad   :  { %v2142_v39 = vunpack.c.l.b16 %v2005_v2  ;;  %v2143_v40 = vunpack.c.h.b16 %v2005_v2  ;;  %v5709_v2 = vor.u32 %v6822_v31, %v5706_v54  ;;  %v6771_v54 = vld [vmem:[%s10262_s1 + $0x96c] sm:$0xf] }
 0x1ae   :  { %v1886_v41 = vpop.f32.mrf.mxu2  ;;  %v1899_v42 = vpop.f32.mrf.mxu3  ;;  %2876 = vmatpush.bf16.msrb.mxu2 %v5629_v49  ;;  %v5456_v49 = vld [vmem:[%s10262_s1 + $0x908] sm:$0xf] }
 0x1af   :  { %v9004_v43 = vpack.c.b16 %v2142_v39, %v2142_v39  ;;  %v9006_v22 = vpack.c.b16 %v2143_v40, %v2143_v40  ;;  %v6737_v39 = vld [vmem:[%s10262_s1 + $0x854] sm:$0xf0]  ;;  %v5488_v40 = vld [vmem:[%s10262_s1 + $0x948] sm:$0xf]  ;;  %2892 = vmatpush.bf16.msrb.mxu3 %v5709_v2  ;;  %v5457_v58 = vor.u32 %v6761_v50, %v5456_v49  ;;  %v5506_v2 = vld [vmem:[%s10262_s1 + $0x978] sm:$0xf0] }
 0x1b0   :  { %v5361_v14 = vor.u32 %v6737_v39, %v5360_v38  ;;  %v5489_v41 = vor.u32 %v6769_v20, %v5488_v40  ;;  %v5344_v42 = vld [vmem:[%s10262_s1 + $0x828] sm:$0xf]  ;;  %v5697_v38 = vor.u32 %v6821_v30, %v5696_v27  ;;  %v6817_v20 = vld [vmem:[%s10262_s1 + $0xad4] sm:$0xf0] }
 0x1b1   :  { %2802 = vmatmul.bf16.vlgmr.msra.gmra.mxu0 %v9004_v43  ;;  %2815 = vmatmul.bf16.vlgmr.msra.gmra.mxu1 %v9006_v22  ;;  %v5680_v40 = vld [vmem:[%s10262_s1 + $0xac8] sm:$0xf]  ;;  %v6801_v27 = vld [vmem:[%s10262_s1 + $0xa54] sm:$0xf0] }
 0x1b2   :  { %2898 = vmatpush.bf16.msra.mxu0 %v5441_v15  ;;  %2911 = vmatpush.bf16.msra.mxu1 %v5569_v1  ;;  %v6733_v15 = vld [vmem:[%s10262_s1 + $0x834] sm:$0xf0]  ;;  %v5472_v1 = vld [vmem:[%s10262_s1 + $0x928] sm:$0xf]  ;;  %v5681_v49 = vor.u32 %v6817_v20, %v5680_v40  ;;  %v6851_v40 = vld [vmem:[%s10262_s1 + $0xbec] sm:$0xf] }
 0x1b3   :  { %2877 = vmatpush.bf16.msrb.mxu2 %v5613_v0  ;;  %v5345_v44 = vor.u32 %v6733_v15, %v5344_v42  ;;  %v5473_v45 = vor.u32 %v6765_v5, %v5472_v1  ;;  %v6783_v0 = vld [vmem:[%s10262_s1 + $0x9cc] sm:$0xf]  ;;  %v5509_v15 = vor.u32 %v6771_v54, %v5506_v2  ;;  %v5808_v1 = vld [vmem:[%s10262_s1 + $0xbc8] sm:$0xf]  ;;  %v6849_v5 = vld [vmem:[%s10262_s1 + $0xbd4] sm:$0xf0] }
 0x1b4   :  { %v5557_v10 = vor.u32 %v6783_v0, %v5554_v3  ;;  %v5809_v50 = vor.u32 %v6849_v5, %v5808_v1  ;;  %v5665_v0 = vor.u32 %v6813_v52, %v5664_v51  ;;  %v5744_v30 = vld [vmem:[%s10262_s1 + $0xb48] sm:$0xf]  ;;  %v6829_v2 = vld [vmem:[%s10262_s1 + $0xb34] sm:$0xf0]  ;;  %v5826_v20 = vld [vmem:[%s10262_s1 + $0xbf8] sm:$0xf0] }
 0x1b5   :  { %v5728_v54 = vld [vmem:[%s10262_s1 + $0xb28] sm:$0xf]  ;;  %v5829_v5 = vor.u32 %v6851_v40, %v5826_v20  ;;  %v6811_v51 = vld [vmem:[%s10262_s1 + $0xaac] sm:$0xf]  ;;  %v5666_v52 = vld [vmem:[%s10262_s1 + $0xab8] sm:$0xf0] }
 0x1b6   :  { %2899 = vmatpush.bf16.msra.mxu0 %v5425_v48  ;;  %2912 = vmatpush.bf16.msra.mxu1 %v5553_v57  ;;  %v9049_v6 = vpop.f32.mrf.mxu2  ;;  %v9051_v7 = vpop.f32.mrf.mxu3  ;;  %v5570_v48 = vld [vmem:[%s10262_s1 + $0x9f8] sm:$0xf0]  ;;  %v5329_v57 = vor.u32 %v6729_v47, %v5328_v46  ;;  %v6767_v46 = vld [vmem:[%s10262_s1 + $0x94c] sm:$0xf]  ;;  %v6908_v40 = vld [vmem:[%s10262_s1 + $0xdac] sm:$0xf0] }
 0x1b7   :  { %2878 = vmatpush.bf16.msrb.mxu2 %v5597_v19  ;;  %v5573_v60 = vor.u32 %v6787_v56, %v5570_v48  ;;  %v1937_v16 = vadd.f32 %v9049_v6, %v8741_v29  ;;  %v5522_v29 = vld [vmem:[%s10262_s1 + $0x998] sm:$0xf0]  ;;  %v6024_v20 = vld [vmem:[%s10262_s1 + $0xc80] sm:$0xf] }
 0x1b8   :  { %v5490_v47 = vld [vmem:[%s10262_s1 + $0x958] sm:$0xf0] }
 0x1b9   :  { %v1950_v37 = vadd.f32 %v9051_v7, %v1937_v16  ;;  %v6853_v7 = vld [vmem:[%s10262_s1 + $0xbf4] sm:$0xf0]  ;;  %v5493_v48 = vor.u32 %v6767_v46, %v5490_v47  ;;  %v5330_v16 = vld [vmem:[%s10262_s1 + $0x818] sm:$0xf0]  ;;  %v6847_v46 = vld [vmem:[%s10262_s1 + $0xbcc] sm:$0xf] }
 0x1ba   :  { %2900 = vmatpush.bf16.msra.mxu0 %v5409_v8  ;;  %2913 = vmatpush.bf16.msra.mxu1 %v5537_v9  ;;  %v5410_v8 = vld [vmem:[%s10262_s1 + $0x8b8] sm:$0xf0]  ;;  %v6779_v9 = vld [vmem:[%s10262_s1 + $0x9ac] sm:$0xf]  ;;  %v5825_v39 = vor.u32 %v6853_v7, %v5824_v63 }
 0x1bb   :  { %2879 = vmatpush.bf16.msrb.mxu2 %v5581_v53  ;;  %v5413_v19 = vor.u32 %v6747_v11, %v5410_v8  ;;  %v5541_v21 = vor.u32 %v6779_v9, %v5538_v12  ;;  %v5378_v53 = vld [vmem:[%s10262_s1 + $0x878] sm:$0xf0]  ;;  %v5477_v8 = vor.u32 %v6763_v61, %v5474_v62  ;;  %v5776_v9 = vld [vmem:[%s10262_s1 + $0xb88] sm:$0xf]  ;;  %v6841_v12 = vld [vmem:[%s10262_s1 + $0xb94] sm:$0xf0] }
 0x1bc   :  { %v5381_v42 = vor.u32 %v6739_v55, %v5378_v53  ;;  %v5600_v55 = vld [vmem:[%s10262_s1 + $0xa28] sm:$0xf]  ;;  %v6797_v53 = vld [vmem:[%s10262_s1 + $0xa34] sm:$0xf0]  ;;  %v5810_v47 = vld [vmem:[%s10262_s1 + $0xbd8] sm:$0xf0] }
 0x1bd   :  { %v6839_v61 = vld [vmem:[%s10262_s1 + $0xb8c] sm:$0xf]  ;;  %v5778_v62 = vld [vmem:[%s10262_s1 + $0xb98] sm:$0xf0] }
 0x1be   :  { %2901 = vmatpush.bf16.msra.mxu0 %v5393_v28  ;;  %2914 = vmatpush.bf16.msra.mxu1 %v5521_v26  ;;  %v1938_v32 = vpop.f32.mrf.mxu2  ;;  %v1951_v33 = vpop.f32.mrf.mxu3  ;;  %v5397_v28 = vor.u32 %v6743_v23, %v5394_v25  ;;  %v5525_v26 = vor.u32 %v6775_v36, %v5522_v29  ;;  %v5632_v23 = vld [vmem:[%s10262_s1 + $0xa68] sm:$0xf]  ;;  %v6805_v36 = vld [vmem:[%s10262_s1 + $0xa74] sm:$0xf0] }
 0x1bf   :  { %v5760_v29 = vld [vmem:[%s10262_s1 + $0xb68] sm:$0xf] }
 0x1c1   :  { %2854 = vmatmul.bf16.vlgmr.msrb.gmra.mxu0 %v9004_v43  ;;  %2867 = vmatmul.bf16.vlgmr.msrb.gmra.mxu1 %v9006_v22 }
 0x1c2   :  { %2902 = vmatpush.bf16.msra.mxu0 %v5377_v34  ;;  %2915 = vmatpush.bf16.msra.mxu1 %v5505_v35 }
 0x1c6   :  { %2903 = vmatpush.bf16.msra.mxu0 %v5361_v14  ;;  %2916 = vmatpush.bf16.msra.mxu1 %v5489_v41 }
 0x1ca   :  { %2904 = vmatpush.bf16.msra.mxu0 %v5345_v44  ;;  %2917 = vmatpush.bf16.msra.mxu1 %v5473_v45  ;;  %v6735_v44 = vld [vmem:[%s10262_s1 + $0x84c] sm:$0xf]  ;;  %v5362_v45 = vld [vmem:[%s10262_s1 + $0x858] sm:$0xf0] }
 0x1cb   :  { %v5365_v56 = vor.u32 %v6735_v44, %v5362_v45  ;;  %v6815_v44 = vld [vmem:[%s10262_s1 + $0xacc] sm:$0xf]  ;;  %v5682_v45 = vld [vmem:[%s10262_s1 + $0xad8] sm:$0xf0] }
 0x1ce   :  { %2905 = vmatpush.bf16.msra.mxu0 %v5329_v57  ;;  %2918 = vmatpush.bf16.msra.mxu1 %v5457_v58  ;;  %v5792_v57 = vld [vmem:[%s10262_s1 + $0xba8] sm:$0xf]  ;;  %v6845_v58 = vld [vmem:[%s10262_s1 + $0xbb4] sm:$0xf0] }
 0x1cf   :  { %v5793_v3 = vor.u32 %v6845_v58, %v5792_v57  ;;  %v5669_v57 = vor.u32 %v6811_v51, %v5666_v52  ;;  %v6868_v51 = vld [vmem:[%s10262_s1 + $0xc6c] sm:$0xf0]  ;;  %v6136_v52 = vld [vmem:[%s10262_s1 + $0xd60] sm:$0xf] }
 0x1d1   :  { %2906 = vmatmul.bf16.vlgmr.msra.gmra.mxu0 %v9004_v43  ;;  %2919 = vmatmul.bf16.vlgmr.msra.gmra.mxu1 %v9006_v22 }
 0x1d2   :  { %2950 = vmatpush.bf16.msrb.mxu0 %v5445_v59  ;;  %2963 = vmatpush.bf16.msrb.mxu1 %v5573_v60  ;;  %v6731_v59 = vld [vmem:[%s10262_s1 + $0x82c] sm:$0xf]  ;;  %v5346_v60 = vld [vmem:[%s10262_s1 + $0x838] sm:$0xf0] }
 0x1d3   :  { %v5349_v11 = vor.u32 %v6731_v59, %v5346_v60  ;;  %v6807_v59 = vld [vmem:[%s10262_s1 + $0xa8c] sm:$0xf]  ;;  %v5650_v60 = vld [vmem:[%s10262_s1 + $0xa98] sm:$0xf0] }
 0x1d6   :  { %v1988_v17 = vpop.f32.mrf.mxu2  ;;  %v2001_v18 = vpop.f32.mrf.mxu3  ;;  %2951 = vmatpush.bf16.msrb.mxu0 %v5429_v4  ;;  %2964 = vmatpush.bf16.msrb.mxu1 %v5557_v10  ;;  %v5648_v4 = vld [vmem:[%s10262_s1 + $0xa88] sm:$0xf]  ;;  %v6809_v10 = vld [vmem:[%s10262_s1 + $0xa94] sm:$0xf0] }
 0x1d7   :  { %v1989_v24 = vadd.f32 %v1988_v17, %v1976_v13  ;;  %v6727_v13 = vld [vmem:[%s10262_s1 + $0x80c] sm:$0xf] }
 0x1d8   :  { %v6759_v17 = vld [vmem:[%s10262_s1 + $0x90c] sm:$0xf] }
 0x1d9   :  { %v2002_v6 = vadd.f32 %v2001_v18, %v1989_v24  ;;  %v5458_v18 = vld [vmem:[%s10262_s1 + $0x918] sm:$0xf0]  ;;  %v5333_v24 = vor.u32 %v6727_v13, %v5330_v16  ;;  %v6799_v13 = vld [vmem:[%s10262_s1 + $0xa4c] sm:$0xf] }
 0x1da   :  { %2952 = vmatpush.bf16.msrb.mxu0 %v5413_v19  ;;  %2965 = vmatpush.bf16.msrb.mxu1 %v5541_v21  ;;  %v5649_v19 = vor.u32 %v6809_v10, %v5648_v4  ;;  %v5777_v21 = vor.u32 %v6841_v12, %v5776_v9  ;;  %v5461_v25 = vor.u32 %v6759_v17, %v5458_v18  ;;  %v6803_v4 = vld [vmem:[%s10262_s1 + $0xa6c] sm:$0xf]  ;;  %v5634_v10 = vld [vmem:[%s10262_s1 + $0xa78] sm:$0xf0] }
 0x1db   :  { %v2006_v31 = vpack.c.bf16 %v2002_v6, %v1950_v37  ;;  %v6837_v37 = vld [vmem:[%s10262_s1 + $0xb74] sm:$0xf0]  ;;  %v5633_v6 = vor.u32 %v6805_v36, %v5632_v23  ;;  %v5637_v9 = vor.u32 %v6803_v4, %v5634_v10  ;;  %v5618_v16 = vld [vmem:[%s10262_s1 + $0xa58] sm:$0xf0]  ;;  %v6831_v17 = vld [vmem:[%s10262_s1 + $0xb4c] sm:$0xf] }
 0x1dc   :  { %v5746_v18 = vld [vmem:[%s10262_s1 + $0xb58] sm:$0xf0]  ;;  %v6795_v23 = vld [vmem:[%s10262_s1 + $0xa2c] sm:$0xf]  ;;  %v5976_v10 = vld [vmem:[%s10262_s1 + $0xc20] sm:$0xf] }
 0x1dd   :  { %v2144_v32 = vunpack.c.l.b16 %v2006_v31  ;;  %v2145_v33 = vunpack.c.h.b16 %v2006_v31  ;;  %v6833_v31 = vld [vmem:[%s10262_s1 + $0xb54] sm:$0xf0]  ;;  %v5730_v36 = vld [vmem:[%s10262_s1 + $0xb38] sm:$0xf0] }
 0x1de   :  { %v1990_v34 = vpop.f32.mrf.mxu2  ;;  %v2003_v35 = vpop.f32.mrf.mxu3  ;;  %2953 = vmatpush.bf16.msrb.mxu0 %v5397_v28  ;;  %2966 = vmatpush.bf16.msrb.mxu1 %v5525_v26  ;;  %v5761_v28 = vor.u32 %v6837_v37, %v5760_v29  ;;  %v5616_v26 = vld [vmem:[%s10262_s1 + $0xa48] sm:$0xf]  ;;  %v5745_v7 = vor.u32 %v6833_v31, %v5744_v30 }
 0x1df   :  { %v9218_v14 = vpack.c.b16 %v2144_v32, %v2144_v32  ;;  %v9220_v41 = vpack.c.b16 %v2145_v33, %v2145_v33  ;;  %v5617_v63 = vor.u32 %v6801_v27, %v5616_v26  ;;  %v5601_v32 = vor.u32 %v6797_v53, %v5600_v55  ;;  %v5712_v34 = vld [vmem:[%s10262_s1 + $0xb08] sm:$0xf]  ;;  %v6825_v35 = vld [vmem:[%s10262_s1 + $0xb14] sm:$0xf0]  ;;  %v6823_v26 = vld [vmem:[%s10262_s1 + $0xb0c] sm:$0xf] }
 0x1e0   :  { %v5729_v33 = vor.u32 %v6829_v2, %v5728_v54  ;;  %v5714_v27 = vld [vmem:[%s10262_s1 + $0xb18] sm:$0xf0]  ;;  %v6200_v55 = vld [vmem:[%s10262_s1 + $0xde0] sm:$0xf]  ;;  %v6916_v54 = vld [vmem:[%s10262_s1 + $0xdec] sm:$0xf0] }
 0x1e1   :  { %2828 = vmatmul.bf16.vlgmr.msra.gmra.mxu2 %v9218_v14  ;;  %2841 = vmatmul.bf16.vlgmr.msra.gmra.mxu3 %v9220_v41  ;;  %v5717_v31 = vor.u32 %v6823_v26, %v5714_v27  ;;  %v6201_v2 = vor.u32 %v6916_v54, %v6200_v55  ;;  %v6878_v27 = vld [vmem:[%s10262_s1 + $0xcc4] sm:$0xf]  ;;  %v6042_v54 = vld [vmem:[%s10262_s1 + $0xcb0] sm:$0xf0] }
 0x1e2   :  { %2924 = vmatpush.bf16.msra.mxu2 %v5697_v38  ;;  %2937 = vmatpush.bf16.msra.mxu3 %v5825_v39  ;;  %v6819_v38 = vld [vmem:[%s10262_s1 + $0xaec] sm:$0xf]  ;;  %v5698_v39 = vld [vmem:[%s10262_s1 + $0xaf8] sm:$0xf0] }
 0x1e3   :  { %2954 = vmatpush.bf16.msrb.mxu0 %v5381_v42  ;;  %2967 = vmatpush.bf16.msrb.mxu1 %v5509_v15  ;;  %v5713_v15 = vor.u32 %v6825_v35, %v5712_v34  ;;  %v5701_v1 = vor.u32 %v6819_v38, %v5698_v39  ;;  %v6040_v34 = vld [vmem:[%s10262_s1 + $0xca0] sm:$0xf]  ;;  %v6876_v35 = vld [vmem:[%s10262_s1 + $0xcac] sm:$0xf0] }
 0x1e4   :  { %v6168_v38 = vld [vmem:[%s10262_s1 + $0xda0] sm:$0xf]  ;;  %v6041_v39 = vor.u32 %v6876_v35, %v6040_v34  ;;  %v6026_v34 = vld [vmem:[%s10262_s1 + $0xc90] sm:$0xf0]  ;;  %v6902_v35 = vld [vmem:[%s10262_s1 + $0xd84] sm:$0xf] }
 0x1e6   :  { %2925 = vmatpush.bf16.msra.mxu2 %v5681_v49  ;;  %2938 = vmatpush.bf16.msra.mxu3 %v5809_v50  ;;  %v5685_v49 = vor.u32 %v6815_v44, %v5682_v45  ;;  %v5813_v50 = vor.u32 %v6847_v46, %v5810_v47 }
 0x1e7   :  { %2955 = vmatpush.bf16.msrb.mxu0 %v5365_v56  ;;  %2968 = vmatpush.bf16.msrb.mxu1 %v5493_v48  ;;  %v6843_v56 = vld [vmem:[%s10262_s1 + $0xbac] sm:$0xf]  ;;  %v5794_v48 = vld [vmem:[%s10262_s1 + $0xbb8] sm:$0xf0] }
 0x1e8   :  { %v5797_v58 = vor.u32 %v6843_v56, %v5794_v48  ;;  %v6900_v48 = vld [vmem:[%s10262_s1 + $0xd6c] sm:$0xf0] }
 0x1ea   :  { %2926 = vmatpush.bf16.msra.mxu2 %v5665_v0  ;;  %2939 = vmatpush.bf16.msra.mxu3 %v5793_v3  ;;  %v5653_v0 = vor.u32 %v6807_v59, %v5650_v60  ;;  %v5781_v3 = vor.u32 %v6839_v61, %v5778_v62  ;;  %v6137_v59 = vor.u32 %v6900_v48, %v6136_v52  ;;  %v6120_v60 = vld [vmem:[%s10262_s1 + $0xd40] sm:$0xf]  ;;  %v6896_v61 = vld [vmem:[%s10262_s1 + $0xd4c] sm:$0xf0]  ;;  %v6138_v48 = vld [vmem:[%s10262_s1 + $0xd70] sm:$0xf0] }
 0x1eb   :  { %2956 = vmatpush.bf16.msrb.mxu0 %v5349_v11  ;;  %2969 = vmatpush.bf16.msrb.mxu1 %v5477_v8  ;;  %v6835_v11 = vld [vmem:[%s10262_s1 + $0xb6c] sm:$0xf]  ;;  %v5762_v8 = vld [vmem:[%s10262_s1 + $0xb78] sm:$0xf0] }
 0x1ec   :  { %v5765_v12 = vor.u32 %v6835_v11, %v5762_v8  ;;  %v6860_v11 = vld [vmem:[%s10262_s1 + $0xc2c] sm:$0xf0]  ;;  %v6104_v8 = vld [vmem:[%s10262_s1 + $0xd20] sm:$0xf] }
 0x1ee   :  { %2927 = vmatpush.bf16.msra.mxu2 %v5649_v19  ;;  %2940 = vmatpush.bf16.msra.mxu3 %v5777_v21  ;;  %v5621_v19 = vor.u32 %v6799_v13, %v5618_v16  ;;  %v5749_v21 = vor.u32 %v6831_v17, %v5746_v18  ;;  %v5960_v13 = vld [vmem:[%s10262_s1 + $0xc00] sm:$0xf]  ;;  %v6856_v16 = vld [vmem:[%s10262_s1 + $0xc0c] sm:$0xf0] }
 0x1ef   :  { %2957 = vmatpush.bf16.msrb.mxu0 %v5333_v24  ;;  %2970 = vmatpush.bf16.msrb.mxu1 %v5461_v25  ;;  %v5602_v24 = vld [vmem:[%s10262_s1 + $0xa38] sm:$0xf0]  ;;  %v6827_v25 = vld [vmem:[%s10262_s1 + $0xb2c] sm:$0xf]  ;;  %v6088_v18 = vld [vmem:[%s10262_s1 + $0xd00] sm:$0xf] }
 0x1f0   :  { %v5605_v29 = vor.u32 %v6795_v23, %v5602_v24  ;;  %v5733_v37 = vor.u32 %v6827_v25, %v5730_v36  ;;  %v6074_v23 = vld [vmem:[%s10262_s1 + $0xcf0] sm:$0xf0]  ;;  %v6914_v24 = vld [vmem:[%s10262_s1 + $0xde4] sm:$0xf]  ;;  %v5961_v36 = vor.u32 %v6856_v16, %v5960_v13  ;;  %v6940_v13 = vld [vmem:[%s10262_s1 + $0xeac] sm:$0xf0] }
 0x1f1   :  { %2880 = vmatmul.bf16.vlgmr.msrb.gmra.mxu2 %v9218_v14  ;;  %2893 = vmatmul.bf16.vlgmr.msrb.gmra.mxu3 %v9220_v41  ;;  %v6202_v25 = vld [vmem:[%s10262_s1 + $0xdf0] sm:$0xf0]  ;;  %v6424_v16 = vld [vmem:[%s10262_s1 + $0xfa0] sm:$0xf] }
 0x1f2   :  { %2928 = vmatpush.bf16.msra.mxu2 %v5633_v6  ;;  %2941 = vmatpush.bf16.msra.mxu3 %v5761_v28  ;;  %v6791_v6 = vld [vmem:[%s10262_s1 + $0xa0c] sm:$0xf]  ;;  %v5586_v28 = vld [vmem:[%s10262_s1 + $0xa18] sm:$0xf0] }
 0x1f3   :  { %2958 = vmatmul.bf16.vlgmr.msrb.gmra.mxu0 %v9004_v43  ;;  %2971 = vmatmul.bf16.vlgmr.msrb.gmra.mxu1 %v9006_v22  ;;  %v5584_v43 = vld [vmem:[%s10262_s1 + $0xa08] sm:$0xf]  ;;  %v6793_v22 = vld [vmem:[%s10262_s1 + $0xa14] sm:$0xf0]  ;;  %v5589_v30 = vor.u32 %v6791_v6, %v5586_v28  ;;  %v6205_v6 = vor.u32 %v6914_v24, %v6202_v25  ;;  %v5978_v24 = vld [vmem:[%s10262_s1 + $0xc30] sm:$0xf0] }
 0x1f4   :  { %v5585_v42 = vor.u32 %v6793_v22, %v5584_v43  ;;  %3804 = vmatpush.bf16.msra.mxu1 %v6201_v2  ;;  %v6170_v2 = vld [vmem:[%s10262_s1 + $0xdb0] sm:$0xf0] }
 0x1f6   :  { %2929 = vmatpush.bf16.msra.mxu2 %v5617_v63  ;;  %2942 = vmatpush.bf16.msra.mxu3 %v5745_v7  ;;  %v6072_v63 = vld [vmem:[%s10262_s1 + $0xce0] sm:$0xf]  ;;  %v6884_v7 = vld [vmem:[%s10262_s1 + $0xcec] sm:$0xf0] }
 0x1f7   :  { %v6073_v53 = vor.u32 %v6884_v7, %v6072_v63  ;;  %v6186_v7 = vld [vmem:[%s10262_s1 + $0xdd0] sm:$0xf0] }
 0x1f9   :  { %3791 = vmatpush.bf16.msra.mxu0 %v6073_v53  ;;  %v6874_v53 = vld [vmem:[%s10262_s1 + $0xca4] sm:$0xf] }
 0x1fa   :  { %2930 = vmatpush.bf16.msra.mxu2 %v5601_v32  ;;  %2943 = vmatpush.bf16.msra.mxu3 %v5729_v33  ;;  %v6184_v32 = vld [vmem:[%s10262_s1 + $0xdc0] sm:$0xf]  ;;  %v6912_v33 = vld [vmem:[%s10262_s1 + $0xdcc] sm:$0xf0] }
 0x1fb   :  { %v6185_v22 = vor.u32 %v6912_v33, %v6184_v32 }
 0x1fd   :  { %3805 = vmatpush.bf16.msra.mxu1 %v6185_v22  ;;  %v6870_v22 = vld [vmem:[%s10262_s1 + $0xc84] sm:$0xf] }
 0x1fe   :  { %2931 = vmatpush.bf16.msra.mxu2 %v5585_v42  ;;  %2944 = vmatpush.bf16.msra.mxu3 %v5713_v15  ;;  %v6872_v42 = vld [vmem:[%s10262_s1 + $0xc8c] sm:$0xf0]  ;;  %v6169_v15 = vor.u32 %v6908_v40, %v6168_v38  ;;  %v6029_v38 = vor.u32 %v6870_v22, %v6026_v34  ;;  %v6392_v22 = vld [vmem:[%s10262_s1 + $0xf60] sm:$0xf] }
 0x1ff   :  { %v6025_v44 = vor.u32 %v6872_v42, %v6024_v20  ;;  %v6328_v20 = vld [vmem:[%s10262_s1 + $0xee0] sm:$0xf]  ;;  %v6948_v42 = vld [vmem:[%s10262_s1 + $0xeec] sm:$0xf0] }
 0x201   :  { %2932 = vmatmul.bf16.vlgmr.msra.gmra.mxu2 %v9218_v14  ;;  %2945 = vmatmul.bf16.vlgmr.msra.gmra.mxu3 %v9220_v41 }
 0x202   :  { %2976 = vmatpush.bf16.msrb.mxu2 %v5701_v1  ;;  %2989 = vmatpush.bf16.msrb.mxu3 %v5829_v5  ;;  %v6152_v1 = vld [vmem:[%s10262_s1 + $0xd80] sm:$0xf]  ;;  %v6904_v5 = vld [vmem:[%s10262_s1 + $0xd8c] sm:$0xf0] }
 0x203   :  { %3806 = vmatpush.bf16.msra.mxu1 %v6169_v15  ;;  %v6153_v45 = vor.u32 %v6904_v5, %v6152_v1  ;;  %v6456_v15 = vld [vmem:[%s10262_s1 + $0xfe0] sm:$0xf] }
 0x206   :  { %2977 = vmatpush.bf16.msrb.mxu2 %v5685_v49  ;;  %2990 = vmatpush.bf16.msrb.mxu3 %v5813_v50  ;;  %v6008_v50 = vld [vmem:[%s10262_s1 + $0xc60] sm:$0xf] }
 0x207   :  { %3807 = vmatpush.bf16.msra.mxu1 %v6153_v45  ;;  %v6009_v56 = vor.u32 %v6868_v51, %v6008_v50  ;;  %v6980_v45 = vld [vmem:[%s10262_s1 + $0xfec] sm:$0xf0] }
 0x208   :  { %v6457_v51 = vor.u32 %v6980_v45, %v6456_v15  ;;  %v6376_v15 = vld [vmem:[%s10262_s1 + $0xf40] sm:$0xf] }
 0x209   :  { %v6232_v45 = vld [vmem:[%s10262_s1 + $0xe20] sm:$0xf] }
 0x20a   :  { %2978 = vmatpush.bf16.msrb.mxu2 %v5669_v57  ;;  %2991 = vmatpush.bf16.msrb.mxu3 %v5797_v58  ;;  %v5992_v57 = vld [vmem:[%s10262_s1 + $0xc40] sm:$0xf]  ;;  %v6864_v58 = vld [vmem:[%s10262_s1 + $0xc4c] sm:$0xf0] }
 0x20b   :  { %v5993_v62 = vor.u32 %v6864_v58, %v5992_v57  ;;  %3808 = vmatpush.bf16.msra.mxu1 %v6137_v59  ;;  %v6312_v58 = vld [vmem:[%s10262_s1 + $0xec0] sm:$0xf]  ;;  %v6944_v59 = vld [vmem:[%s10262_s1 + $0xecc] sm:$0xf0] }
 0x20e   :  { %2979 = vmatpush.bf16.msrb.mxu2 %v5653_v0  ;;  %2992 = vmatpush.bf16.msrb.mxu3 %v5781_v3  ;;  %v6121_v0 = vor.u32 %v6896_v61, %v6120_v60  ;;  %v6440_v60 = vld [vmem:[%s10262_s1 + $0xfc0] sm:$0xf]  ;;  %v6313_v61 = vor.u32 %v6944_v59, %v6312_v58  ;;  %v6920_v59 = vld [vmem:[%s10262_s1 + $0xe0c] sm:$0xf0] }
 0x20f   :  { %v6216_v58 = vld [vmem:[%s10262_s1 + $0xe00] sm:$0xf] }
 0x210   :  { %3809 = vmatpush.bf16.msra.mxu1 %v6121_v0  ;;  %v6862_v0 = vld [vmem:[%s10262_s1 + $0xc44] sm:$0xf] }
 0x212   :  { %2980 = vmatpush.bf16.msrb.mxu2 %v5637_v9  ;;  %2993 = vmatpush.bf16.msrb.mxu3 %v5765_v12  ;;  %v5977_v9 = vor.u32 %v6860_v11, %v5976_v10  ;;  %v6892_v12 = vld [vmem:[%s10262_s1 + $0xd2c] sm:$0xf0]  ;;  %v6894_v11 = vld [vmem:[%s10262_s1 + $0xd44] sm:$0xf] }
 0x213   :  { %v6105_v17 = vor.u32 %v6892_v12, %v6104_v8  ;;  %v6122_v8 = vld [vmem:[%s10262_s1 + $0xd50] sm:$0xf0]  ;;  %v6296_v12 = vld [vmem:[%s10262_s1 + $0xea0] sm:$0xf] }
 0x215   :  { %3810 = vmatpush.bf16.msra.mxu1 %v6105_v17 }
 0x216   :  { %2981 = vmatpush.bf16.msrb.mxu2 %v5621_v19  ;;  %2994 = vmatpush.bf16.msrb.mxu3 %v5749_v21  ;;  %v6888_v19 = vld [vmem:[%s10262_s1 + $0xd0c] sm:$0xf0]  ;;  %v6882_v21 = vld [vmem:[%s10262_s1 + $0xce4] sm:$0xf] }
 0x21a   :  { %2982 = vmatpush.bf16.msrb.mxu2 %v5605_v29  ;;  %2995 = vmatpush.bf16.msrb.mxu3 %v5733_v37  ;;  %v6089_v29 = vor.u32 %v6888_v19, %v6088_v18  ;;  %v6077_v37 = vor.u32 %v6882_v21, %v6074_v23  ;;  %v6297_v19 = vor.u32 %v6940_v13, %v6296_v12  ;;  %v6972_v21 = vld [vmem:[%s10262_s1 + $0xfac] sm:$0xf0]  ;;  %v6858_v23 = vld [vmem:[%s10262_s1 + $0xc24] sm:$0xf] }
 0x21b   :  { %v6425_v25 = vor.u32 %v6972_v21, %v6424_v16  ;;  %v6942_v16 = vld [vmem:[%s10262_s1 + $0xec4] sm:$0xf]  ;;  %v6442_v21 = vld [vmem:[%s10262_s1 + $0xfd0] sm:$0xf0] }
 0x21c   :  { %3811 = vmatpush.bf16.msra.mxu1 %v6089_v29  ;;  %v6890_v29 = vld [vmem:[%s10262_s1 + $0xd24] sm:$0xf] }
 0x21e   :  { %2983 = vmatpush.bf16.msrb.mxu2 %v5589_v30  ;;  %2996 = vmatpush.bf16.msrb.mxu3 %v5717_v31  ;;  %v6058_v30 = vld [vmem:[%s10262_s1 + $0xcd0] sm:$0xf0]  ;;  %v6910_v31 = vld [vmem:[%s10262_s1 + $0xdc4] sm:$0xf] }
 0x21f   :  { %v6061_v63 = vor.u32 %v6878_v27, %v6058_v30  ;;  %v6189_v55 = vor.u32 %v6910_v31, %v6186_v7  ;;  %v6280_v27 = vld [vmem:[%s10262_s1 + $0xe80] sm:$0xf]  ;;  %v6936_v30 = vld [vmem:[%s10262_s1 + $0xe8c] sm:$0xf0] }
 0x220   :  { %3856 = vmatpush.bf16.msrb.mxu1 %v6205_v6  ;;  %v6408_v31 = vld [vmem:[%s10262_s1 + $0xf80] sm:$0xf]  ;;  %v6968_v7 = vld [vmem:[%s10262_s1 + $0xf8c] sm:$0xf0] }
 0x221   :  { %2984 = vmatmul.bf16.vlgmr.msrb.gmra.mxu2 %v9218_v14  ;;  %2997 = vmatmul.bf16.vlgmr.msrb.gmra.mxu3 %v9220_v41  ;;  %v6056_v14 = vld [vmem:[%s10262_s1 + $0xcc0] sm:$0xf]  ;;  %v6880_v41 = vld [vmem:[%s10262_s1 + $0xccc] sm:$0xf0] }
 0x222   :  { %v6057_v43 = vor.u32 %v6880_v41, %v6056_v14  ;;  %v6906_v14 = vld [vmem:[%s10262_s1 + $0xda4] sm:$0xf]  ;;  %v6045_v41 = vor.u32 %v6874_v53, %v6042_v54  ;;  %3830 = vmatpush.bf16.msra.mxu3 %v6457_v51  ;;  %v5962_v53 = vld [vmem:[%s10262_s1 + $0xc10] sm:$0xf0]  ;;  %v6409_v54 = vor.u32 %v6968_v7, %v6408_v31  ;;  %v6080_v7 = vld [vmem:[%s10262_s1 + $0xce8] sm:$0xf] }
 0x224   :  { %3792 = vmatpush.bf16.msra.mxu0 %v6057_v43  ;;  %3857 = vmatpush.bf16.msrb.mxu1 %v6189_v55  ;;  %v6173_v43 = vor.u32 %v6906_v14, %v6170_v2  ;;  %v6854_v55 = vld [vmem:[%s10262_s1 + $0xc04] sm:$0xf]  ;;  %v6090_v2 = vld [vmem:[%s10262_s1 + $0xd10] sm:$0xf0] }
 0x225   :  { %v5965_v14 = vor.u32 %v6854_v55, %v5962_v53  ;;  %v6885_v55 = vld [vmem:[%s10262_s1 + $0xcf4] sm:$0xf0] }
 0x228   :  { %3793 = vmatpush.bf16.msra.mxu0 %v6041_v39  ;;  %3858 = vmatpush.bf16.msrb.mxu1 %v6173_v43  ;;  %v6154_v39 = vld [vmem:[%s10262_s1 + $0xd90] sm:$0xf0]  ;;  %v6932_v43 = vld [vmem:[%s10262_s1 + $0xe6c] sm:$0xf0] }
 0x229   :  { %v6157_v40 = vor.u32 %v6902_v35, %v6154_v39  ;;  %v6964_v35 = vld [vmem:[%s10262_s1 + $0xf6c] sm:$0xf0] }
 0x22c   :  { %3794 = vmatpush.bf16.msra.mxu0 %v6025_v44  ;;  %3859 = vmatpush.bf16.msrb.mxu1 %v6157_v40  ;;  %v6329_v44 = vor.u32 %v6948_v42, %v6328_v20  ;;  %v6248_v20 = vld [vmem:[%s10262_s1 + $0xe40] sm:$0xf]  ;;  %v6928_v42 = vld [vmem:[%s10262_s1 + $0xe4c] sm:$0xf0] }
 0x22e   :  { %v2803_v46 = vpop.f32.mrf.mxu0  ;;  %v2816_v47 = vpop.f32.mrf.mxu1  ;;  %3817 = vmatpush.bf16.msra.mxu2 %v6329_v44 }
 0x22f   :  { %v9490_v49 = vadd.f32 %v2816_v47, %v2803_v46  ;;  %v6866_v46 = vld [vmem:[%s10262_s1 + $0xc64] sm:$0xf]  ;;  %v6010_v47 = vld [vmem:[%s10262_s1 + $0xc70] sm:$0xf0] }
 0x230   :  { %3795 = vmatpush.bf16.msra.mxu0 %v6009_v56  ;;  %v6013_v52 = vor.u32 %v6866_v46, %v6010_v47  ;;  %v6898_v56 = vld [vmem:[%s10262_s1 + $0xd64] sm:$0xf]  ;;  %v6924_v46 = vld [vmem:[%s10262_s1 + $0xe2c] sm:$0xf0]  ;;  %v6360_v47 = vld [vmem:[%s10262_s1 + $0xf20] sm:$0xf] }
 0x231   :  { %v6141_v57 = vor.u32 %v6898_v56, %v6138_v48  ;;  %v6233_v51 = vor.u32 %v6924_v46, %v6232_v45  ;;  %v6913_v45 = vld [vmem:[%s10262_s1 + $0xdd4] sm:$0xf0] }
 0x232   :  { %3818 = vmatpush.bf16.msra.mxu2 %v6313_v61  ;;  %v6217_v61 = vor.u32 %v6920_v59, %v6216_v58  ;;  %v6048_v58 = vld [vmem:[%s10262_s1 + $0xca8] sm:$0xf] }
 0x233   :  { %3860 = vmatpush.bf16.msrb.mxu1 %v6141_v57 }
 0x234   :  { %3796 = vmatpush.bf16.msra.mxu0 %v5993_v62  ;;  %v6976_v62 = vld [vmem:[%s10262_s1 + $0xfcc] sm:$0xf0] }
 0x236   :  { %v2805_v3 = vpop.f32.mrf.mxu0  ;;  %v2818_v4 = vpop.f32.mrf.mxu1  ;;  %3819 = vmatpush.bf16.msra.mxu2 %v6297_v19 }
 0x237   :  { %v5994_v3 = vld [vmem:[%s10262_s1 + $0xc50] sm:$0xf0]  ;;  %v6441_v4 = vor.u32 %v6976_v62, %v6440_v60  ;;  %v6344_v60 = vld [vmem:[%s10262_s1 + $0xf00] sm:$0xf]  ;;  %v6952_v62 = vld [vmem:[%s10262_s1 + $0xf0c] sm:$0xf0] }
 0x238   :  { %3797 = vmatpush.bf16.msra.mxu0 %v5977_v9  ;;  %v5997_v10 = vor.u32 %v6862_v0, %v5994_v3  ;;  %v6125_v9 = vor.u32 %v6894_v11, %v6122_v8  ;;  %v6946_v0 = vld [vmem:[%s10262_s1 + $0xee4] sm:$0xf]  ;;  %v6330_v3 = vld [vmem:[%s10262_s1 + $0xef0] sm:$0xf0] }
 0x239   :  { %3831 = vmatpush.bf16.msra.mxu3 %v6441_v4  ;;  %v6345_v4 = vor.u32 %v6952_v62, %v6344_v60  ;;  %v6978_v11 = vld [vmem:[%s10262_s1 + $0xfe4] sm:$0xf]  ;;  %v6458_v8 = vld [vmem:[%s10262_s1 + $0xff0] sm:$0xf0]  ;;  %v6877_v62 = vld [vmem:[%s10262_s1 + $0xcb4] sm:$0xf0] }
 0x23a   :  { %3861 = vmatpush.bf16.msrb.mxu1 %v6125_v9  ;;  %v6461_v9 = vor.u32 %v6978_v11, %v6458_v8  ;;  %v6958_v11 = vld [vmem:[%s10262_s1 + $0xf44] sm:$0xf] }
 0x23c   :  { %3798 = vmatpush.bf16.msra.mxu0 %v5961_v36  ;;  %v5981_v36 = vor.u32 %v6858_v23, %v5978_v24 }
 0x23d   :  { %3832 = vmatpush.bf16.msra.mxu3 %v6425_v25 }
 0x23e   :  { %v9552_v28 = vpop.f32.mrf.mxu0  ;;  %v9554_v26 = vpop.f32.mrf.mxu1 }
 0x23f   :  { %v2869_v24 = vadd.f32 %v9554_v26, %v9552_v28 }
 0x240   :  { %3843 = vmatpush.bf16.msrb.mxu0 %v6077_v37  ;;  %v6106_v37 = vld [vmem:[%s10262_s1 + $0xd30] sm:$0xf0] }
 0x241   :  { %v6109_v6 = vor.u32 %v6890_v29, %v6106_v37  ;;  %3833 = vmatpush.bf16.msra.mxu3 %v6409_v54  ;;  %v6938_v37 = vld [vmem:[%s10262_s1 + $0xea4] sm:$0xf] }
 0x243   :  { %3862 = vmatpush.bf16.msrb.mxu1 %v6109_v6  ;;  %v6298_v6 = vld [vmem:[%s10262_s1 + $0xeb0] sm:$0xf0] }
 0x244   :  { %3844 = vmatpush.bf16.msrb.mxu0 %v6061_v63  ;;  %v6281_v63 = vor.u32 %v6936_v30, %v6280_v27  ;;  %v6970_v27 = vld [vmem:[%s10262_s1 + $0xfa4] sm:$0xf]  ;;  %v6301_v28 = vor.u32 %v6938_v37, %v6298_v6  ;;  %v6234_v37 = vld [vmem:[%s10262_s1 + $0xe30] sm:$0xf0] }
 0x245   :  { %v6954_v6 = vld [vmem:[%s10262_s1 + $0xf24] sm:$0xf] }
 0x246   :  { %v2857_v32 = vpop.f32.mrf.mxu0  ;;  %v2870_v33 = vpop.f32.mrf.mxu1  ;;  %3820 = vmatpush.bf16.msra.mxu2 %v6281_v63 }
 0x247   :  { %v6264_v33 = vld [vmem:[%s10262_s1 + $0xe60] sm:$0xf] }
 0x248   :  { %3845 = vmatpush.bf16.msrb.mxu0 %v6045_v41  ;;  %v6886_v41 = vld [vmem:[%s10262_s1 + $0xd04] sm:$0xf]  ;;  %v6265_v34 = vor.u32 %v6932_v43, %v6264_v33  ;;  %v6208_v33 = vld [vmem:[%s10262_s1 + $0xde8] sm:$0xf]  ;;  %v6917_v43 = vld [vmem:[%s10262_s1 + $0xdf4] sm:$0xf0] }
 0x249   :  { %v6093_v32 = vor.u32 %v6886_v41, %v6090_v2  ;;  %v6282_v41 = vld [vmem:[%s10262_s1 + $0xe90] sm:$0xf0]  ;;  %v6966_v2 = vld [vmem:[%s10262_s1 + $0xf84] sm:$0xf] }
 0x24a   :  { %3821 = vmatpush.bf16.msra.mxu2 %v6265_v34  ;;  %v6410_v34 = vld [vmem:[%s10262_s1 + $0xf90] sm:$0xf0] }
 0x24b   :  { %3863 = vmatpush.bf16.msrb.mxu1 %v6093_v32 }
 0x24c   :  { %3846 = vmatpush.bf16.msrb.mxu0 %v6029_v38  ;;  %v6393_v38 = vor.u32 %v6964_v35, %v6392_v22  ;;  %v6413_v35 = vor.u32 %v6966_v2, %v6410_v34  ;;  %v6346_v2 = vld [vmem:[%s10262_s1 + $0xf10] sm:$0xf0] }
 0x24e   :  { %v2907_v1 = vpop.f32.mrf.mxu0  ;;  %v2920_v5 = vpop.f32.mrf.mxu1  ;;  %3834 = vmatpush.bf16.msra.mxu3 %v6393_v38 }
 0x24f   :  { %v9610_v50 = vadd.f32 %v2920_v5, %v2907_v1  ;;  %v6249_v1 = vor.u32 %v6928_v42, %v6248_v20  ;;  %v6960_v5 = vld [vmem:[%s10262_s1 + $0xf4c] sm:$0xf0] }
 0x250   :  { %3847 = vmatpush.bf16.msrb.mxu0 %v6013_v52  ;;  %v6377_v44 = vor.u32 %v6960_v5, %v6376_v15  ;;  %v6956_v52 = vld [vmem:[%s10262_s1 + $0xf2c] sm:$0xf0]  ;;  %v6081_v15 = vor.u32 %v6885_v55, %v6080_v7  ;;  %v6881_v5 = vld [vmem:[%s10262_s1 + $0xcd4] sm:$0xf0]  ;;  %v6144_v7 = vld [vmem:[%s10262_s1 + $0xd68] sm:$0xf] }
 0x251   :  { %3822 = vmatpush.bf16.msra.mxu2 %v6249_v1  ;;  %v6361_v56 = vor.u32 %v6956_v52, %v6360_v47  ;;  %v6209_v1 = vor.u32 %v6917_v43, %v6208_v33  ;;  %v6266_v52 = vld [vmem:[%s10262_s1 + $0xe70] sm:$0xf0]  ;;  %v6901_v55 = vld [vmem:[%s10262_s1 + $0xd74] sm:$0xf0] }
 0x252   :  { %3835 = vmatpush.bf16.msra.mxu3 %v6377_v44  ;;  %v6192_v44 = vld [vmem:[%s10262_s1 + $0xdc8] sm:$0xf]  ;;  %v6145_v34 = vor.u32 %v6901_v55, %v6144_v7  ;;  %v6949_v55 = vld [vmem:[%s10262_s1 + $0xef4] sm:$0xf0] }
 0x253   :  { %v6336_v7 = vld [vmem:[%s10262_s1 + $0xee8] sm:$0xf] }
 0x254   :  { %3848 = vmatpush.bf16.msrb.mxu0 %v5997_v10  ;;  %v6333_v10 = vor.u32 %v6946_v0, %v6330_v3  ;;  %v6176_v0 = vld [vmem:[%s10262_s1 + $0xda8] sm:$0xf]  ;;  %v6909_v3 = vld [vmem:[%s10262_s1 + $0xdb4] sm:$0xf0] }
 0x255   :  { %3823 = vmatpush.bf16.msra.mxu2 %v6233_v51  ;;  %v6930_v51 = vld [vmem:[%s10262_s1 + $0xe64] sm:$0xf] }
 0x256   :  { %v2909_v17 = vpop.f32.mrf.mxu0  ;;  %v2922_v18 = vpop.f32.mrf.mxu1  ;;  %3836 = vmatpush.bf16.msra.mxu3 %v6361_v56  ;;  %v6962_v56 = vld [vmem:[%s10262_s1 + $0xf64] sm:$0xf] }
 0x257   :  { %v6314_v17 = vld [vmem:[%s10262_s1 + $0xed0] sm:$0xf0]  ;;  %v6974_v18 = vld [vmem:[%s10262_s1 + $0xfc4] sm:$0xf] }
 0x258   :  { %3849 = vmatpush.bf16.msrb.mxu0 %v5981_v36  ;;  %v6317_v19 = vor.u32 %v6942_v16, %v6314_v17  ;;  %v6445_v23 = vor.u32 %v6974_v18, %v6442_v21  ;;  %v6032_v16 = vld [vmem:[%s10262_s1 + $0xc88] sm:$0xf]  ;;  %v6049_v21 = vor.u32 %v6877_v62, %v6048_v58  ;;  %v6883_v58 = vld [vmem:[%s10262_s1 + $0xcec] sm:$0xf] }
 0x259   :  { %3824 = vmatpush.bf16.msra.mxu2 %v6217_v61  ;;  %v6193_v61 = vor.u32 %v6913_v45, %v6192_v44  ;;  %v6893_v44 = vld [vmem:[%s10262_s1 + $0xd34] sm:$0xf0] }
 0x25a   :  { %3837 = vmatpush.bf16.msra.mxu3 %v6345_v4  ;;  %v6926_v4 = vld [vmem:[%s10262_s1 + $0xe44] sm:$0xf] }
 0x25c   :  { %3850 = vmatpush.bf16.msrb.mxu0 %v5965_v14  ;;  %v6934_v14 = vld [vmem:[%s10262_s1 + $0xe84] sm:$0xf] }
 0x25d   :  { %3869 = vmatpush.bf16.msrb.mxu2 %v6333_v10  ;;  %v6285_v22 = vor.u32 %v6934_v14, %v6282_v41  ;;  %v6250_v10 = vld [vmem:[%s10262_s1 + $0xe50] sm:$0xf0]  ;;  %v6950_v14 = vld [vmem:[%s10262_s1 + $0xf04] sm:$0xf] }
 0x25e   :  { %3882 = vmatpush.bf16.msrb.mxu3 %v6461_v9  ;;  %v6253_v8 = vor.u32 %v6926_v4, %v6250_v10  ;;  %v6378_v9 = vld [vmem:[%s10262_s1 + $0xf50] sm:$0xf0]  ;;  %v6879_v10 = vld [vmem:[%s10262_s1 + $0xccc] sm:$0xf] }
 0x25f   :  { %v6381_v17 = vor.u32 %v6958_v11, %v6378_v9  ;;  %v6066_v11 = vld [vmem:[%s10262_s1 + $0xcd8] sm:$0xf0] }
 0x260   :  { %v6194_v9 = vld [vmem:[%s10262_s1 + $0xdd8] sm:$0xf0] }
 0x261   :  { %3870 = vmatpush.bf16.msrb.mxu2 %v6317_v19 }
 0x262   :  { %3883 = vmatpush.bf16.msrb.mxu3 %v6445_v23  ;;  %v6177_v23 = vor.u32 %v6909_v3, %v6176_v0 }
 0x264   :  { %v2829_v39 = vpop.f32.mrf.mxu2  ;;  %v2842_v40 = vpop.f32.mrf.mxu3 }
 0x265   :  { %v2830_v25 = vadd.f32 %v2829_v39, %v9490_v49  ;;  %v6426_v49 = vld [vmem:[%s10262_s1 + $0xfb0] sm:$0xf0]  ;;  %3871 = vmatpush.bf16.msrb.mxu2 %v6301_v28  ;;  %v6016_v28 = vld [vmem:[%s10262_s1 + $0xc68] sm:$0xf] }
 0x266   :  { %v6429_v26 = vor.u32 %v6970_v27, %v6426_v49 }
 0x267   :  { %v2843_v31 = vadd.f32 %v2842_v40, %v2830_v25  ;;  %v6064_v40 = vld [vmem:[%s10262_s1 + $0xcc8] sm:$0xf] }
 0x268   :  { %3884 = vmatpush.bf16.msrb.mxu3 %v6429_v26  ;;  %v6065_v60 = vor.u32 %v6881_v5, %v6064_v40  ;;  %v6160_v25 = vld [vmem:[%s10262_s1 + $0xd88] sm:$0xf]  ;;  %v6897_v40 = vld [vmem:[%s10262_s1 + $0xd54] sm:$0xf0] }
 0x269   :  { %3872 = vmatpush.bf16.msrb.mxu2 %v6285_v22  ;;  %v6112_v5 = vld [vmem:[%s10262_s1 + $0xd28] sm:$0xf] }
 0x26c   :  { %v2831_v48 = vpop.f32.mrf.mxu2  ;;  %v2844_v57 = vpop.f32.mrf.mxu3  ;;  %3885 = vmatpush.bf16.msrb.mxu3 %v6413_v35  ;;  %v6000_v35 = vld [vmem:[%s10262_s1 + $0xc48] sm:$0xf] }
 0x26d   :  { %v6269_v48 = vor.u32 %v6930_v51, %v6266_v52  ;;  %v6394_v57 = vld [vmem:[%s10262_s1 + $0xf70] sm:$0xf0]  ;;  %v6113_v51 = vor.u32 %v6893_v44, %v6112_v5  ;;  %v5968_v52 = vld [vmem:[%s10262_s1 + $0xc08] sm:$0xf]  ;;  %v6977_v44 = vld [vmem:[%s10262_s1 + $0xfd4] sm:$0xf0] }
 0x26e   :  { %v6397_v59 = vor.u32 %v6962_v56, %v6394_v57  ;;  %v6857_v56 = vld [vmem:[%s10262_s1 + $0xc14] sm:$0xf0]  ;;  %v6448_v5 = vld [vmem:[%s10262_s1 + $0xfc8] sm:$0xf] }
 0x26f   :  { %3873 = vmatpush.bf16.msrb.mxu2 %v6269_v48  ;;  %v6096_v48 = vld [vmem:[%s10262_s1 + $0xd08] sm:$0xf]  ;;  %v6889_v57 = vld [vmem:[%s10262_s1 + $0xd14] sm:$0xf0]  ;;  %v5969_v62 = vor.u32 %v6857_v56, %v5968_v52  ;;  %v6895_v52 = vld [vmem:[%s10262_s1 + $0xd4c] sm:$0xf] }
 0x270   :  { %v9750_v12 = vpop.f32.mrf.mxu0  ;;  %v9752_v13 = vpop.f32.mrf.mxu1  ;;  %3886 = vmatpush.bf16.msrb.mxu3 %v6397_v59  ;;  %v6082_v59 = vld [vmem:[%s10262_s1 + $0xcf8] sm:$0xf0]  ;;  %v6097_v0 = vor.u32 %v6889_v57, %v6096_v48  ;;  %v6449_v57 = vor.u32 %v6977_v44, %v6448_v5 }
 0x271   :  { %v6085_v3 = vor.u32 %v6883_v58, %v6082_v59  ;;  %v6130_v56 = vld [vmem:[%s10262_s1 + $0xd58] sm:$0xf0]  ;;  %v6304_v58 = vld [vmem:[%s10262_s1 + $0xea8] sm:$0xf]  ;;  %v6941_v59 = vld [vmem:[%s10262_s1 + $0xeb4] sm:$0xf0] }
 0x273   :  { %3874 = vmatpush.bf16.msrb.mxu2 %v6253_v8  ;;  %v6911_v8 = vld [vmem:[%s10262_s1 + $0xdcc] sm:$0xf] }
 0x274   :  { %v2881_v36 = vpop.f32.mrf.mxu2  ;;  %v2894_v29 = vpop.f32.mrf.mxu3  ;;  %3887 = vmatpush.bf16.msrb.mxu3 %v6381_v17  ;;  %v6197_v17 = vor.u32 %v6911_v8, %v6194_v9  ;;  %v6305_v8 = vor.u32 %v6941_v59, %v6304_v58  ;;  %v6939_v58 = vld [vmem:[%s10262_s1 + $0xeac] sm:$0xf]  ;;  %v6306_v59 = vld [vmem:[%s10262_s1 + $0xeb8] sm:$0xf0] }
 0x275   :  { %v2882_v30 = vadd.f32 %v2881_v36, %v2869_v24  ;;  %v6873_v24 = vld [vmem:[%s10262_s1 + $0xc94] sm:$0xf0] }
 0x276   :  { %v6905_v36 = vld [vmem:[%s10262_s1 + $0xd94] sm:$0xf0]  ;;  %v6033_v26 = vor.u32 %v6873_v24, %v6032_v16  ;;  %v6069_v16 = vor.u32 %v6879_v10, %v6066_v11  ;;  %v6907_v24 = vld [vmem:[%s10262_s1 + $0xdac] sm:$0xf]  ;;  %v6114_v11 = vld [vmem:[%s10262_s1 + $0xd38] sm:$0xf0] }
 0x277   :  { %v2895_v63 = vadd.f32 %v2894_v29, %v2882_v30  ;;  %v6922_v29 = vld [vmem:[%s10262_s1 + $0xe24] sm:$0xf]  ;;  %v6362_v30 = vld [vmem:[%s10262_s1 + $0xf30] sm:$0xf0]  ;;  %v6891_v10 = vld [vmem:[%s10262_s1 + $0xd2c] sm:$0xf] }
 0x278   :  { %v2961_v53 = vpop.f32.mrf.mxu0  ;;  %v2974_v54 = vpop.f32.mrf.mxu1  ;;  %v6237_v27 = vor.u32 %v6922_v29, %v6234_v37  ;;  %v6365_v49 = vor.u32 %v6954_v6, %v6362_v30 }
 0x279   :  { %v3002_v32 = vpack.c.bf16 %v2895_v63, %v2843_v31  ;;  %v6161_v31 = vor.u32 %v6905_v36, %v6160_v25  ;;  %v6869_v63 = vld [vmem:[%s10262_s1 + $0xc74] sm:$0xf0]  ;;  %v6918_v53 = vld [vmem:[%s10262_s1 + $0xe04] sm:$0xf]  ;;  %v6218_v54 = vld [vmem:[%s10262_s1 + $0xe10] sm:$0xf0]  ;;  %v2973_v36 = vadd.f32 %v9752_v13, %v9750_v12 }
 0x27a   :  { %3875 = vmatpush.bf16.msrb.mxu2 %v6237_v27  ;;  %3888 = vmatpush.bf16.msrb.mxu3 %v6365_v49  ;;  %v6221_v41 = vor.u32 %v6918_v53, %v6218_v54  ;;  %v6017_v22 = vor.u32 %v6869_v63, %v6016_v28  ;;  %v6178_v25 = vld [vmem:[%s10262_s1 + $0xdb8] sm:$0xf0]  ;;  %v6871_v28 = vld [vmem:[%s10262_s1 + $0xc8c] sm:$0xf]  ;;  %v6464_v54 = vld [vmem:[%s10262_s1 + $0xfe8] sm:$0xf] }
 0x27b   :  { %v3139_v38 = vunpack.c.l.b16 %v3002_v32  ;;  %v3140_v39 = vunpack.c.h.b16 %v3002_v32  ;;  %v6349_v32 = vor.u32 %v6950_v14, %v6346_v2  ;;  %v6181_v30 = vor.u32 %v6907_v24, %v6178_v25  ;;  %v6903_v12 = vld [vmem:[%s10262_s1 + $0xd8c] sm:$0xf]  ;;  %v6416_v24 = vld [vmem:[%s10262_s1 + $0xf88] sm:$0xf]  ;;  %v6969_v25 = vld [vmem:[%s10262_s1 + $0xf94] sm:$0xf0] }
 0x27c   :  { %v2883_v20 = vpop.f32.mrf.mxu2  ;;  %v2896_v42 = vpop.f32.mrf.mxu3  ;;  %v6867_v14 = vld [vmem:[%s10262_s1 + $0xc6c] sm:$0xf] }
 0x27d   :  { %v9817_v46 = vpack.c.b16 %v3139_v38, %v3139_v38  ;;  %v9819_v47 = vpack.c.b16 %v3140_v39, %v3140_v39  ;;  %v6865_v38 = vld [vmem:[%s10262_s1 + $0xc54] sm:$0xf0]  ;;  %v6128_v39 = vld [vmem:[%s10262_s1 + $0xd48] sm:$0xf]  ;;  %v6899_v2 = vld [vmem:[%s10262_s1 + $0xd6c] sm:$0xf] }
 0x27e   :  { %3876 = vmatpush.bf16.msrb.mxu2 %v6221_v41  ;;  %3889 = vmatpush.bf16.msrb.mxu3 %v6349_v32  ;;  %v6001_v20 = vor.u32 %v6865_v38, %v6000_v35  ;;  %v6129_v42 = vor.u32 %v6897_v40, %v6128_v39  ;;  %v6018_v41 = vld [vmem:[%s10262_s1 + $0xc78] sm:$0xf0]  ;;  %v6337_v35 = vor.u32 %v6949_v55, %v6336_v7  ;;  %v6320_v39 = vld [vmem:[%s10262_s1 + $0xec8] sm:$0xf]  ;;  %v6945_v40 = vld [vmem:[%s10262_s1 + $0xed4] sm:$0xf0] }
 0x27f   :  { %3799 = vmatmul.bf16.vlgmr.msra.gmra.mxu0 %v9817_v46  ;;  %3812 = vmatmul.bf16.vlgmr.msra.gmra.mxu1 %v9819_v47  ;;  %v6146_v32 = vld [vmem:[%s10262_s1 + $0xd78] sm:$0xf0]  ;;  %v6321_v48 = vor.u32 %v6945_v40, %v6320_v39  ;;  %v6929_v7 = vld [vmem:[%s10262_s1 + $0xe54] sm:$0xf0]  ;;  %v6384_v55 = vld [vmem:[%s10262_s1 + $0xf48] sm:$0xf] }
 0x280   :  { %3895 = vmatpush.bf16.msra.mxu0 %v6081_v15  ;;  %3908 = vmatpush.bf16.msra.mxu1 %v6209_v1  ;;  %v5984_v15 = vld [vmem:[%s10262_s1 + $0xc28] sm:$0xf]  ;;  %v6861_v1 = vld [vmem:[%s10262_s1 + $0xc34] sm:$0xf0]  ;;  %v6979_v39 = vld [vmem:[%s10262_s1 + $0xfec] sm:$0xf] }
 0x281   :  { %v5985_v45 = vor.u32 %v6861_v1, %v5984_v15  ;;  %v6021_v15 = vor.u32 %v6867_v14, %v6018_v41  ;;  %v6149_v1 = vor.u32 %v6899_v2, %v6146_v32  ;;  %v6240_v14 = vld [vmem:[%s10262_s1 + $0xe28] sm:$0xf]  ;;  %v6925_v41 = vld [vmem:[%s10262_s1 + $0xe34] sm:$0xf0]  ;;  %v6466_v40 = vld [vmem:[%s10262_s1 + $0xff8] sm:$0xf0] }
 0x282   :  { %v6368_v2 = vld [vmem:[%s10262_s1 + $0xf28] sm:$0xf]  ;;  %v6957_v32 = vld [vmem:[%s10262_s1 + $0xf34] sm:$0xf0]  ;;  %v6469_v44 = vor.u32 %v6979_v39, %v6466_v40 }
 0x284   :  { %3896 = vmatpush.bf16.msra.mxu0 %v6065_v60  ;;  %3909 = vmatpush.bf16.msra.mxu1 %v6193_v61  ;;  %v9862_v18 = vpop.f32.mrf.mxu2  ;;  %v9864_v19 = vpop.f32.mrf.mxu3  ;;  %v6915_v60 = vld [vmem:[%s10262_s1 + $0xdec] sm:$0xf]  ;;  %v6210_v61 = vld [vmem:[%s10262_s1 + $0xdf8] sm:$0xf0] }
 0x285   :  { %v6213_v4 = vor.u32 %v6915_v60, %v6210_v61  ;;  %v2934_v29 = vadd.f32 %v9862_v18, %v9610_v50  ;;  %v6162_v50 = vld [vmem:[%s10262_s1 + $0xd98] sm:$0xf0]  ;;  %v6133_v61 = vor.u32 %v6895_v52, %v6130_v56  ;;  %v6975_v52 = vld [vmem:[%s10262_s1 + $0xfcc] sm:$0xf] }
 0x286   :  { %v6165_v63 = vor.u32 %v6903_v12, %v6162_v50  ;;  %v6933_v12 = vld [vmem:[%s10262_s1 + $0xe74] sm:$0xf0]  ;;  %v6400_v50 = vld [vmem:[%s10262_s1 + $0xf68] sm:$0xf]  ;;  %v6450_v56 = vld [vmem:[%s10262_s1 + $0xfd8] sm:$0xf0] }
 0x287   :  { %v2947_v13 = vadd.f32 %v9864_v19, %v2934_v29  ;;  %v6981_v19 = vld [vmem:[%s10262_s1 + $0xff4] sm:$0xf0]  ;;  %v5970_v29 = vld [vmem:[%s10262_s1 + $0xc18] sm:$0xf0] }
 0x288   :  { %3897 = vmatpush.bf16.msra.mxu0 %v6049_v21  ;;  %3910 = vmatpush.bf16.msra.mxu1 %v6177_v23  ;;  %v6875_v21 = vld [vmem:[%s10262_s1 + $0xcac] sm:$0xf]  ;;  %v6050_v23 = vld [vmem:[%s10262_s1 + $0xcb8] sm:$0xf0]  ;;  %v6465_v38 = vor.u32 %v6981_v19, %v6464_v54 }
 0x289   :  { %v6053_v27 = vor.u32 %v6875_v21, %v6050_v23  ;;  %v6117_v23 = vor.u32 %v6891_v10, %v6114_v11  ;;  %v6967_v10 = vld [vmem:[%s10262_s1 + $0xf8c] sm:$0xf]  ;;  %v6418_v11 = vld [vmem:[%s10262_s1 + $0xf98] sm:$0xf0] }
 0x28c   :  { %3898 = vmatpush.bf16.msra.mxu0 %v6033_v26  ;;  %3911 = vmatpush.bf16.msra.mxu1 %v6161_v31  ;;  %v2935_v33 = vpop.f32.mrf.mxu2  ;;  %v2948_v43 = vpop.f32.mrf.mxu3  ;;  %v6034_v26 = vld [vmem:[%s10262_s1 + $0xc98] sm:$0xf0] }
 0x28d   :  { %v6037_v31 = vor.u32 %v6871_v28, %v6034_v26  ;;  %v6272_v28 = vld [vmem:[%s10262_s1 + $0xe68] sm:$0xf] }
 0x28f   :  { %3851 = vmatmul.bf16.vlgmr.msrb.gmra.mxu0 %v9817_v46  ;;  %3864 = vmatmul.bf16.vlgmr.msrb.gmra.mxu1 %v9819_v47 }
 0x290   :  { %3899 = vmatpush.bf16.msra.mxu0 %v6017_v22  ;;  %3912 = vmatpush.bf16.msra.mxu1 %v6145_v34 }
 0x294   :  { %3900 = vmatpush.bf16.msra.mxu0 %v6001_v20  ;;  %3913 = vmatpush.bf16.msra.mxu1 %v6129_v42 }
 0x298   :  { %3901 = vmatpush.bf16.msra.mxu0 %v5985_v45  ;;  %3914 = vmatpush.bf16.msra.mxu1 %v6113_v51  ;;  %v6863_v45 = vld [vmem:[%s10262_s1 + $0xc4c] sm:$0xf]  ;;  %v6002_v51 = vld [vmem:[%s10262_s1 + $0xc58] sm:$0xf0] }
 0x299   :  { %v6005_v60 = vor.u32 %v6863_v45, %v6002_v51  ;;  %v6943_v45 = vld [vmem:[%s10262_s1 + $0xecc] sm:$0xf]  ;;  %v6322_v51 = vld [vmem:[%s10262_s1 + $0xed8] sm:$0xf0] }
 0x29c   :  { %3902 = vmatpush.bf16.msra.mxu0 %v5969_v62  ;;  %3915 = vmatpush.bf16.msra.mxu1 %v6097_v0  ;;  %v6432_v62 = vld [vmem:[%s10262_s1 + $0xfa8] sm:$0xf]  ;;  %v6973_v0 = vld [vmem:[%s10262_s1 + $0xfb4] sm:$0xf0] }
 0x29d   :  { %v6433_v9 = vor.u32 %v6973_v0, %v6432_v62  ;;  %v6309_v62 = vor.u32 %v6939_v58, %v6306_v59 }
 0x29f   :  { %3903 = vmatmul.bf16.vlgmr.msra.gmra.mxu0 %v9817_v46  ;;  %3916 = vmatmul.bf16.vlgmr.msra.gmra.mxu1 %v9819_v47 }
 0x2a0   :  { %3947 = vmatpush.bf16.msrb.mxu0 %v6085_v3  ;;  %3960 = vmatpush.bf16.msrb.mxu1 %v6213_v4  ;;  %v6859_v3 = vld [vmem:[%s10262_s1 + $0xc2c] sm:$0xf]  ;;  %v5986_v4 = vld [vmem:[%s10262_s1 + $0xc38] sm:$0xf0] }
 0x2a1   :  { %v5989_v21 = vor.u32 %v6859_v3, %v5986_v4  ;;  %v6935_v3 = vld [vmem:[%s10262_s1 + $0xe8c] sm:$0xf]  ;;  %v6290_v4 = vld [vmem:[%s10262_s1 + $0xe98] sm:$0xf0] }
 0x2a4   :  { %v2985_v37 = vpop.f32.mrf.mxu2  ;;  %v2998_v6 = vpop.f32.mrf.mxu3  ;;  %3948 = vmatpush.bf16.msrb.mxu0 %v6069_v16  ;;  %3961 = vmatpush.bf16.msrb.mxu1 %v6197_v17  ;;  %v6288_v16 = vld [vmem:[%s10262_s1 + $0xe88] sm:$0xf]  ;;  %v6937_v17 = vld [vmem:[%s10262_s1 + $0xe94] sm:$0xf0] }
 0x2a5   :  { %v2986_v49 = vadd.f32 %v2985_v37, %v2973_v36  ;;  %v6855_v36 = vld [vmem:[%s10262_s1 + $0xc0c] sm:$0xf] }
 0x2a6   :  { %v6887_v37 = vld [vmem:[%s10262_s1 + $0xd0c] sm:$0xf] }
 0x2a7   :  { %v2999_v18 = vadd.f32 %v2998_v6, %v2986_v49  ;;  %v6098_v6 = vld [vmem:[%s10262_s1 + $0xd18] sm:$0xf0]  ;;  %v5973_v49 = vor.u32 %v6855_v36, %v5970_v29  ;;  %v6927_v36 = vld [vmem:[%s10262_s1 + $0xe4c] sm:$0xf] }
 0x2a8   :  { %3949 = vmatpush.bf16.msrb.mxu0 %v6053_v27  ;;  %3962 = vmatpush.bf16.msrb.mxu1 %v6181_v30  ;;  %v6289_v27 = vor.u32 %v6937_v17, %v6288_v16  ;;  %v6417_v30 = vor.u32 %v6969_v25, %v6416_v24  ;;  %v6101_v26 = vor.u32 %v6887_v37, %v6098_v6  ;;  %v6931_v16 = vld [vmem:[%s10262_s1 + $0xe6c] sm:$0xf]  ;;  %v6274_v17 = vld [vmem:[%s10262_s1 + $0xe78] sm:$0xf0] }
 0x2a9   :  { %v3003_v53 = vpack.c.bf16 %v2999_v18, %v2947_v13  ;;  %v6965_v13 = vld [vmem:[%s10262_s1 + $0xf74] sm:$0xf0]  ;;  %v6273_v18 = vor.u32 %v6933_v12, %v6272_v28  ;;  %v6277_v24 = vor.u32 %v6931_v16, %v6274_v17  ;;  %v6258_v29 = vld [vmem:[%s10262_s1 + $0xe58] sm:$0xf0]  ;;  %v6959_v37 = vld [vmem:[%s10262_s1 + $0xf4c] sm:$0xf] }
 0x2aa   :  { %v6386_v6 = vld [vmem:[%s10262_s1 + $0xf58] sm:$0xf0]  ;;  %v6923_v28 = vld [vmem:[%s10262_s1 + $0xe2c] sm:$0xf] }
 0x2ab   :  { %v3141_v33 = vunpack.c.l.b16 %v3003_v53  ;;  %v3142_v43 = vunpack.c.h.b16 %v3003_v53  ;;  %v6961_v53 = vld [vmem:[%s10262_s1 + $0xf54] sm:$0xf0]  ;;  %v6370_v12 = vld [vmem:[%s10262_s1 + $0xf38] sm:$0xf0] }
 0x2ac   :  { %v2987_v22 = vpop.f32.mrf.mxu2  ;;  %v3000_v34 = vpop.f32.mrf.mxu3  ;;  %3950 = vmatpush.bf16.msrb.mxu0 %v6037_v31  ;;  %3963 = vmatpush.bf16.msrb.mxu1 %v6165_v63  ;;  %v6401_v31 = vor.u32 %v6965_v13, %v6400_v50  ;;  %v6256_v63 = vld [vmem:[%s10262_s1 + $0xe48] sm:$0xf]  ;;  %v6385_v19 = vor.u32 %v6961_v53, %v6384_v55 }
 0x2ad   :  { %v10034_v20 = vpack.c.b16 %v3141_v33, %v3141_v33  ;;  %v10036_v42 = vpack.c.b16 %v3142_v43, %v3142_v43  ;;  %v6257_v54 = vor.u32 %v6929_v7, %v6256_v63  ;;  %v6241_v33 = vor.u32 %v6925_v41, %v6240_v14  ;;  %v6352_v22 = vld [vmem:[%s10262_s1 + $0xf08] sm:$0xf]  ;;  %v6953_v34 = vld [vmem:[%s10262_s1 + $0xf14] sm:$0xf0]  ;;  %v6951_v63 = vld [vmem:[%s10262_s1 + $0xf0c] sm:$0xf] }
 0x2ae   :  { %v6369_v43 = vor.u32 %v6957_v32, %v6368_v2  ;;  %v6354_v7 = vld [vmem:[%s10262_s1 + $0xf18] sm:$0xf0] }
 0x2af   :  { %3825 = vmatmul.bf16.vlgmr.msra.gmra.mxu2 %v10034_v20  ;;  %3838 = vmatmul.bf16.vlgmr.msra.gmra.mxu3 %v10036_v42  ;;  %v6357_v53 = vor.u32 %v6951_v63, %v6354_v7 }
 0x2b0   :  { %3921 = vmatpush.bf16.msra.mxu2 %v6337_v35  ;;  %3934 = vmatpush.bf16.msra.mxu3 %v6465_v38  ;;  %v6947_v35 = vld [vmem:[%s10262_s1 + $0xeec] sm:$0xf]  ;;  %v6338_v38 = vld [vmem:[%s10262_s1 + $0xef8] sm:$0xf0] }
 0x2b1   :  { %3951 = vmatpush.bf16.msrb.mxu0 %v6021_v15  ;;  %3964 = vmatpush.bf16.msrb.mxu1 %v6149_v1  ;;  %v6353_v1 = vor.u32 %v6953_v34, %v6352_v22  ;;  %v6341_v5 = vor.u32 %v6947_v35, %v6338_v38 }
 0x2b4   :  { %3922 = vmatpush.bf16.msra.mxu2 %v6321_v48  ;;  %3935 = vmatpush.bf16.msra.mxu3 %v6449_v57  ;;  %v6325_v48 = vor.u32 %v6943_v45, %v6322_v51  ;;  %v6453_v57 = vor.u32 %v6975_v52, %v6450_v56 }
 0x2b5   :  { %3952 = vmatpush.bf16.msrb.mxu0 %v6005_v60  ;;  %3965 = vmatpush.bf16.msrb.mxu1 %v6133_v61  ;;  %v6971_v60 = vld [vmem:[%s10262_s1 + $0xfac] sm:$0xf]  ;;  %v6434_v61 = vld [vmem:[%s10262_s1 + $0xfb8] sm:$0xf0] }
 0x2b6   :  { %v6437_v0 = vor.u32 %v6971_v60, %v6434_v61 }
 0x2b8   :  { %3923 = vmatpush.bf16.msra.mxu2 %v6305_v8  ;;  %3936 = vmatpush.bf16.msra.mxu3 %v6433_v9  ;;  %v6293_v8 = vor.u32 %v6935_v3, %v6290_v4  ;;  %v6421_v9 = vor.u32 %v6967_v10, %v6418_v11 }
 0x2b9   :  { %3953 = vmatpush.bf16.msrb.mxu0 %v5989_v21  ;;  %3966 = vmatpush.bf16.msrb.mxu1 %v6117_v23  ;;  %v6963_v21 = vld [vmem:[%s10262_s1 + $0xf6c] sm:$0xf]  ;;  %v6402_v23 = vld [vmem:[%s10262_s1 + $0xf78] sm:$0xf0] }
 0x2ba   :  { %v6405_v25 = vor.u32 %v6963_v21, %v6402_v23 }
 0x2bc   :  { %3924 = vmatpush.bf16.msra.mxu2 %v6289_v27  ;;  %3937 = vmatpush.bf16.msra.mxu3 %v6417_v30  ;;  %v6261_v27 = vor.u32 %v6927_v36, %v6258_v29  ;;  %v6389_v30 = vor.u32 %v6959_v37, %v6386_v6 }
 0x2bd   :  { %3954 = vmatpush.bf16.msrb.mxu0 %v5973_v49  ;;  %3967 = vmatpush.bf16.msrb.mxu1 %v6101_v26  ;;  %v6242_v49 = vld [vmem:[%s10262_s1 + $0xe38] sm:$0xf0]  ;;  %v6955_v26 = vld [vmem:[%s10262_s1 + $0xf2c] sm:$0xf] }
 0x2be   :  { %v6245_v50 = vor.u32 %v6923_v28, %v6242_v49  ;;  %v6373_v13 = vor.u32 %v6955_v26, %v6370_v12 }
 0x2bf   :  { %3877 = vmatmul.bf16.vlgmr.msrb.gmra.mxu2 %v10034_v20  ;;  %3890 = vmatmul.bf16.vlgmr.msrb.gmra.mxu3 %v10036_v42 }
 0x2c0   :  { %3925 = vmatpush.bf16.msra.mxu2 %v6273_v18  ;;  %3938 = vmatpush.bf16.msra.mxu3 %v6401_v31  ;;  %v6919_v18 = vld [vmem:[%s10262_s1 + $0xe0c] sm:$0xf]  ;;  %v6226_v31 = vld [vmem:[%s10262_s1 + $0xe18] sm:$0xf0] }
 0x2c1   :  { %3955 = vmatmul.bf16.vlgmr.msrb.gmra.mxu0 %v9817_v46  ;;  %3968 = vmatmul.bf16.vlgmr.msrb.gmra.mxu1 %v9819_v47  ;;  %v6224_v46 = vld [vmem:[%s10262_s1 + $0xe08] sm:$0xf]  ;;  %v6921_v47 = vld [vmem:[%s10262_s1 + $0xe14] sm:$0xf0]  ;;  %v6229_v55 = vor.u32 %v6919_v18, %v6226_v31 }
 0x2c2   :  { %v6225_v15 = vor.u32 %v6921_v47, %v6224_v46 }
 0x2c4   :  { %3926 = vmatpush.bf16.msra.mxu2 %v6257_v54  ;;  %3939 = vmatpush.bf16.msra.mxu3 %v6385_v19 }
 0x2c8   :  { %3927 = vmatpush.bf16.msra.mxu2 %v6241_v33  ;;  %3940 = vmatpush.bf16.msra.mxu3 %v6369_v43 }
 0x2cc   :  { %3928 = vmatpush.bf16.msra.mxu2 %v6225_v15  ;;  %3941 = vmatpush.bf16.msra.mxu3 %v6353_v1 }
 0x2cf   :  { %3929 = vmatmul.bf16.vlgmr.msra.gmra.mxu2 %v10034_v20  ;;  %3942 = vmatmul.bf16.vlgmr.msra.gmra.mxu3 %v10036_v42 }
 0x2d0   :  { %3973 = vmatpush.bf16.msrb.mxu2 %v6341_v5  ;;  %3986 = vmatpush.bf16.msrb.mxu3 %v6469_v44 }
 0x2d4   :  { %3974 = vmatpush.bf16.msrb.mxu2 %v6325_v48  ;;  %3987 = vmatpush.bf16.msrb.mxu3 %v6453_v57 }
 0x2d8   :  { %3975 = vmatpush.bf16.msrb.mxu2 %v6309_v62  ;;  %3988 = vmatpush.bf16.msrb.mxu3 %v6437_v0 }
 0x2dc   :  { %3976 = vmatpush.bf16.msrb.mxu2 %v6293_v8  ;;  %3989 = vmatpush.bf16.msrb.mxu3 %v6421_v9 }
 0x2e0   :  { %3977 = vmatpush.bf16.msrb.mxu2 %v6277_v24  ;;  %3990 = vmatpush.bf16.msrb.mxu3 %v6405_v25 }
 0x2e4   :  { %3978 = vmatpush.bf16.msrb.mxu2 %v6261_v27  ;;  %3991 = vmatpush.bf16.msrb.mxu3 %v6389_v30 }
 0x2e8   :  { %3979 = vmatpush.bf16.msrb.mxu2 %v6245_v50  ;;  %3992 = vmatpush.bf16.msrb.mxu3 %v6373_v13 }
 0x2ec   :  { %3980 = vmatpush.bf16.msrb.mxu2 %v6229_v55  ;;  %3993 = vmatpush.bf16.msrb.mxu3 %v6357_v53 }
 0x2ef   :  { %3981 = vmatmul.bf16.vlgmr.msrb.gmra.mxu2 %v10034_v20  ;;  %3994 = vmatmul.bf16.vlgmr.msrb.gmra.mxu3 %v10036_v42 }
 0x2fc   :  { %v3800_v54 = vpop.f32.mrf.mxu0  ;;  %v3813_v19 = vpop.f32.mrf.mxu1 }
 0x2fd   :  { %v3814_v14 = vadd.f32 %v3813_v19, %v3800_v54 }
 0x304   :  { %v3802_v41 = vpop.f32.mrf.mxu0  ;;  %v3815_v2 = vpop.f32.mrf.mxu1 }
 0x30c   :  { %v3852_v32 = vpop.f32.mrf.mxu0  ;;  %v3865_v33 = vpop.f32.mrf.mxu1 }
 0x30d   :  { %v3866_v43 = vadd.f32 %v3865_v33, %v3852_v32 }
 0x314   :  { %v3854_v46 = vpop.f32.mrf.mxu0  ;;  %v3867_v47 = vpop.f32.mrf.mxu1 }
 0x31c   :  { %v3904_v22 = vpop.f32.mrf.mxu0  ;;  %v3917_v34 = vpop.f32.mrf.mxu1 }
 0x31d   :  { %v3918_v35 = vadd.f32 %v3917_v34, %v3904_v22 }
 0x324   :  { %v3906_v38 = vpop.f32.mrf.mxu0  ;;  %v3919_v39 = vpop.f32.mrf.mxu1 }
 0x332   :  { %v3826_v40 = vpop.f32.mrf.mxu2  ;;  %v3839_v15 = vpop.f32.mrf.mxu3 }
 0x333   :  { %v3827_v44 = vadd.f32 %v3826_v40, %v3814_v14 }
 0x335   :  { %v3840_v56 = vadd.f32 %v3839_v15, %v3827_v44 }
 0x33a   :  { %v3828_v20 = vpop.f32.mrf.mxu2  ;;  %v3841_v1 = vpop.f32.mrf.mxu3 }
 0x33e   :  { %v3956_v42 = vpop.f32.mrf.mxu0  ;;  %v3969_v5 = vpop.f32.mrf.mxu1 }
 0x33f   :  { %v3970_v10 = vadd.f32 %v3969_v5, %v3956_v42 }
 0x342   :  { %v3878_v45 = vpop.f32.mrf.mxu2  ;;  %v3891_v51 = vpop.f32.mrf.mxu3 }
 0x343   :  { %v3879_v52 = vadd.f32 %v3878_v45, %v3866_v43 }
 0x345   :  { %v3892_v48 = vadd.f32 %v3891_v51, %v3879_v52 }
 0x346   :  { %v3958_v57 = vpop.f32.mrf.mxu0  ;;  %v3971_v58 = vpop.f32.mrf.mxu1 }
 0x347   :  { %v3999_v59 = vpack.c.bf16 %v3892_v48, %v3840_v56 }
 0x349   :  { %v4005_v17 = vunpack.c.l.bf16 %v3999_v59  ;;  %v4006_v21 = vunpack.c.h.bf16 %v3999_v59 }
 0x34a   :  { %v3880_v60 = vpop.f32.mrf.mxu2  ;;  %v3893_v61 = vpop.f32.mrf.mxu3 }
 0x34b   :  { %v4009_v29 = vadd.f32 %v4006_v21, %v4005_v17 }
 0x352   :  { %v3930_v62 = vpop.f32.mrf.mxu2  ;;  %v3943_v0 = vpop.f32.mrf.mxu3 }
 0x353   :  { %v3931_v11 = vadd.f32 %v3930_v62, %v3918_v35 }
 0x355   :  { %v3944_v23 = vadd.f32 %v3943_v0, %v3931_v11 }
 0x35a   :  { %v3932_v3 = vpop.f32.mrf.mxu2  ;;  %v3945_v4 = vpop.f32.mrf.mxu3 }
 0x372   :  { %v3982_v8 = vpop.f32.mrf.mxu2  ;;  %v3995_v9 = vpop.f32.mrf.mxu3 }
 0x373   :  { %v3983_v16 = vadd.f32 %v3982_v8, %v3970_v10 }
 0x375   :  { %v3996_v24 = vadd.f32 %v3995_v9, %v3983_v16 }
 0x377   :  { %v4000_v25 = vpack.c.bf16 %v3996_v24, %v3944_v23 }
 0x379   :  { %v4007_v36 = vunpack.c.l.bf16 %v4000_v25  ;;  %v4008_v27 = vunpack.c.h.bf16 %v4000_v25 }
 0x37a   :  { %v3984_v37 = vpop.f32.mrf.mxu2  ;;  %v3997_v6 = vpop.f32.mrf.mxu3 }
 0x37b   :  { %v4010_v30 = vadd.f32 %v4009_v29, %v4007_v36 }
 0x37d   :  { %v4011_v28 = vadd.f32 %v4010_v30, %v4008_v27 }
 0x37f   :  { %4012 = vadd.xlane.f32.xlu0 %v4011_v28 }
 0x3f2   :  { %v4013_v49 = vpop.xlane.xlu0 %4012 }
 0x3f3   :  { %v4014_v26 = vrot.slane %v4013_v49, 4 }
 0x3f5   :  { %v4015_v12 = vadd.f32 %v4014_v26, %v4013_v49 }
 0x3f7   :  { %v4016_v50 = vrot.slane %v4015_v12, 2 }
 0x3f9   :  { %v4017_v13 = vadd.f32 %v4016_v50, %v4015_v12 }
 0x3fb   :  { %v4018_v18 = vrot.slane %v4017_v13, 1 }
 0x3fd   :  { %v4019_v31 = vadd.f32 %v4018_v18, %v4017_v13 }
 0x3ff   :  { %6982 = vpush %v4019_v31 }
 0x430   :  { %s6983_s10 = spop %6982 }
 0x431   :  { %4022 = sst [smem:[#allocation3]] %s6983_s10 }
 0x432   :  { %4031 = dma.smem_to_hbm %s6999_s11, 16, %s4029_s9, [#allocation4]  }
 0x433   :  { %6997 = dma.done.wait [#allocation4], 16  }
 0x434   :  { %6998 = vsyncadd [#allocation4], 4294967280 }
 0x435   :  { %4036 = sfence }
 0x436   :  { %4037 = vsyncpa [#allocation4], 1 }

</bundles_post_ra>
